<compile_context>
chip_gen: v7x
topology: tpu7x:2x2x1
jax: 0.10.0
libtpu: 0.0.40
codegen_flags: <defaults>
</compile_context>

<pallas_src>
import jax
import jax.numpy as jnp
from jax.experimental import pallas as pl
from jax.experimental.pallas import tpu as pltpu


# ----------------------------------------------------------------------------
# Fused kernel: num_layers LSTM layers + FC head, single invocation (no grid).
# ----------------------------------------------------------------------------
def _make_nba_lstm_kernel(num_layers, T, Bp):
    n_in = 1 + 3 * num_layers + 4

    def kernel(*refs):
        x_ref = refs[0]                                   # (T*Bp, Fp) f32, time-major
        layer_refs = refs[1:1 + 3 * num_layers]           # (wih_t, whh_t, bias) per layer
        w1_ref, b1_ref, w2_ref, b2_ref = refs[1 + 3 * num_layers:n_in]
        out_ref = refs[n_in]                              # (Bp, 1)
        gx_ref = refs[n_in + 1]                           # (T*Bp, 4H) f32 scratch
        seq_ref = refs[n_in + 2] if num_layers > 1 else None   # (T*Bp, H) f32 scratch

        h = None
        for l in range(num_layers):
            wih = layer_refs[3 * l][...]                  # (in_p, 4H), bf16 or f32
            whh = layer_refs[3 * l + 1][...]              # (H, 4H),   bf16 or f32
            bias = layer_refs[3 * l + 2][...]             # (1, 4H)    f32 (b_ih + b_hh)
            H = whh.shape[0]
            mm_dtype = whh.dtype
            last = (l == num_layers - 1)

            # Hoisted input projection for the whole sequence (bias folded in
            # once), staged in VMEM scratch -- outside the serial recurrence.
            inp = x_ref[...] if l == 0 else seq_ref[...]  # (T*Bp, in_p) f32
            gx_ref[...] = (
                jnp.dot(inp.astype(mm_dtype), wih,
                        preferred_element_type=jnp.float32) + bias)

            # Serial recurrence: per step only the (Bp,H)x(H,4H) h@W_hh matmul
            # plus gate math.  T static & small -> fully unrolled.
            # TODO(synk): stage W_hh in MXU weight registers across timesteps
            # (pltpu.matmul_push_rhs / matmul_acc_lhs / matmul_pop) once the
            # per-chip MXU tiling (v5e 4x128^2 vs v6e/v7x 2x256^2) is
            # parameterized; jnp.dot re-pushes the RHS every step.
            h = jnp.zeros((Bp, H), jnp.float32)
            c = jnp.zeros((Bp, H), jnp.float32)
            for t in range(T):
                gates = gx_ref[pl.ds(t * Bp, Bp), :] + jnp.dot(
                    h.astype(mm_dtype), whh, preferred_element_type=jnp.float32)
                i = jax.nn.sigmoid(gates[:, 0 * H:1 * H])
                f = jax.nn.sigmoid(gates[:, 1 * H:2 * H])
                g = jnp.tanh(gates[:, 2 * H:3 * H])
                o = jax.nn.sigmoid(gates[:, 3 * H:4 * H])
                c = f * c + i * g
                h = o * jnp.tanh(c)                       # gate math kept f32 (v5e-safe)
                if not last:
                    seq_ref[pl.ds(t * Bp, Bp), :] = h     # feeds the next layer
            # Last layer: only the final h is needed (no sequence materialized).

        # FC head fused in: Linear(H,64) -> ReLU -> [Dropout=identity] -> Linear(64,1)
        w1 = w1_ref[...]
        z = jnp.dot(h.astype(w1.dtype), w1,
                    preferred_element_type=jnp.float32) + b1_ref[...]
        z = jnp.maximum(z, 0.0)
        # N=1 output: VPU broadcast-mul + lane reduce instead of an MXU matmul.
        w2_row = w2_ref[...].astype(jnp.float32)          # (1, 64)
        y = jnp.sum(z * w2_row, axis=-1, keepdims=True) + b2_ref[...]
        out_ref[...] = y.astype(out_ref.dtype)

    return kernel


# ----------------------------------------------------------------------------
# Wrapper: one pallas_call for the whole forward.
# ----------------------------------------------------------------------------
@jax.jit
def nba_lstm_forward(x, params):
    """x: (B, T, F) batch-first, as in the PyTorch module.  Returns (B, 1)."""
    B, T, F = x.shape
    num_layers = len(params["lstm"])
    fc = params["fc"]
    H = params["lstm"][0]["whh_t"].shape[0]
    weights_bf16 = params["lstm"][0]["whh_t"].dtype == jnp.bfloat16

    # Pad batch to the sublane width of the recurrent-matmul LHS dtype
    # (bf16 packs 16 rows per vreg, f32 packs 8): full vreg / MXU occupancy,
    # and all (T,B,*)<->(T*B,*) reshapes become layout no-ops.
    sub = 16 if weights_bf16 else 8
    Bp = ((B + sub - 1) // sub) * sub
    # Pad features to a lane multiple so the hoisted layer-0 projection is a
    # clean aligned MXU shape (W_ih gets matching zero rows -> identical math).
    Fp = ((F + 127) // 128) * 128

    x32 = x.astype(jnp.float32)
    if Bp != B:
        x32 = jnp.pad(x32, ((0, Bp - B), (0, 0), (0, 0)))
    if Fp != F:
        x32 = jnp.pad(x32, ((0, 0), (0, 0), (0, Fp - F)))
    x_flat = jnp.transpose(x32, (1, 0, 2)).reshape(T * Bp, Fp)   # time-major, flat

    args = [x_flat]
    for l, layer in enumerate(params["lstm"]):
        wih = layer["wih_t"]
        if l == 0 and Fp != F:
            wih = jnp.pad(wih, ((0, Fp - F), (0, 0)))
        args += [wih, layer["whh_t"], layer["bias"]]
    args += [fc["w1_t"], fc["b1"], fc["w2_row"], fc["b2"]]

    scratch = [pltpu.VMEM((T * Bp, 4 * H), jnp.float32)]          # gx staging
    if num_layers > 1:
        scratch.append(pltpu.VMEM((T * Bp, H), jnp.float32))      # inter-layer sequence

    out = pl.pallas_call(
        _make_nba_lstm_kernel(num_layers, T, Bp),
        out_shape=jax.ShapeDtypeStruct((Bp, 1), jnp.float32),
        in_specs=[pl.BlockSpec(memory_space=pltpu.MemorySpace.VMEM)] * len(args),
        out_specs=pl.BlockSpec(memory_space=pltpu.MemorySpace.VMEM),
        scratch_shapes=scratch,
    )(*args)
    # TODO(synk): for large deployment batches add a "parallel" batch grid axis
    # (v7x: 2 TensorCores, 64 MiB VMEM -> size the batch tile so per-layer gx
    # stays well under the scoped VMEM limit).
    return out[:B]


# ----------------------------------------------------------------------------
# Parameters (PyTorch-style uniform(-1/sqrt(H), 1/sqrt(H)) init).
# ----------------------------------------------------------------------------
def init_params(key, input_size=84, hidden_size=128, num_layers=2,
                weight_dtype=jnp.bfloat16):
    """Default bf16 weights: native single-pass MXU matmuls (f32 accumulation
    kept).  Pass weight_dtype=jnp.float32 to match PyTorch numerics exactly."""
    params = {"lstm": [], "fc": {}}
    bound = 1.0 / jnp.sqrt(jnp.float32(hidden_size))
    keys = jax.random.split(key, num_layers * 4 + 4)
    ki = 0
    in_sz = input_size
    for _ in range(num_layers):
        wih = jax.random.uniform(keys[ki], (4 * hidden_size, in_sz),
                                 minval=-bound, maxval=bound, dtype=jnp.float32); ki += 1
        whh = jax.random.uniform(keys[ki], (4 * hidden_size, hidden_size),
                                 minval=-bound, maxval=bound, dtype=jnp.float32); ki += 1
        bih = jax.random.uniform(keys[ki], (4 * hidden_size,),
                                 minval=-bound, maxval=bound, dtype=jnp.float32); ki += 1
        bhh = jax.random.uniform(keys[ki], (4 * hidden_size,),
                                 minval=-bound, maxval=bound, dtype=jnp.float32); ki += 1
        params["lstm"].append({
            "wih_t": wih.T.astype(weight_dtype),          # (in_sz, 4H)
            "whh_t": whh.T.astype(weight_dtype),          # (H, 4H)
            "bias": (bih + bhh).reshape(1, -1),           # (1, 4H), f32
        })
        in_sz = hidden_size

    b1_bound = 1.0 / jnp.sqrt(jnp.float32(hidden_size))
    w1 = jax.random.uniform(keys[ki], (64, hidden_size),
                            minval=-b1_bound, maxval=b1_bound, dtype=jnp.float32); ki += 1
    b1 = jax.random.uniform(keys[ki], (64,),
                            minval=-b1_bound, maxval=b1_bound, dtype=jnp.float32); ki += 1
    b2_bound = 1.0 / jnp.sqrt(jnp.float32(64))
    w2 = jax.random.uniform(keys[ki], (1, 64),
                            minval=-b2_bound, maxval=b2_bound, dtype=jnp.float32); ki += 1
    b2 = jax.random.uniform(keys[ki], (1,),
                            minval=-b2_bound, maxval=b2_bound, dtype=jnp.float32); ki += 1
    params["fc"] = {
        "w1_t": w1.T.astype(weight_dtype),                # (H, 64)
        "b1": b1.reshape(1, -1),                          # (1, 64), f32
        "w2_row": w2.astype(weight_dtype),                # (1, 64)
        "b2": b2.reshape(1, -1),                          # (1, 1), f32
    }
    return params


# ----------------------------------------------------------------------------
# Pure-JAX reference (correctness check against the kernel).
# ----------------------------------------------------------------------------
def _reference_forward(x, params):
    seq = jnp.transpose(x.astype(jnp.float32), (1, 0, 2))  # (T, B, F)
    T, B, _ = seq.shape
    for layer in params["lstm"]:
        wih = layer["wih_t"].astype(jnp.float32)
        whh = layer["whh_t"].astype(jnp.float32)
        b = layer["bias"]
        H = whh.shape[0]
        h = jnp.zeros((B, H), jnp.float32)
        c = jnp.zeros((B, H), jnp.float32)
        outs = []
        for t in range(T):
            gates = seq[t] @ wih + h @ whh + b
            i = jax.nn.sigmoid(gates[:, 0 * H:1 * H])
            f = jax.nn.sigmoid(gates[:, 1 * H:2 * H])
            g = jnp.tanh(gates[:, 2 * H:3 * H])
            o = jax.nn.sigmoid(gates[:, 3 * H:4 * H])
            c = f * c + i * g
            h = o * jnp.tanh(c)
            outs.append(h)
        seq = jnp.stack(outs, axis=0)
    fc = params["fc"]
    z = jnp.maximum(seq[-1] @ fc["w1_t"].astype(jnp.float32) + fc["b1"], 0.0)
    return z @ fc["w2_row"].astype(jnp.float32).T + fc["b2"]


if __name__ == "__main__":
    key = jax.random.PRNGKey(0)
    pkey, xkey = jax.random.split(key)

    B, T, F, H = 2, 8, 84, 128
    x = jax.random.normal(xkey, (B, T, F), dtype=jnp.float32)

    # Default path: bf16 weights (MXU-native), f32 accumulation + gate math.
    params_bf16 = init_params(pkey, input_size=F, hidden_size=H, num_layers=2)
    out = nba_lstm_forward(x, params_bf16)
    jax.block_until_ready(out)
    assert out.shape == (B, 1), out.shape
    ref = _reference_forward(x, params_bf16)
    err = float(jnp.max(jnp.abs(out - ref)))
    assert err < 2e-2, f"bf16 path mismatch vs pure-JAX reference: max abs err {err}"

    # f32-weight path: tighter tolerance (guards against masking real bugs).
    params_f32 = init_params(pkey, input_size=F, hidden_size=H, num_layers=2,
                             weight_dtype=jnp.float32)
    out32 = nba_lstm_forward(x, params_f32)
    jax.block_until_ready(out32)
    with jax.default_matmul_precision("float32"):
        ref32 = _reference_forward(x, params_f32)
    err32 = float(jnp.max(jnp.abs(out32 - ref32)))
    assert err32 < 1e-3, f"f32 path mismatch vs pure-JAX reference: max abs err {err32}"

    print("KERNEL_OK")
</pallas_src>

<mosaic_0001>
module attributes {stable_mosaic.version = 11 : i64} {
  func.func @kernel(%arg0: memref<128x128xf32, #tpu.memory_space<vmem>>, %arg1: memref<128x512xbf16, #tpu.memory_space<vmem>>, %arg2: memref<128x512xbf16, #tpu.memory_space<vmem>>, %arg3: memref<1x512xf32, #tpu.memory_space<vmem>>, %arg4: memref<128x512xbf16, #tpu.memory_space<vmem>>, %arg5: memref<128x512xbf16, #tpu.memory_space<vmem>>, %arg6: memref<1x512xf32, #tpu.memory_space<vmem>>, %arg7: memref<128x64xbf16, #tpu.memory_space<vmem>>, %arg8: memref<1x64xf32, #tpu.memory_space<vmem>>, %arg9: memref<1x64xbf16, #tpu.memory_space<vmem>>, %arg10: memref<1x1xf32, #tpu.memory_space<vmem>>, %arg11: memref<16x1xf32, #tpu.memory_space<vmem>>, %arg12: memref<128x512xf32, #tpu.memory_space<vmem>>, %arg13: memref<128x128xf32, #tpu.memory_space<vmem>>) attributes {dimension_semantics = [], scalar_prefetch = 0 : i64, scratch_operands = 2 : i64, tpu.core_type = #tpu.core_type<tc>} {
    %c0 = arith.constant 0 : index
    %c0_0 = arith.constant 0 : index
    %0 = vector.load %arg1[%c0, %c0_0] : memref<128x512xbf16, #tpu.memory_space<vmem>>, vector<128x512xbf16>
    %c0_1 = arith.constant 0 : index
    %c0_2 = arith.constant 0 : index
    %1 = vector.load %arg2[%c0_1, %c0_2] : memref<128x512xbf16, #tpu.memory_space<vmem>>, vector<128x512xbf16>
    %c0_3 = arith.constant 0 : index
    %c0_4 = arith.constant 0 : index
    %2 = vector.load %arg3[%c0_3, %c0_4] : memref<1x512xf32, #tpu.memory_space<vmem>>, vector<1x512xf32>
    %c0_5 = arith.constant 0 : index
    %c0_6 = arith.constant 0 : index
    %3 = vector.load %arg0[%c0_5, %c0_6] : memref<128x128xf32, #tpu.memory_space<vmem>>, vector<128x128xf32>
    %4 = arith.truncf %3 : vector<128x128xf32> to vector<128x128xbf16>
    %cst = arith.constant dense<0.000000e+00> : vector<128x512xf32>
    %5 = tpu.matmul %4, %0, %cst {dimension_numbers = #tpu.dot_dimension_numbers<[1], [0], [0], [1], [0, 0, 1, 1], [], []>} : vector<128x128xbf16>, vector<128x512xbf16>, vector<128x512xf32> -> vector<128x512xf32>
    %6 = vector.broadcast %2 : vector<1x512xf32> to vector<128x512xf32>
    %7 = arith.addf %5, %6 : vector<128x512xf32>
    %c0_7 = arith.constant 0 : index
    %c0_8 = arith.constant 0 : index
    %8 = vector.load %arg12[%c0_7, %c0_8] : memref<128x512xf32, #tpu.memory_space<vmem>>, vector<128x512xf32>
    tpu.vector_store %arg12[%c0_7, %c0_8], %7 {strides = array<i32>} : memref<128x512xf32, #tpu.memory_space<vmem>>, vector<128x512xf32>,
    %cst_9 = arith.constant 0.000000e+00 : f32
    %9 = vector.broadcast %cst_9 : f32 to vector<16x128xf32>
    %cst_10 = arith.constant 0.000000e+00 : f32
    %10 = vector.broadcast %cst_10 : f32 to vector<16x128xf32>
    %c0_11 = arith.constant 0 : index
    %c0_12 = arith.constant 0 : index
    %11 = vector.load %arg12[%c0_11, %c0_12] : memref<128x512xf32, #tpu.memory_space<vmem>>, vector<16x512xf32>
    %12 = arith.truncf %9 : vector<16x128xf32> to vector<16x128xbf16>
    %cst_13 = arith.constant dense<0.000000e+00> : vector<16x512xf32>
    %13 = tpu.matmul %12, %1, %cst_13 {dimension_numbers = #tpu.dot_dimension_numbers<[1], [0], [0], [1], [0, 0, 1, 1], [], []>} : vector<16x128xbf16>, vector<128x512xbf16>, vector<16x512xf32> -> vector<16x512xf32>
    %14 = arith.addf %11, %13 : vector<16x512xf32>
    %15 = vector.extract_strided_slice %14 {offsets = [0, 0], sizes = [16, 128], strides = [1, 1]} : vector<16x512xf32> to vector<16x128xf32>
    %16 = arith.negf %15 : vector<16x128xf32>
    %17 = math.exp %16 : vector<16x128xf32>
    %cst_14 = arith.constant 1.000000e+00 : f32
    %18 = vector.broadcast %cst_14 : f32 to vector<16x128xf32>
    %19 = arith.addf %18, %17 : vector<16x128xf32>
    %20 = arith.divf %18, %19 : vector<16x128xf32>
    %21 = vector.extract_strided_slice %14 {offsets = [0, 128], sizes = [16, 128], strides = [1, 1]} : vector<16x512xf32> to vector<16x128xf32>
    %22 = arith.negf %21 : vector<16x128xf32>
    %23 = math.exp %22 : vector<16x128xf32>
    %cst_15 = arith.constant 1.000000e+00 : f32
    %24 = vector.broadcast %cst_15 : f32 to vector<16x128xf32>
    %25 = arith.addf %24, %23 : vector<16x128xf32>
    %26 = arith.divf %24, %25 : vector<16x128xf32>
    %27 = vector.extract_strided_slice %14 {offsets = [0, 256], sizes = [16, 128], strides = [1, 1]} : vector<16x512xf32> to vector<16x128xf32>
    %28 = math.tanh %27 : vector<16x128xf32>
    %29 = vector.extract_strided_slice %14 {offsets = [0, 384], sizes = [16, 128], strides = [1, 1]} : vector<16x512xf32> to vector<16x128xf32>
    %30 = arith.negf %29 : vector<16x128xf32>
    %31 = math.exp %30 : vector<16x128xf32>
    %cst_16 = arith.constant 1.000000e+00 : f32
    %32 = vector.broadcast %cst_16 : f32 to vector<16x128xf32>
    %33 = arith.addf %32, %31 : vector<16x128xf32>
    %34 = arith.divf %32, %33 : vector<16x128xf32>
    %35 = arith.mulf %26, %10 : vector<16x128xf32>
    %36 = arith.mulf %20, %28 : vector<16x128xf32>
    %37 = arith.addf %35, %36 : vector<16x128xf32>
    %38 = math.tanh %37 : vector<16x128xf32>
    %39 = arith.mulf %34, %38 : vector<16x128xf32>
    %c0_17 = arith.constant 0 : index
    %c0_18 = arith.constant 0 : index
    %40 = vector.load %arg13[%c0_17, %c0_18] : memref<128x128xf32, #tpu.memory_space<vmem>>, vector<16x128xf32>
    tpu.vector_store %arg13[%c0_17, %c0_18], %39 {strides = array<i32>} : memref<128x128xf32, #tpu.memory_space<vmem>>, vector<16x128xf32>,
    %c16 = arith.constant 16 : index
    %c0_19 = arith.constant 0 : index
    %41 = vector.load %arg12[%c16, %c0_19] : memref<128x512xf32, #tpu.memory_space<vmem>>, vector<16x512xf32>
    %42 = arith.truncf %39 : vector<16x128xf32> to vector<16x128xbf16>
    %cst_20 = arith.constant dense<0.000000e+00> : vector<16x512xf32>
    %43 = tpu.matmul %42, %1, %cst_20 {dimension_numbers = #tpu.dot_dimension_numbers<[1], [0], [0], [1], [0, 0, 1, 1], [], []>} : vector<16x128xbf16>, vector<128x512xbf16>, vector<16x512xf32> -> vector<16x512xf32>
    %44 = arith.addf %41, %43 : vector<16x512xf32>
    %45 = vector.extract_strided_slice %44 {offsets = [0, 0], sizes = [16, 128], strides = [1, 1]} : vector<16x512xf32> to vector<16x128xf32>
    %46 = arith.negf %45 : vector<16x128xf32>
    %47 = math.exp %46 : vector<16x128xf32>
    %cst_21 = arith.constant 1.000000e+00 : f32
    %48 = vector.broadcast %cst_21 : f32 to vector<16x128xf32>
    %49 = arith.addf %48, %47 : vector<16x128xf32>
    %50 = arith.divf %48, %49 : vector<16x128xf32>
    %51 = vector.extract_strided_slice %44 {offsets = [0, 128], sizes = [16, 128], strides = [1, 1]} : vector<16x512xf32> to vector<16x128xf32>
    %52 = arith.negf %51 : vector<16x128xf32>
    %53 = math.exp %52 : vector<16x128xf32>
    %cst_22 = arith.constant 1.000000e+00 : f32
    %54 = vector.broadcast %cst_22 : f32 to vector<16x128xf32>
    %55 = arith.addf %54, %53 : vector<16x128xf32>
    %56 = arith.divf %54, %55 : vector<16x128xf32>
    %57 = vector.extract_strided_slice %44 {offsets = [0, 256], sizes = [16, 128], strides = [1, 1]} : vector<16x512xf32> to vector<16x128xf32>
    %58 = math.tanh %57 : vector<16x128xf32>
    %59 = vector.extract_strided_slice %44 {offsets = [0, 384], sizes = [16, 128], strides = [1, 1]} : vector<16x512xf32> to vector<16x128xf32>
    %60 = arith.negf %59 : vector<16x128xf32>
    %61 = math.exp %60 : vector<16x128xf32>
    %cst_23 = arith.constant 1.000000e+00 : f32
    %62 = vector.broadcast %cst_23 : f32 to vector<16x128xf32>
    %63 = arith.addf %62, %61 : vector<16x128xf32>
    %64 = arith.divf %62, %63 : vector<16x128xf32>
    %65 = arith.mulf %56, %37 : vector<16x128xf32>
    %66 = arith.mulf %50, %58 : vector<16x128xf32>
    %67 = arith.addf %65, %66 : vector<16x128xf32>
    %68 = math.tanh %67 : vector<16x128xf32>
    %69 = arith.mulf %64, %68 : vector<16x128xf32>
    %c16_24 = arith.constant 16 : index
    %c0_25 = arith.constant 0 : index
    %70 = vector.load %arg13[%c16_24, %c0_25] : memref<128x128xf32, #tpu.memory_space<vmem>>, vector<16x128xf32>
    tpu.vector_store %arg13[%c16_24, %c0_25], %69 {strides = array<i32>} : memref<128x128xf32, #tpu.memory_space<vmem>>, vector<16x128xf32>,
    %c32 = arith.constant 32 : index
    %c0_26 = arith.constant 0 : index
    %71 = vector.load %arg12[%c32, %c0_26] : memref<128x512xf32, #tpu.memory_space<vmem>>, vector<16x512xf32>
    %72 = arith.truncf %69 : vector<16x128xf32> to vector<16x128xbf16>
    %cst_27 = arith.constant dense<0.000000e+00> : vector<16x512xf32>
    %73 = tpu.matmul %72, %1, %cst_27 {dimension_numbers = #tpu.dot_dimension_numbers<[1], [0], [0], [1], [0, 0, 1, 1], [], []>} : vector<16x128xbf16>, vector<128x512xbf16>, vector<16x512xf32> -> vector<16x512xf32>
    %74 = arith.addf %71, %73 : vector<16x512xf32>
    %75 = vector.extract_strided_slice %74 {offsets = [0, 0], sizes = [16, 128], strides = [1, 1]} : vector<16x512xf32> to vector<16x128xf32>
    %76 = arith.negf %75 : vector<16x128xf32>
    %77 = math.exp %76 : vector<16x128xf32>
    %cst_28 = arith.constant 1.000000e+00 : f32
    %78 = vector.broadcast %cst_28 : f32 to vector<16x128xf32>
    %79 = arith.addf %78, %77 : vector<16x128xf32>
    %80 = arith.divf %78, %79 : vector<16x128xf32>
    %81 = vector.extract_strided_slice %74 {offsets = [0, 128], sizes = [16, 128], strides = [1, 1]} : vector<16x512xf32> to vector<16x128xf32>
    %82 = arith.negf %81 : vector<16x128xf32>
    %83 = math.exp %82 : vector<16x128xf32>
    %cst_29 = arith.constant 1.000000e+00 : f32
    %84 = vector.broadcast %cst_29 : f32 to vector<16x128xf32>
    %85 = arith.addf %84, %83 : vector<16x128xf32>
    %86 = arith.divf %84, %85 : vector<16x128xf32>
    %87 = vector.extract_strided_slice %74 {offsets = [0, 256], sizes = [16, 128], strides = [1, 1]} : vector<16x512xf32> to vector<16x128xf32>
    %88 = math.tanh %87 : vector<16x128xf32>
    %89 = vector.extract_strided_slice %74 {offsets = [0, 384], sizes = [16, 128], strides = [1, 1]} : vector<16x512xf32> to vector<16x128xf32>
    %90 = arith.negf %89 : vector<16x128xf32>
    %91 = math.exp %90 : vector<16x128xf32>
    %cst_30 = arith.constant 1.000000e+00 : f32
    %92 = vector.broadcast %cst_30 : f32 to vector<16x128xf32>
    %93 = arith.addf %92, %91 : vector<16x128xf32>
    %94 = arith.divf %92, %93 : vector<16x128xf32>
    %95 = arith.mulf %86, %67 : vector<16x128xf32>
    %96 = arith.mulf %80, %88 : vector<16x128xf32>
    %97 = arith.addf %95, %96 : vector<16x128xf32>
    %98 = math.tanh %97 : vector<16x128xf32>
    %99 = arith.mulf %94, %98 : vector<16x128xf32>
    %c32_31 = arith.constant 32 : index
    %c0_32 = arith.constant 0 : index
    %100 = vector.load %arg13[%c32_31, %c0_32] : memref<128x128xf32, #tpu.memory_space<vmem>>, vector<16x128xf32>
    tpu.vector_store %arg13[%c32_31, %c0_32], %99 {strides = array<i32>} : memref<128x128xf32, #tpu.memory_space<vmem>>, vector<16x128xf32>,
    %c48 = arith.constant 48 : index
    %c0_33 = arith.constant 0 : index
    %101 = vector.load %arg12[%c48, %c0_33] : memref<128x512xf32, #tpu.memory_space<vmem>>, vector<16x512xf32>
    %102 = arith.truncf %99 : vector<16x128xf32> to vector<16x128xbf16>
    %cst_34 = arith.constant dense<0.000000e+00> : vector<16x512xf32>
    %103 = tpu.matmul %102, %1, %cst_34 {dimension_numbers = #tpu.dot_dimension_numbers<[1], [0], [0], [1], [0, 0, 1, 1], [], []>} : vector<16x128xbf16>, vector<128x512xbf16>, vector<16x512xf32> -> vector<16x512xf32>
    %104 = arith.addf %101, %103 : vector<16x512xf32>
    %105 = vector.extract_strided_slice %104 {offsets = [0, 0], sizes = [16, 128], strides = [1, 1]} : vector<16x512xf32> to vector<16x128xf32>
    %106 = arith.negf %105 : vector<16x128xf32>
    %107 = math.exp %106 : vector<16x128xf32>
    %cst_35 = arith.constant 1.000000e+00 : f32
    %108 = vector.broadcast %cst_35 : f32 to vector<16x128xf32>
    %109 = arith.addf %108, %107 : vector<16x128xf32>
    %110 = arith.divf %108, %109 : vector<16x128xf32>
    %111 = vector.extract_strided_slice %104 {offsets = [0, 128], sizes = [16, 128], strides = [1, 1]} : vector<16x512xf32> to vector<16x128xf32>
    %112 = arith.negf %111 : vector<16x128xf32>
    %113 = math.exp %112 : vector<16x128xf32>
    %cst_36 = arith.constant 1.000000e+00 : f32
    %114 = vector.broadcast %cst_36 : f32 to vector<16x128xf32>
    %115 = arith.addf %114, %113 : vector<16x128xf32>
    %116 = arith.divf %114, %115 : vector<16x128xf32>
    %117 = vector.extract_strided_slice %104 {offsets = [0, 256], sizes = [16, 128], strides = [1, 1]} : vector<16x512xf32> to vector<16x128xf32>
    %118 = math.tanh %117 : vector<16x128xf32>
    %119 = vector.extract_strided_slice %104 {offsets = [0, 384], sizes = [16, 128], strides = [1, 1]} : vector<16x512xf32> to vector<16x128xf32>
    %120 = arith.negf %119 : vector<16x128xf32>
    %121 = math.exp %120 : vector<16x128xf32>
    %cst_37 = arith.constant 1.000000e+00 : f32
    %122 = vector.broadcast %cst_37 : f32 to vector<16x128xf32>
    %123 = arith.addf %122, %121 : vector<16x128xf32>
    %124 = arith.divf %122, %123 : vector<16x128xf32>
    %125 = arith.mulf %116, %97 : vector<16x128xf32>
    %126 = arith.mulf %110, %118 : vector<16x128xf32>
    %127 = arith.addf %125, %126 : vector<16x128xf32>
    %128 = math.tanh %127 : vector<16x128xf32>
    %129 = arith.mulf %124, %128 : vector<16x128xf32>
    %c48_38 = arith.constant 48 : index
    %c0_39 = arith.constant 0 : index
    %130 = vector.load %arg13[%c48_38, %c0_39] : memref<128x128xf32, #tpu.memory_space<vmem>>, vector<16x128xf32>
    tpu.vector_store %arg13[%c48_38, %c0_39], %129 {strides = array<i32>} : memref<128x128xf32, #tpu.memory_space<vmem>>, vector<16x128xf32>,
    %c64 = arith.constant 64 : index
    %c0_40 = arith.constant 0 : index
    %131 = vector.load %arg12[%c64, %c0_40] : memref<128x512xf32, #tpu.memory_space<vmem>>, vector<16x512xf32>
    %132 = arith.truncf %129 : vector<16x128xf32> to vector<16x128xbf16>
    %cst_41 = arith.constant dense<0.000000e+00> : vector<16x512xf32>
    %133 = tpu.matmul %132, %1, %cst_41 {dimension_numbers = #tpu.dot_dimension_numbers<[1], [0], [0], [1], [0, 0, 1, 1], [], []>} : vector<16x128xbf16>, vector<128x512xbf16>, vector<16x512xf32> -> vector<16x512xf32>
    %134 = arith.addf %131, %133 : vector<16x512xf32>
    %135 = vector.extract_strided_slice %134 {offsets = [0, 0], sizes = [16, 128], strides = [1, 1]} : vector<16x512xf32> to vector<16x128xf32>
    %136 = arith.negf %135 : vector<16x128xf32>
    %137 = math.exp %136 : vector<16x128xf32>
    %cst_42 = arith.constant 1.000000e+00 : f32
    %138 = vector.broadcast %cst_42 : f32 to vector<16x128xf32>
    %139 = arith.addf %138, %137 : vector<16x128xf32>
    %140 = arith.divf %138, %139 : vector<16x128xf32>
    %141 = vector.extract_strided_slice %134 {offsets = [0, 128], sizes = [16, 128], strides = [1, 1]} : vector<16x512xf32> to vector<16x128xf32>
    %142 = arith.negf %141 : vector<16x128xf32>
    %143 = math.exp %142 : vector<16x128xf32>
    %cst_43 = arith.constant 1.000000e+00 : f32
    %144 = vector.broadcast %cst_43 : f32 to vector<16x128xf32>
    %145 = arith.addf %144, %143 : vector<16x128xf32>
    %146 = arith.divf %144, %145 : vector<16x128xf32>
    %147 = vector.extract_strided_slice %134 {offsets = [0, 256], sizes = [16, 128], strides = [1, 1]} : vector<16x512xf32> to vector<16x128xf32>
    %148 = math.tanh %147 : vector<16x128xf32>
    %149 = vector.extract_strided_slice %134 {offsets = [0, 384], sizes = [16, 128], strides = [1, 1]} : vector<16x512xf32> to vector<16x128xf32>
    %150 = arith.negf %149 : vector<16x128xf32>
    %151 = math.exp %150 : vector<16x128xf32>
    %cst_44 = arith.constant 1.000000e+00 : f32
    %152 = vector.broadcast %cst_44 : f32 to vector<16x128xf32>
    %153 = arith.addf %152, %151 : vector<16x128xf32>
    %154 = arith.divf %152, %153 : vector<16x128xf32>
    %155 = arith.mulf %146, %127 : vector<16x128xf32>
    %156 = arith.mulf %140, %148 : vector<16x128xf32>
    %157 = arith.addf %155, %156 : vector<16x128xf32>
    %158 = math.tanh %157 : vector<16x128xf32>
    %159 = arith.mulf %154, %158 : vector<16x128xf32>
    %c64_45 = arith.constant 64 : index
    %c0_46 = arith.constant 0 : index
    %160 = vector.load %arg13[%c64_45, %c0_46] : memref<128x128xf32, #tpu.memory_space<vmem>>, vector<16x128xf32>
    tpu.vector_store %arg13[%c64_45, %c0_46], %159 {strides = array<i32>} : memref<128x128xf32, #tpu.memory_space<vmem>>, vector<16x128xf32>,
    %c80 = arith.constant 80 : index
    %c0_47 = arith.constant 0 : index
    %161 = vector.load %arg12[%c80, %c0_47] : memref<128x512xf32, #tpu.memory_space<vmem>>, vector<16x512xf32>
    %162 = arith.truncf %159 : vector<16x128xf32> to vector<16x128xbf16>
    %cst_48 = arith.constant dense<0.000000e+00> : vector<16x512xf32>
    %163 = tpu.matmul %162, %1, %cst_48 {dimension_numbers = #tpu.dot_dimension_numbers<[1], [0], [0], [1], [0, 0, 1, 1], [], []>} : vector<16x128xbf16>, vector<128x512xbf16>, vector<16x512xf32> -> vector<16x512xf32>
    %164 = arith.addf %161, %163 : vector<16x512xf32>
    %165 = vector.extract_strided_slice %164 {offsets = [0, 0], sizes = [16, 128], strides = [1, 1]} : vector<16x512xf32> to vector<16x128xf32>
    %166 = arith.negf %165 : vector<16x128xf32>
    %167 = math.exp %166 : vector<16x128xf32>
    %cst_49 = arith.constant 1.000000e+00 : f32
    %168 = vector.broadcast %cst_49 : f32 to vector<16x128xf32>
    %169 = arith.addf %168, %167 : vector<16x128xf32>
    %170 = arith.divf %168, %169 : vector<16x128xf32>
    %171 = vector.extract_strided_slice %164 {offsets = [0, 128], sizes = [16, 128], strides = [1, 1]} : vector<16x512xf32> to vector<16x128xf32>
    %172 = arith.negf %171 : vector<16x128xf32>
    %173 = math.exp %172 : vector<16x128xf32>
    %cst_50 = arith.constant 1.000000e+00 : f32
    %174 = vector.broadcast %cst_50 : f32 to vector<16x128xf32>
    %175 = arith.addf %174, %173 : vector<16x128xf32>
    %176 = arith.divf %174, %175 : vector<16x128xf32>
    %177 = vector.extract_strided_slice %164 {offsets = [0, 256], sizes = [16, 128], strides = [1, 1]} : vector<16x512xf32> to vector<16x128xf32>
    %178 = math.tanh %177 : vector<16x128xf32>
    %179 = vector.extract_strided_slice %164 {offsets = [0, 384], sizes = [16, 128], strides = [1, 1]} : vector<16x512xf32> to vector<16x128xf32>
    %180 = arith.negf %179 : vector<16x128xf32>
    %181 = math.exp %180 : vector<16x128xf32>
    %cst_51 = arith.constant 1.000000e+00 : f32
    %182 = vector.broadcast %cst_51 : f32 to vector<16x128xf32>
    %183 = arith.addf %182, %181 : vector<16x128xf32>
    %184 = arith.divf %182, %183 : vector<16x128xf32>
    %185 = arith.mulf %176, %157 : vector<16x128xf32>
    %186 = arith.mulf %170, %178 : vector<16x128xf32>
    %187 = arith.addf %185, %186 : vector<16x128xf32>
    %188 = math.tanh %187 : vector<16x128xf32>
    %189 = arith.mulf %184, %188 : vector<16x128xf32>
    %c80_52 = arith.constant 80 : index
    %c0_53 = arith.constant 0 : index
    %190 = vector.load %arg13[%c80_52, %c0_53] : memref<128x128xf32, #tpu.memory_space<vmem>>, vector<16x128xf32>
    tpu.vector_store %arg13[%c80_52, %c0_53], %189 {strides = array<i32>} : memref<128x128xf32, #tpu.memory_space<vmem>>, vector<16x128xf32>,
    %c96 = arith.constant 96 : index
    %c0_54 = arith.constant 0 : index
    %191 = vector.load %arg12[%c96, %c0_54] : memref<128x512xf32, #tpu.memory_space<vmem>>, vector<16x512xf32>
    %192 = arith.truncf %189 : vector<16x128xf32> to vector<16x128xbf16>
    %cst_55 = arith.constant dense<0.000000e+00> : vector<16x512xf32>
    %193 = tpu.matmul %192, %1, %cst_55 {dimension_numbers = #tpu.dot_dimension_numbers<[1], [0], [0], [1], [0, 0, 1, 1], [], []>} : vector<16x128xbf16>, vector<128x512xbf16>, vector<16x512xf32> -> vector<16x512xf32>
    %194 = arith.addf %191, %193 : vector<16x512xf32>
    %195 = vector.extract_strided_slice %194 {offsets = [0, 0], sizes = [16, 128], strides = [1, 1]} : vector<16x512xf32> to vector<16x128xf32>
    %196 = arith.negf %195 : vector<16x128xf32>
    %197 = math.exp %196 : vector<16x128xf32>
    %cst_56 = arith.constant 1.000000e+00 : f32
    %198 = vector.broadcast %cst_56 : f32 to vector<16x128xf32>
    %199 = arith.addf %198, %197 : vector<16x128xf32>
    %200 = arith.divf %198, %199 : vector<16x128xf32>
    %201 = vector.extract_strided_slice %194 {offsets = [0, 128], sizes = [16, 128], strides = [1, 1]} : vector<16x512xf32> to vector<16x128xf32>
    %202 = arith.negf %201 : vector<16x128xf32>
    %203 = math.exp %202 : vector<16x128xf32>
    %cst_57 = arith.constant 1.000000e+00 : f32
    %204 = vector.broadcast %cst_57 : f32 to vector<16x128xf32>
    %205 = arith.addf %204, %203 : vector<16x128xf32>
    %206 = arith.divf %204, %205 : vector<16x128xf32>
    %207 = vector.extract_strided_slice %194 {offsets = [0, 256], sizes = [16, 128], strides = [1, 1]} : vector<16x512xf32> to vector<16x128xf32>
    %208 = math.tanh %207 : vector<16x128xf32>
    %209 = vector.extract_strided_slice %194 {offsets = [0, 384], sizes = [16, 128], strides = [1, 1]} : vector<16x512xf32> to vector<16x128xf32>
    %210 = arith.negf %209 : vector<16x128xf32>
    %211 = math.exp %210 : vector<16x128xf32>
    %cst_58 = arith.constant 1.000000e+00 : f32
    %212 = vector.broadcast %cst_58 : f32 to vector<16x128xf32>
    %213 = arith.addf %212, %211 : vector<16x128xf32>
    %214 = arith.divf %212, %213 : vector<16x128xf32>
    %215 = arith.mulf %206, %187 : vector<16x128xf32>
    %216 = arith.mulf %200, %208 : vector<16x128xf32>
    %217 = arith.addf %215, %216 : vector<16x128xf32>
    %218 = math.tanh %217 : vector<16x128xf32>
    %219 = arith.mulf %214, %218 : vector<16x128xf32>
    %c96_59 = arith.constant 96 : index
    %c0_60 = arith.constant 0 : index
    %220 = vector.load %arg13[%c96_59, %c0_60] : memref<128x128xf32, #tpu.memory_space<vmem>>, vector<16x128xf32>
    tpu.vector_store %arg13[%c96_59, %c0_60], %219 {strides = array<i32>} : memref<128x128xf32, #tpu.memory_space<vmem>>, vector<16x128xf32>,
    %c112 = arith.constant 112 : index
    %c0_61 = arith.constant 0 : index
    %221 = vector.load %arg12[%c112, %c0_61] : memref<128x512xf32, #tpu.memory_space<vmem>>, vector<16x512xf32>
    %222 = arith.truncf %219 : vector<16x128xf32> to vector<16x128xbf16>
    %cst_62 = arith.constant dense<0.000000e+00> : vector<16x512xf32>
    %223 = tpu.matmul %222, %1, %cst_62 {dimension_numbers = #tpu.dot_dimension_numbers<[1], [0], [0], [1], [0, 0, 1, 1], [], []>} : vector<16x128xbf16>, vector<128x512xbf16>, vector<16x512xf32> -> vector<16x512xf32>
    %224 = arith.addf %221, %223 : vector<16x512xf32>
    %225 = vector.extract_strided_slice %224 {offsets = [0, 0], sizes = [16, 128], strides = [1, 1]} : vector<16x512xf32> to vector<16x128xf32>
    %226 = arith.negf %225 : vector<16x128xf32>
    %227 = math.exp %226 : vector<16x128xf32>
    %cst_63 = arith.constant 1.000000e+00 : f32
    %228 = vector.broadcast %cst_63 : f32 to vector<16x128xf32>
    %229 = arith.addf %228, %227 : vector<16x128xf32>
    %230 = arith.divf %228, %229 : vector<16x128xf32>
    %231 = vector.extract_strided_slice %224 {offsets = [0, 128], sizes = [16, 128], strides = [1, 1]} : vector<16x512xf32> to vector<16x128xf32>
    %232 = arith.negf %231 : vector<16x128xf32>
    %233 = math.exp %232 : vector<16x128xf32>
    %cst_64 = arith.constant 1.000000e+00 : f32
    %234 = vector.broadcast %cst_64 : f32 to vector<16x128xf32>
    %235 = arith.addf %234, %233 : vector<16x128xf32>
    %236 = arith.divf %234, %235 : vector<16x128xf32>
    %237 = vector.extract_strided_slice %224 {offsets = [0, 256], sizes = [16, 128], strides = [1, 1]} : vector<16x512xf32> to vector<16x128xf32>
    %238 = math.tanh %237 : vector<16x128xf32>
    %239 = vector.extract_strided_slice %224 {offsets = [0, 384], sizes = [16, 128], strides = [1, 1]} : vector<16x512xf32> to vector<16x128xf32>
    %240 = arith.negf %239 : vector<16x128xf32>
    %241 = math.exp %240 : vector<16x128xf32>
    %cst_65 = arith.constant 1.000000e+00 : f32
    %242 = vector.broadcast %cst_65 : f32 to vector<16x128xf32>
    %243 = arith.addf %242, %241 : vector<16x128xf32>
    %244 = arith.divf %242, %243 : vector<16x128xf32>
    %245 = arith.mulf %236, %217 : vector<16x128xf32>
    %246 = arith.mulf %230, %238 : vector<16x128xf32>
    %247 = arith.addf %245, %246 : vector<16x128xf32>
    %248 = math.tanh %247 : vector<16x128xf32>
    %249 = arith.mulf %244, %248 : vector<16x128xf32>
    %c112_66 = arith.constant 112 : index
    %c0_67 = arith.constant 0 : index
    %250 = vector.load %arg13[%c112_66, %c0_67] : memref<128x128xf32, #tpu.memory_space<vmem>>, vector<16x128xf32>
    tpu.vector_store %arg13[%c112_66, %c0_67], %249 {strides = array<i32>} : memref<128x128xf32, #tpu.memory_space<vmem>>, vector<16x128xf32>,
    %c0_68 = arith.constant 0 : index
    %c0_69 = arith.constant 0 : index
    %251 = vector.load %arg4[%c0_68, %c0_69] : memref<128x512xbf16, #tpu.memory_space<vmem>>, vector<128x512xbf16>
    %c0_70 = arith.constant 0 : index
    %c0_71 = arith.constant 0 : index
    %252 = vector.load %arg5[%c0_70, %c0_71] : memref<128x512xbf16, #tpu.memory_space<vmem>>, vector<128x512xbf16>
    %c0_72 = arith.constant 0 : index
    %c0_73 = arith.constant 0 : index
    %253 = vector.load %arg6[%c0_72, %c0_73] : memref<1x512xf32, #tpu.memory_space<vmem>>, vector<1x512xf32>
    %c0_74 = arith.constant 0 : index
    %c0_75 = arith.constant 0 : index
    %254 = vector.load %arg13[%c0_74, %c0_75] : memref<128x128xf32, #tpu.memory_space<vmem>>, vector<128x128xf32>
    %255 = arith.truncf %254 : vector<128x128xf32> to vector<128x128xbf16>
    %cst_76 = arith.constant dense<0.000000e+00> : vector<128x512xf32>
    %256 = tpu.matmul %255, %251, %cst_76 {dimension_numbers = #tpu.dot_dimension_numbers<[1], [0], [0], [1], [0, 0, 1, 1], [], []>} : vector<128x128xbf16>, vector<128x512xbf16>, vector<128x512xf32> -> vector<128x512xf32>
    %257 = vector.broadcast %253 : vector<1x512xf32> to vector<128x512xf32>
    %258 = arith.addf %256, %257 : vector<128x512xf32>
    %c0_77 = arith.constant 0 : index
    %c0_78 = arith.constant 0 : index
    %259 = vector.load %arg12[%c0_77, %c0_78] : memref<128x512xf32, #tpu.memory_space<vmem>>, vector<128x512xf32>
    tpu.vector_store %arg12[%c0_77, %c0_78], %258 {strides = array<i32>} : memref<128x512xf32, #tpu.memory_space<vmem>>, vector<128x512xf32>,
    %cst_79 = arith.constant 0.000000e+00 : f32
    %260 = vector.broadcast %cst_79 : f32 to vector<16x128xf32>
    %cst_80 = arith.constant 0.000000e+00 : f32
    %261 = vector.broadcast %cst_80 : f32 to vector<16x128xf32>
    %c0_81 = arith.constant 0 : index
    %c0_82 = arith.constant 0 : index
    %262 = vector.load %arg12[%c0_81, %c0_82] : memref<128x512xf32, #tpu.memory_space<vmem>>, vector<16x512xf32>
    %263 = arith.truncf %260 : vector<16x128xf32> to vector<16x128xbf16>
    %cst_83 = arith.constant dense<0.000000e+00> : vector<16x512xf32>
    %264 = tpu.matmul %263, %252, %cst_83 {dimension_numbers = #tpu.dot_dimension_numbers<[1], [0], [0], [1], [0, 0, 1, 1], [], []>} : vector<16x128xbf16>, vector<128x512xbf16>, vector<16x512xf32> -> vector<16x512xf32>
    %265 = arith.addf %262, %264 : vector<16x512xf32>
    %266 = vector.extract_strided_slice %265 {offsets = [0, 0], sizes = [16, 128], strides = [1, 1]} : vector<16x512xf32> to vector<16x128xf32>
    %267 = arith.negf %266 : vector<16x128xf32>
    %268 = math.exp %267 : vector<16x128xf32>
    %cst_84 = arith.constant 1.000000e+00 : f32
    %269 = vector.broadcast %cst_84 : f32 to vector<16x128xf32>
    %270 = arith.addf %269, %268 : vector<16x128xf32>
    %271 = arith.divf %269, %270 : vector<16x128xf32>
    %272 = vector.extract_strided_slice %265 {offsets = [0, 128], sizes = [16, 128], strides = [1, 1]} : vector<16x512xf32> to vector<16x128xf32>
    %273 = arith.negf %272 : vector<16x128xf32>
    %274 = math.exp %273 : vector<16x128xf32>
    %cst_85 = arith.constant 1.000000e+00 : f32
    %275 = vector.broadcast %cst_85 : f32 to vector<16x128xf32>
    %276 = arith.addf %275, %274 : vector<16x128xf32>
    %277 = arith.divf %275, %276 : vector<16x128xf32>
    %278 = vector.extract_strided_slice %265 {offsets = [0, 256], sizes = [16, 128], strides = [1, 1]} : vector<16x512xf32> to vector<16x128xf32>
    %279 = math.tanh %278 : vector<16x128xf32>
    %280 = vector.extract_strided_slice %265 {offsets = [0, 384], sizes = [16, 128], strides = [1, 1]} : vector<16x512xf32> to vector<16x128xf32>
    %281 = arith.negf %280 : vector<16x128xf32>
    %282 = math.exp %281 : vector<16x128xf32>
    %cst_86 = arith.constant 1.000000e+00 : f32
    %283 = vector.broadcast %cst_86 : f32 to vector<16x128xf32>
    %284 = arith.addf %283, %282 : vector<16x128xf32>
    %285 = arith.divf %283, %284 : vector<16x128xf32>
    %286 = arith.mulf %277, %261 : vector<16x128xf32>
    %287 = arith.mulf %271, %279 : vector<16x128xf32>
    %288 = arith.addf %286, %287 : vector<16x128xf32>
    %289 = math.tanh %288 : vector<16x128xf32>
    %290 = arith.mulf %285, %289 : vector<16x128xf32>
    %c16_87 = arith.constant 16 : index
    %c0_88 = arith.constant 0 : index
    %291 = vector.load %arg12[%c16_87, %c0_88] : memref<128x512xf32, #tpu.memory_space<vmem>>, vector<16x512xf32>
    %292 = arith.truncf %290 : vector<16x128xf32> to vector<16x128xbf16>
    %cst_89 = arith.constant dense<0.000000e+00> : vector<16x512xf32>
    %293 = tpu.matmul %292, %252, %cst_89 {dimension_numbers = #tpu.dot_dimension_numbers<[1], [0], [0], [1], [0, 0, 1, 1], [], []>} : vector<16x128xbf16>, vector<128x512xbf16>, vector<16x512xf32> -> vector<16x512xf32>
    %294 = arith.addf %291, %293 : vector<16x512xf32>
    %295 = vector.extract_strided_slice %294 {offsets = [0, 0], sizes = [16, 128], strides = [1, 1]} : vector<16x512xf32> to vector<16x128xf32>
    %296 = arith.negf %295 : vector<16x128xf32>
    %297 = math.exp %296 : vector<16x128xf32>
    %cst_90 = arith.constant 1.000000e+00 : f32
    %298 = vector.broadcast %cst_90 : f32 to vector<16x128xf32>
    %299 = arith.addf %298, %297 : vector<16x128xf32>
    %300 = arith.divf %298, %299 : vector<16x128xf32>
    %301 = vector.extract_strided_slice %294 {offsets = [0, 128], sizes = [16, 128], strides = [1, 1]} : vector<16x512xf32> to vector<16x128xf32>
    %302 = arith.negf %301 : vector<16x128xf32>
    %303 = math.exp %302 : vector<16x128xf32>
    %cst_91 = arith.constant 1.000000e+00 : f32
    %304 = vector.broadcast %cst_91 : f32 to vector<16x128xf32>
    %305 = arith.addf %304, %303 : vector<16x128xf32>
    %306 = arith.divf %304, %305 : vector<16x128xf32>
    %307 = vector.extract_strided_slice %294 {offsets = [0, 256], sizes = [16, 128], strides = [1, 1]} : vector<16x512xf32> to vector<16x128xf32>
    %308 = math.tanh %307 : vector<16x128xf32>
    %309 = vector.extract_strided_slice %294 {offsets = [0, 384], sizes = [16, 128], strides = [1, 1]} : vector<16x512xf32> to vector<16x128xf32>
    %310 = arith.negf %309 : vector<16x128xf32>
    %311 = math.exp %310 : vector<16x128xf32>
    %cst_92 = arith.constant 1.000000e+00 : f32
    %312 = vector.broadcast %cst_92 : f32 to vector<16x128xf32>
    %313 = arith.addf %312, %311 : vector<16x128xf32>
    %314 = arith.divf %312, %313 : vector<16x128xf32>
    %315 = arith.mulf %306, %288 : vector<16x128xf32>
    %316 = arith.mulf %300, %308 : vector<16x128xf32>
    %317 = arith.addf %315, %316 : vector<16x128xf32>
    %318 = math.tanh %317 : vector<16x128xf32>
    %319 = arith.mulf %314, %318 : vector<16x128xf32>
    %c32_93 = arith.constant 32 : index
    %c0_94 = arith.constant 0 : index
    %320 = vector.load %arg12[%c32_93, %c0_94] : memref<128x512xf32, #tpu.memory_space<vmem>>, vector<16x512xf32>
    %321 = arith.truncf %319 : vector<16x128xf32> to vector<16x128xbf16>
    %cst_95 = arith.constant dense<0.000000e+00> : vector<16x512xf32>
    %322 = tpu.matmul %321, %252, %cst_95 {dimension_numbers = #tpu.dot_dimension_numbers<[1], [0], [0], [1], [0, 0, 1, 1], [], []>} : vector<16x128xbf16>, vector<128x512xbf16>, vector<16x512xf32> -> vector<16x512xf32>
    %323 = arith.addf %320, %322 : vector<16x512xf32>
    %324 = vector.extract_strided_slice %323 {offsets = [0, 0], sizes = [16, 128], strides = [1, 1]} : vector<16x512xf32> to vector<16x128xf32>
    %325 = arith.negf %324 : vector<16x128xf32>
    %326 = math.exp %325 : vector<16x128xf32>
    %cst_96 = arith.constant 1.000000e+00 : f32
    %327 = vector.broadcast %cst_96 : f32 to vector<16x128xf32>
    %328 = arith.addf %327, %326 : vector<16x128xf32>
    %329 = arith.divf %327, %328 : vector<16x128xf32>
    %330 = vector.extract_strided_slice %323 {offsets = [0, 128], sizes = [16, 128], strides = [1, 1]} : vector<16x512xf32> to vector<16x128xf32>
    %331 = arith.negf %330 : vector<16x128xf32>
    %332 = math.exp %331 : vector<16x128xf32>
    %cst_97 = arith.constant 1.000000e+00 : f32
    %333 = vector.broadcast %cst_97 : f32 to vector<16x128xf32>
    %334 = arith.addf %333, %332 : vector<16x128xf32>
    %335 = arith.divf %333, %334 : vector<16x128xf32>
    %336 = vector.extract_strided_slice %323 {offsets = [0, 256], sizes = [16, 128], strides = [1, 1]} : vector<16x512xf32> to vector<16x128xf32>
    %337 = math.tanh %336 : vector<16x128xf32>
    %338 = vector.extract_strided_slice %323 {offsets = [0, 384], sizes = [16, 128], strides = [1, 1]} : vector<16x512xf32> to vector<16x128xf32>
    %339 = arith.negf %338 : vector<16x128xf32>
    %340 = math.exp %339 : vector<16x128xf32>
    %cst_98 = arith.constant 1.000000e+00 : f32
    %341 = vector.broadcast %cst_98 : f32 to vector<16x128xf32>
    %342 = arith.addf %341, %340 : vector<16x128xf32>
    %343 = arith.divf %341, %342 : vector<16x128xf32>
    %344 = arith.mulf %335, %317 : vector<16x128xf32>
    %345 = arith.mulf %329, %337 : vector<16x128xf32>
    %346 = arith.addf %344, %345 : vector<16x128xf32>
    %347 = math.tanh %346 : vector<16x128xf32>
    %348 = arith.mulf %343, %347 : vector<16x128xf32>
    %c48_99 = arith.constant 48 : index
    %c0_100 = arith.constant 0 : index
    %349 = vector.load %arg12[%c48_99, %c0_100] : memref<128x512xf32, #tpu.memory_space<vmem>>, vector<16x512xf32>
    %350 = arith.truncf %348 : vector<16x128xf32> to vector<16x128xbf16>
    %cst_101 = arith.constant dense<0.000000e+00> : vector<16x512xf32>
    %351 = tpu.matmul %350, %252, %cst_101 {dimension_numbers = #tpu.dot_dimension_numbers<[1], [0], [0], [1], [0, 0, 1, 1], [], []>} : vector<16x128xbf16>, vector<128x512xbf16>, vector<16x512xf32> -> vector<16x512xf32>
    %352 = arith.addf %349, %351 : vector<16x512xf32>
    %353 = vector.extract_strided_slice %352 {offsets = [0, 0], sizes = [16, 128], strides = [1, 1]} : vector<16x512xf32> to vector<16x128xf32>
    %354 = arith.negf %353 : vector<16x128xf32>
    %355 = math.exp %354 : vector<16x128xf32>
    %cst_102 = arith.constant 1.000000e+00 : f32
    %356 = vector.broadcast %cst_102 : f32 to vector<16x128xf32>
    %357 = arith.addf %356, %355 : vector<16x128xf32>
    %358 = arith.divf %356, %357 : vector<16x128xf32>
    %359 = vector.extract_strided_slice %352 {offsets = [0, 128], sizes = [16, 128], strides = [1, 1]} : vector<16x512xf32> to vector<16x128xf32>
    %360 = arith.negf %359 : vector<16x128xf32>
    %361 = math.exp %360 : vector<16x128xf32>
    %cst_103 = arith.constant 1.000000e+00 : f32
    %362 = vector.broadcast %cst_103 : f32 to vector<16x128xf32>
    %363 = arith.addf %362, %361 : vector<16x128xf32>
    %364 = arith.divf %362, %363 : vector<16x128xf32>
    %365 = vector.extract_strided_slice %352 {offsets = [0, 256], sizes = [16, 128], strides = [1, 1]} : vector<16x512xf32> to vector<16x128xf32>
    %366 = math.tanh %365 : vector<16x128xf32>
    %367 = vector.extract_strided_slice %352 {offsets = [0, 384], sizes = [16, 128], strides = [1, 1]} : vector<16x512xf32> to vector<16x128xf32>
    %368 = arith.negf %367 : vector<16x128xf32>
    %369 = math.exp %368 : vector<16x128xf32>
    %cst_104 = arith.constant 1.000000e+00 : f32
    %370 = vector.broadcast %cst_104 : f32 to vector<16x128xf32>
    %371 = arith.addf %370, %369 : vector<16x128xf32>
    %372 = arith.divf %370, %371 : vector<16x128xf32>
    %373 = arith.mulf %364, %346 : vector<16x128xf32>
    %374 = arith.mulf %358, %366 : vector<16x128xf32>
    %375 = arith.addf %373, %374 : vector<16x128xf32>
    %376 = math.tanh %375 : vector<16x128xf32>
    %377 = arith.mulf %372, %376 : vector<16x128xf32>
    %c64_105 = arith.constant 64 : index
    %c0_106 = arith.constant 0 : index
    %378 = vector.load %arg12[%c64_105, %c0_106] : memref<128x512xf32, #tpu.memory_space<vmem>>, vector<16x512xf32>
    %379 = arith.truncf %377 : vector<16x128xf32> to vector<16x128xbf16>
    %cst_107 = arith.constant dense<0.000000e+00> : vector<16x512xf32>
    %380 = tpu.matmul %379, %252, %cst_107 {dimension_numbers = #tpu.dot_dimension_numbers<[1], [0], [0], [1], [0, 0, 1, 1], [], []>} : vector<16x128xbf16>, vector<128x512xbf16>, vector<16x512xf32> -> vector<16x512xf32>
    %381 = arith.addf %378, %380 : vector<16x512xf32>
    %382 = vector.extract_strided_slice %381 {offsets = [0, 0], sizes = [16, 128], strides = [1, 1]} : vector<16x512xf32> to vector<16x128xf32>
    %383 = arith.negf %382 : vector<16x128xf32>
    %384 = math.exp %383 : vector<16x128xf32>
    %cst_108 = arith.constant 1.000000e+00 : f32
    %385 = vector.broadcast %cst_108 : f32 to vector<16x128xf32>
    %386 = arith.addf %385, %384 : vector<16x128xf32>
    %387 = arith.divf %385, %386 : vector<16x128xf32>
    %388 = vector.extract_strided_slice %381 {offsets = [0, 128], sizes = [16, 128], strides = [1, 1]} : vector<16x512xf32> to vector<16x128xf32>
    %389 = arith.negf %388 : vector<16x128xf32>
    %390 = math.exp %389 : vector<16x128xf32>
    %cst_109 = arith.constant 1.000000e+00 : f32
    %391 = vector.broadcast %cst_109 : f32 to vector<16x128xf32>
    %392 = arith.addf %391, %390 : vector<16x128xf32>
    %393 = arith.divf %391, %392 : vector<16x128xf32>
    %394 = vector.extract_strided_slice %381 {offsets = [0, 256], sizes = [16, 128], strides = [1, 1]} : vector<16x512xf32> to vector<16x128xf32>
    %395 = math.tanh %394 : vector<16x128xf32>
    %396 = vector.extract_strided_slice %381 {offsets = [0, 384], sizes = [16, 128], strides = [1, 1]} : vector<16x512xf32> to vector<16x128xf32>
    %397 = arith.negf %396 : vector<16x128xf32>
    %398 = math.exp %397 : vector<16x128xf32>
    %cst_110 = arith.constant 1.000000e+00 : f32
    %399 = vector.broadcast %cst_110 : f32 to vector<16x128xf32>
    %400 = arith.addf %399, %398 : vector<16x128xf32>
    %401 = arith.divf %399, %400 : vector<16x128xf32>
    %402 = arith.mulf %393, %375 : vector<16x128xf32>
    %403 = arith.mulf %387, %395 : vector<16x128xf32>
    %404 = arith.addf %402, %403 : vector<16x128xf32>
    %405 = math.tanh %404 : vector<16x128xf32>
    %406 = arith.mulf %401, %405 : vector<16x128xf32>
    %c80_111 = arith.constant 80 : index
    %c0_112 = arith.constant 0 : index
    %407 = vector.load %arg12[%c80_111, %c0_112] : memref<128x512xf32, #tpu.memory_space<vmem>>, vector<16x512xf32>
    %408 = arith.truncf %406 : vector<16x128xf32> to vector<16x128xbf16>
    %cst_113 = arith.constant dense<0.000000e+00> : vector<16x512xf32>
    %409 = tpu.matmul %408, %252, %cst_113 {dimension_numbers = #tpu.dot_dimension_numbers<[1], [0], [0], [1], [0, 0, 1, 1], [], []>} : vector<16x128xbf16>, vector<128x512xbf16>, vector<16x512xf32> -> vector<16x512xf32>
    %410 = arith.addf %407, %409 : vector<16x512xf32>
    %411 = vector.extract_strided_slice %410 {offsets = [0, 0], sizes = [16, 128], strides = [1, 1]} : vector<16x512xf32> to vector<16x128xf32>
    %412 = arith.negf %411 : vector<16x128xf32>
    %413 = math.exp %412 : vector<16x128xf32>
    %cst_114 = arith.constant 1.000000e+00 : f32
    %414 = vector.broadcast %cst_114 : f32 to vector<16x128xf32>
    %415 = arith.addf %414, %413 : vector<16x128xf32>
    %416 = arith.divf %414, %415 : vector<16x128xf32>
    %417 = vector.extract_strided_slice %410 {offsets = [0, 128], sizes = [16, 128], strides = [1, 1]} : vector<16x512xf32> to vector<16x128xf32>
    %418 = arith.negf %417 : vector<16x128xf32>
    %419 = math.exp %418 : vector<16x128xf32>
    %cst_115 = arith.constant 1.000000e+00 : f32
    %420 = vector.broadcast %cst_115 : f32 to vector<16x128xf32>
    %421 = arith.addf %420, %419 : vector<16x128xf32>
    %422 = arith.divf %420, %421 : vector<16x128xf32>
    %423 = vector.extract_strided_slice %410 {offsets = [0, 256], sizes = [16, 128], strides = [1, 1]} : vector<16x512xf32> to vector<16x128xf32>
    %424 = math.tanh %423 : vector<16x128xf32>
    %425 = vector.extract_strided_slice %410 {offsets = [0, 384], sizes = [16, 128], strides = [1, 1]} : vector<16x512xf32> to vector<16x128xf32>
    %426 = arith.negf %425 : vector<16x128xf32>
    %427 = math.exp %426 : vector<16x128xf32>
    %cst_116 = arith.constant 1.000000e+00 : f32
    %428 = vector.broadcast %cst_116 : f32 to vector<16x128xf32>
    %429 = arith.addf %428, %427 : vector<16x128xf32>
    %430 = arith.divf %428, %429 : vector<16x128xf32>
    %431 = arith.mulf %422, %404 : vector<16x128xf32>
    %432 = arith.mulf %416, %424 : vector<16x128xf32>
    %433 = arith.addf %431, %432 : vector<16x128xf32>
    %434 = math.tanh %433 : vector<16x128xf32>
    %435 = arith.mulf %430, %434 : vector<16x128xf32>
    %c96_117 = arith.constant 96 : index
    %c0_118 = arith.constant 0 : index
    %436 = vector.load %arg12[%c96_117, %c0_118] : memref<128x512xf32, #tpu.memory_space<vmem>>, vector<16x512xf32>
    %437 = arith.truncf %435 : vector<16x128xf32> to vector<16x128xbf16>
    %cst_119 = arith.constant dense<0.000000e+00> : vector<16x512xf32>
    %438 = tpu.matmul %437, %252, %cst_119 {dimension_numbers = #tpu.dot_dimension_numbers<[1], [0], [0], [1], [0, 0, 1, 1], [], []>} : vector<16x128xbf16>, vector<128x512xbf16>, vector<16x512xf32> -> vector<16x512xf32>
    %439 = arith.addf %436, %438 : vector<16x512xf32>
    %440 = vector.extract_strided_slice %439 {offsets = [0, 0], sizes = [16, 128], strides = [1, 1]} : vector<16x512xf32> to vector<16x128xf32>
    %441 = arith.negf %440 : vector<16x128xf32>
    %442 = math.exp %441 : vector<16x128xf32>
    %cst_120 = arith.constant 1.000000e+00 : f32
    %443 = vector.broadcast %cst_120 : f32 to vector<16x128xf32>
    %444 = arith.addf %443, %442 : vector<16x128xf32>
    %445 = arith.divf %443, %444 : vector<16x128xf32>
    %446 = vector.extract_strided_slice %439 {offsets = [0, 128], sizes = [16, 128], strides = [1, 1]} : vector<16x512xf32> to vector<16x128xf32>
    %447 = arith.negf %446 : vector<16x128xf32>
    %448 = math.exp %447 : vector<16x128xf32>
    %cst_121 = arith.constant 1.000000e+00 : f32
    %449 = vector.broadcast %cst_121 : f32 to vector<16x128xf32>
    %450 = arith.addf %449, %448 : vector<16x128xf32>
    %451 = arith.divf %449, %450 : vector<16x128xf32>
    %452 = vector.extract_strided_slice %439 {offsets = [0, 256], sizes = [16, 128], strides = [1, 1]} : vector<16x512xf32> to vector<16x128xf32>
    %453 = math.tanh %452 : vector<16x128xf32>
    %454 = vector.extract_strided_slice %439 {offsets = [0, 384], sizes = [16, 128], strides = [1, 1]} : vector<16x512xf32> to vector<16x128xf32>
    %455 = arith.negf %454 : vector<16x128xf32>
    %456 = math.exp %455 : vector<16x128xf32>
    %cst_122 = arith.constant 1.000000e+00 : f32
    %457 = vector.broadcast %cst_122 : f32 to vector<16x128xf32>
    %458 = arith.addf %457, %456 : vector<16x128xf32>
    %459 = arith.divf %457, %458 : vector<16x128xf32>
    %460 = arith.mulf %451, %433 : vector<16x128xf32>
    %461 = arith.mulf %445, %453 : vector<16x128xf32>
    %462 = arith.addf %460, %461 : vector<16x128xf32>
    %463 = math.tanh %462 : vector<16x128xf32>
    %464 = arith.mulf %459, %463 : vector<16x128xf32>
    %c112_123 = arith.constant 112 : index
    %c0_124 = arith.constant 0 : index
    %465 = vector.load %arg12[%c112_123, %c0_124] : memref<128x512xf32, #tpu.memory_space<vmem>>, vector<16x512xf32>
    %466 = arith.truncf %464 : vector<16x128xf32> to vector<16x128xbf16>
    %cst_125 = arith.constant dense<0.000000e+00> : vector<16x512xf32>
    %467 = tpu.matmul %466, %252, %cst_125 {dimension_numbers = #tpu.dot_dimension_numbers<[1], [0], [0], [1], [0, 0, 1, 1], [], []>} : vector<16x128xbf16>, vector<128x512xbf16>, vector<16x512xf32> -> vector<16x512xf32>
    %468 = arith.addf %465, %467 : vector<16x512xf32>
    %469 = vector.extract_strided_slice %468 {offsets = [0, 0], sizes = [16, 128], strides = [1, 1]} : vector<16x512xf32> to vector<16x128xf32>
    %470 = arith.negf %469 : vector<16x128xf32>
    %471 = math.exp %470 : vector<16x128xf32>
    %cst_126 = arith.constant 1.000000e+00 : f32
    %472 = vector.broadcast %cst_126 : f32 to vector<16x128xf32>
    %473 = arith.addf %472, %471 : vector<16x128xf32>
    %474 = arith.divf %472, %473 : vector<16x128xf32>
    %475 = vector.extract_strided_slice %468 {offsets = [0, 128], sizes = [16, 128], strides = [1, 1]} : vector<16x512xf32> to vector<16x128xf32>
    %476 = arith.negf %475 : vector<16x128xf32>
    %477 = math.exp %476 : vector<16x128xf32>
    %cst_127 = arith.constant 1.000000e+00 : f32
    %478 = vector.broadcast %cst_127 : f32 to vector<16x128xf32>
    %479 = arith.addf %478, %477 : vector<16x128xf32>
    %480 = arith.divf %478, %479 : vector<16x128xf32>
    %481 = vector.extract_strided_slice %468 {offsets = [0, 256], sizes = [16, 128], strides = [1, 1]} : vector<16x512xf32> to vector<16x128xf32>
    %482 = math.tanh %481 : vector<16x128xf32>
    %483 = vector.extract_strided_slice %468 {offsets = [0, 384], sizes = [16, 128], strides = [1, 1]} : vector<16x512xf32> to vector<16x128xf32>
    %484 = arith.negf %483 : vector<16x128xf32>
    %485 = math.exp %484 : vector<16x128xf32>
    %cst_128 = arith.constant 1.000000e+00 : f32
    %486 = vector.broadcast %cst_128 : f32 to vector<16x128xf32>
    %487 = arith.addf %486, %485 : vector<16x128xf32>
    %488 = arith.divf %486, %487 : vector<16x128xf32>
    %489 = arith.mulf %480, %462 : vector<16x128xf32>
    %490 = arith.mulf %474, %482 : vector<16x128xf32>
    %491 = arith.addf %489, %490 : vector<16x128xf32>
    %492 = math.tanh %491 : vector<16x128xf32>
    %493 = arith.mulf %488, %492 : vector<16x128xf32>
    %c0_129 = arith.constant 0 : index
    %c0_130 = arith.constant 0 : index
    %494 = vector.load %arg7[%c0_129, %c0_130] : memref<128x64xbf16, #tpu.memory_space<vmem>>, vector<128x64xbf16>
    %495 = arith.truncf %493 : vector<16x128xf32> to vector<16x128xbf16>
    %cst_131 = arith.constant dense<0.000000e+00> : vector<16x64xf32>
    %496 = tpu.matmul %495, %494, %cst_131 {dimension_numbers = #tpu.dot_dimension_numbers<[1], [0], [0], [1], [0, 0, 1, 1], [], []>} : vector<16x128xbf16>, vector<128x64xbf16>, vector<16x64xf32> -> vector<16x64xf32>
    %c0_132 = arith.constant 0 : index
    %c0_133 = arith.constant 0 : index
    %497 = vector.load %arg8[%c0_132, %c0_133] : memref<1x64xf32, #tpu.memory_space<vmem>>, vector<1x64xf32>
    %498 = vector.broadcast %497 : vector<1x64xf32> to vector<16x64xf32>
    %499 = arith.addf %496, %498 : vector<16x64xf32>
    %cst_134 = arith.constant 0.000000e+00 : f32
    %500 = vector.broadcast %cst_134 : f32 to vector<16x64xf32>
    %501 = arith.maximumf %499, %500 : vector<16x64xf32>
    %c0_135 = arith.constant 0 : index
    %c0_136 = arith.constant 0 : index
    %502 = vector.load %arg9[%c0_135, %c0_136] : memref<1x64xbf16, #tpu.memory_space<vmem>>, vector<1x64xbf16>
    %503 = arith.extf %502 : vector<1x64xbf16> to vector<1x64xf32>
    %504 = vector.broadcast %503 : vector<1x64xf32> to vector<16x64xf32>
    %505 = arith.mulf %501, %504 : vector<16x64xf32>
    %cst_137 = arith.constant dense<0.000000e+00> : vector<16xf32>
    %506 = vector.multi_reduction <add>, %505, %cst_137 [1] : vector<16x64xf32> to vector<16xf32>
    %507 = vector.shape_cast %506 : vector<16xf32> to vector<16x1xf32>
    %c0_138 = arith.constant 0 : index
    %c0_139 = arith.constant 0 : index
    %508 = vector.load %arg10[%c0_138, %c0_139] : memref<1x1xf32, #tpu.memory_space<vmem>>, vector<1x1xf32>
    %509 = vector.broadcast %508 : vector<1x1xf32> to vector<16x1xf32>
    %510 = arith.addf %507, %509 : vector<16x1xf32>
    %c0_140 = arith.constant 0 : index
    %c0_141 = arith.constant 0 : index
    %511 = vector.load %arg11[%c0_140, %c0_141] : memref<16x1xf32, #tpu.memory_space<vmem>>, vector<16x1xf32>
    tpu.vector_store %arg11[%c0_140, %c0_141], %510 {strides = array<i32>} : memref<16x1xf32, #tpu.memory_space<vmem>>, vector<16x1xf32>,
    return
  }
}

</mosaic_0001>

<bundles_post_ra>
// kernel: nba_lstm_forward.1
= control target key start
LH: loop header
LB: loop body
LE: loop exit
PB: predicated region body
PF: predicated region fallthrough
CT: control target
= control target key end

     0   :  { %s7292_s0 = inlined_call_operand.vmem [shape: f32[128,128], index: 0, kind: input, shape index: {}]   ;;  %s7293_s1 = inlined_call_operand.vmem [shape: bf16[128,512], index: 1, kind: input, shape index: {}]   ;;  %s7294_s2 = inlined_call_operand.vmem [shape: bf16[128,512], index: 2, kind: input, shape index: {}]   ;;  %s7295_s3 = inlined_call_operand.hbm [shape: f32[1,512], index: 3, kind: input, shape index: {}]   ;;  %s7296_s4 = inlined_call_operand.vmem [shape: bf16[128,512], index: 4, kind: input, shape index: {}]   ;;  %s7297_s5 = inlined_call_operand.vmem [shape: bf16[128,512], index: 5, kind: input, shape index: {}]   ;;  %s7298_s6 = inlined_call_operand.vmem [shape: f32[1,512], index: 6, kind: input, shape index: {}]   ;;  %s7299_s7 = inlined_call_operand.vmem [shape: bf16[128,64], index: 7, kind: input, shape index: {}]   ;;  %s7300_s8 = inlined_call_operand.vmem [shape: f32[1,64], index: 8, kind: input, shape index: {}]   ;;  %s7301_s9 = inlined_call_operand.vmem [shape: bf16[1,64], index: 9, kind: input, shape index: {}]   ;;  %s7302_s10 = inlined_call_operand.<no memory space> [shape: f32[1,1], index: 10, kind: input, shape index: {}]   ;;  %s7303_s11 = inlined_call_operand.vmem [shape: f32[16,1], index: 11, kind: output, shape index: {}]  }
   0x1   :  { %v16_v0 = vstv %s7302_s10 }
   0x2   :  { %17 = vst [vmem:[#allocation4] sm:$0x1] %v16_v0 }
   0x3   :  { %18 = vsyncpa [#allocation6], 0  ;;  %s5393_s19 = smov [#allocation5]   ;;  %s5369_s23 = scalar_lea.hbm %s7295_s3, 64 }
   0x4   :  { %s31_s20 = sshll.u32 %s5393_s19, 4  ;;  %p5370_p0 = scmp.ne.s32.totalorder %s7295_s3, %s5369_s23  ;;  %s32_s20 = int_to_ptr.vmem [resolvable:$true] %s31_s20 }
   0x5   :  { %p5373_p1 = scmp.lt.u32.totalorder %s5369_s23, %s7295_s3 }
   0x7   :  { %p5375_p2 = pnand %p5373_p1, %p5370_p0 }
   0x9   :  { %5378 = shalt.err (!%p5375_p2)
}
   0xa   :  { %s5379_s10 = scalar_lea.vmem %s32_s20, 64  ;;  %p5384_p4 = scmp.lt.s32.totalorder %s32_s20, %s32_s20 }
   0xb   :  { %p5380_p3 = scmp.ne.s32.totalorder %s32_s20, %s5379_s10  ;;  %p5385_p5 = scmp.lt.s32.totalorder %s5379_s10, %s5379_s10 }
   0xd   :  { %p5386_p6 = por %p5385_p5, %p5384_p4 }
   0xf   :  { %p5387_p7 = pnand %p5386_p6, %p5380_p3 }
  0x11   :  { %5390 = shalt.err (!%p5387_p7)
}
  0x12   :  { %34 = dma.hbm_to_vmem [thread:$0]  %s7295_s3, 64, %s32_s20, [#allocation6]  }
  0x13   :  { %5391 = dma.done.wait [#allocation6], 64  }
  0x14   :  { %5392 = vsyncadd [#allocation6], 4294967232  ;;  %v5394_v1 = vmov 0   ;;  %v4593_v2 = vld [vmem:[%s7293_s1 + $0x4] ss:$16 sps:$4 sm:$0xff]   ;;  %v119_v35 = vld [vmem:[%s7292_s0 + $0x8] sm:$0xff] }
  0x15   :  { %355 = vmatprep.mubr.bf16.mxu0 %v5394_v1  ;;  %468 = vmatprep.mubr.bf16.mxu1 %v5394_v1  ;;  %v4595_v3 = vld [vmem:[%s7293_s1 + $0xc] ss:$16 sps:$4 sm:$0xff]   ;;  %v4597_v4 = vld [vmem:[%s7293_s1] ss:$16 sps:$4 sm:$0xff]   ;;  %v4598_v5 = vld [vmem:[%s7293_s1 + $0x8] ss:$16 sps:$4 sm:$0xff]  }
  0x16   :  { %323 = vmatprep.subr.bf16.mxu0 %v4593_v2  ;;  %436 = vmatprep.subr.bf16.mxu1 %v4595_v3  ;;  %v4599_v6 = vld [vmem:[%s7293_s1 + $0x24] ss:$16 sps:$4 sm:$0xff]   ;;  %v4601_v7 = vld [vmem:[%s7293_s1 + $0x2c] ss:$16 sps:$4 sm:$0xff]   ;;  %v4603_v8 = vld [vmem:[%s7293_s1 + $0x20] ss:$16 sps:$4 sm:$0xff]  }
  0x17   :  { %324 = vmatpush1.bf16.msra.mxu0 %v4597_v4  ;;  %437 = vmatpush1.bf16.msra.mxu1 %v4598_v5  ;;  %v4604_v9 = vld [vmem:[%s7293_s1 + $0x28] ss:$16 sps:$4 sm:$0xff]   ;;  %v4605_v10 = vld [vmem:[%s7293_s1 + $0x44] ss:$16 sps:$4 sm:$0xff]   ;;  %v4607_v11 = vld [vmem:[%s7293_s1 + $0x4c] ss:$16 sps:$4 sm:$0xff]  }
  0x18   :  { %325 = vmatprep.subr.bf16.mxu0 %v4599_v6  ;;  %438 = vmatprep.subr.bf16.mxu1 %v4601_v7  ;;  %v4609_v12 = vld [vmem:[%s7293_s1 + $0x40] ss:$16 sps:$4 sm:$0xff]   ;;  %v4610_v13 = vld [vmem:[%s7293_s1 + $0x48] ss:$16 sps:$4 sm:$0xff]   ;;  %v4611_v14 = vld [vmem:[%s7293_s1 + $0x64] ss:$16 sps:$4 sm:$0xff]  }
  0x19   :  { %v4613_v15 = vld [vmem:[%s7293_s1 + $0x6c] ss:$16 sps:$4 sm:$0xff]   ;;  %v4615_v16 = vld [vmem:[%s7293_s1 + $0x60] ss:$16 sps:$4 sm:$0xff]   ;;  %v4616_v17 = vld [vmem:[%s7293_s1 + $0x68] ss:$16 sps:$4 sm:$0xff]  }
  0x1a   :  { %v4617_v18 = vld [vmem:[%s7293_s1 + $0x84] ss:$16 sps:$4 sm:$0xff]   ;;  %v4619_v19 = vld [vmem:[%s7293_s1 + $0x8c] ss:$16 sps:$4 sm:$0xff]   ;;  %v4621_v20 = vld [vmem:[%s7293_s1 + $0x80] ss:$16 sps:$4 sm:$0xff]  }
  0x1b   :  { %326 = vmatpush1.bf16.msra.mxu0 %v4603_v8  ;;  %439 = vmatpush1.bf16.msra.mxu1 %v4604_v9  ;;  %v4622_v21 = vld [vmem:[%s7293_s1 + $0x88] ss:$16 sps:$4 sm:$0xff]   ;;  %v4623_v22 = vld [vmem:[%s7293_s1 + $0xa4] ss:$16 sps:$4 sm:$0xff]   ;;  %v4625_v23 = vld [vmem:[%s7293_s1 + $0xac] ss:$16 sps:$4 sm:$0xff]  }
  0x1c   :  { %327 = vmatprep.subr.bf16.mxu0 %v4605_v10  ;;  %440 = vmatprep.subr.bf16.mxu1 %v4607_v11  ;;  %v4627_v24 = vld [vmem:[%s7293_s1 + $0xa0] ss:$16 sps:$4 sm:$0xff]   ;;  %v4628_v25 = vld [vmem:[%s7293_s1 + $0xa8] ss:$16 sps:$4 sm:$0xff]   ;;  %v4629_v26 = vld [vmem:[%s7293_s1 + $0xc4] ss:$16 sps:$4 sm:$0xff]  }
  0x1d   :  { %v4631_v27 = vld [vmem:[%s7293_s1 + $0xcc] ss:$16 sps:$4 sm:$0xff]   ;;  %v4633_v28 = vld [vmem:[%s7293_s1 + $0xc0] ss:$16 sps:$4 sm:$0xff]   ;;  %v4634_v29 = vld [vmem:[%s7293_s1 + $0xc8] ss:$16 sps:$4 sm:$0xff]  }
  0x1e   :  { %v4635_v30 = vld [vmem:[%s7293_s1 + $0xe4] ss:$16 sps:$4 sm:$0xff]   ;;  %v4637_v31 = vld [vmem:[%s7293_s1 + $0xec] ss:$16 sps:$4 sm:$0xff]   ;;  %v4639_v32 = vld [vmem:[%s7293_s1 + $0xe0] ss:$16 sps:$4 sm:$0xff]  }
  0x1f   :  { %328 = vmatpush1.bf16.msra.mxu0 %v4609_v12  ;;  %441 = vmatpush1.bf16.msra.mxu1 %v4610_v13  ;;  %v4640_v33 = vld [vmem:[%s7293_s1 + $0xe8] ss:$16 sps:$4 sm:$0xff]   ;;  %v118_v34 = vld [vmem:[%s7292_s0] sm:$0xff]  ;;  %v5584_v37 = vld [vmem:[%s7294_s2 + $0xc] ss:$16 sps:$4 sm:$0xff]   ;;  %vm5396_vm0 = vmmov 0  }
  0x20   :  { %329 = vmatprep.subr.bf16.mxu0 %v4611_v14  ;;  %442 = vmatprep.subr.bf16.mxu1 %v4613_v15  ;;  %v5579_v36 = vld [vmem:[%s7294_s2 + $0x4] ss:$16 sps:$4 sm:$0xff]   ;;  %v134_v38 = vpack.c.bf16 %v119_v35, %v118_v34  ;;  %v5589_v39 = vld [vmem:[%s7294_s2] ss:$16 sps:$4 sm:$0xff]   ;;  %v5601_v41 = vld [vmem:[%s7294_s2 + $0x8] ss:$16 sps:$4 sm:$0xff]  }
  0x21   :  { %v5595_v40 = vld [vmem:[%s7294_s2 + $0x24] ss:$16 sps:$4 sm:$0xff]   ;;  %v5606_v42 = vld [vmem:[%s7294_s2 + $0x2c] ss:$16 sps:$4 sm:$0xff]   ;;  %v5619_v45 = vld [vmem:[%s7294_s2 + $0x20] ss:$16 sps:$4 sm:$0xff]  }
  0x22   :  { %v120_v43 = vld [vmem:[%s7292_s0 + $0x10] sm:$0xff]  ;;  %v121_v44 = vld [vmem:[%s7292_s0 + $0x18] sm:$0xff]  ;;  %v122_v53 = vld [vmem:[%s7292_s0 + $0x20] sm:$0xff]  ;;  %vm4046_vm1 = vcmask 523264   ;;  %vm4062_vm2 = vcmask 7168  }
  0x23   :  { %330 = vmatpush1.bf16.msra.mxu0 %v4615_v16  ;;  %443 = vmatpush1.bf16.msra.mxu1 %v4616_v17  ;;  %v5626_v46 = vld [vmem:[%s7294_s2 + $0x44] ss:$16 sps:$4 sm:$0xff]   ;;  %v5632_v47 = vld [vmem:[%s7294_s2 + $0x28] ss:$16 sps:$4 sm:$0xff]   ;;  %v135_v48 = vpack.c.bf16 %v121_v44, %v120_v43  ;;  %v5640_v49 = vld [vmem:[%s7294_s2 + $0x40] ss:$16 sps:$4 sm:$0xff]  }
  0x24   :  { %331 = vmatprep.subr.bf16.mxu0 %v4617_v18  ;;  %444 = vmatprep.subr.bf16.mxu1 %v4619_v19  ;;  %v5645_v50 = vld [vmem:[%s7294_s2 + $0x64] ss:$16 sps:$4 sm:$0xff]   ;;  %v5650_v51 = vld [vmem:[%s7294_s2 + $0x4c] ss:$16 sps:$4 sm:$0xff]   ;;  %v5656_v52 = vld [vmem:[%s7294_s2 + $0x48] ss:$16 sps:$4 sm:$0xff]  }
  0x25   :  { %v5664_v54 = vld [vmem:[%s7294_s2 + $0x6c] ss:$16 sps:$4 sm:$0xff]   ;;  %v5675_v56 = vld [vmem:[%s7294_s2 + $0x60] ss:$16 sps:$4 sm:$0xff]   ;;  %v5682_v57 = vld [vmem:[%s7294_s2 + $0x84] ss:$16 sps:$4 sm:$0xff]  }
  0x26   :  { %v123_v55 = vld [vmem:[%s7292_s0 + $0x28] sm:$0xff]  ;;  %v5693_v60 = vld [vmem:[%s7294_s2 + $0x80] ss:$16 sps:$4 sm:$0xff]   ;;  %v5704_v62 = vld [vmem:[%s7294_s2 + $0xa4] ss:$16 sps:$4 sm:$0xff]  }
  0x27   :  { %332 = vmatpush1.bf16.msra.mxu0 %v4621_v20  ;;  %445 = vmatpush1.bf16.msra.mxu1 %v4622_v21  ;;  %v5688_v58 = vld [vmem:[%s7294_s2 + $0x68] ss:$16 sps:$4 sm:$0xff]   ;;  %v136_v59 = vpack.c.bf16 %v123_v55, %v122_v53  ;;  %v5699_v61 = vld [vmem:[%s7294_s2 + $0x8c] ss:$16 sps:$4 sm:$0xff]   ;;  %v124_v2 = vld [vmem:[%s7292_s0 + $0x30] sm:$0xff] }
  0x28   :  { %333 = vmatprep.subr.bf16.mxu0 %v4623_v22  ;;  %446 = vmatprep.subr.bf16.mxu1 %v4625_v23  ;;  %v5709_v63 = vld [vmem:[%s7294_s2 + $0x88] ss:$16 sps:$4 sm:$0xff]   ;;  %v5715_v0 = vld [vmem:[%s7294_s2 + $0xac] ss:$16 sps:$4 sm:$0xff]   ;;  %v5728_v4 = vld [vmem:[%s7294_s2 + $0xa0] ss:$16 sps:$4 sm:$0xff]  }
  0x29   :  { %v125_v3 = vld [vmem:[%s7292_s0 + $0x38] sm:$0xff]  ;;  %v5735_v5 = vld [vmem:[%s7294_s2 + $0xc4] ss:$16 sps:$4 sm:$0xff]   ;;  %v5749_v8 = vld [vmem:[%s7294_s2 + $0xc0] ss:$16 sps:$4 sm:$0xff]  }
  0x2a   :  { %v5740_v6 = vld [vmem:[%s7294_s2 + $0xa8] ss:$16 sps:$4 sm:$0xff]   ;;  %v137_v7 = vpack.c.bf16 %v125_v3, %v124_v2  ;;  %v5755_v9 = vld [vmem:[%s7294_s2 + $0xcc] ss:$16 sps:$4 sm:$0xff]   ;;  %v5760_v10 = vld [vmem:[%s7294_s2 + $0xe4] ss:$16 sps:$4 sm:$0xff]  }
  0x2b   :  { %334 = vmatpush1.bf16.msra.mxu0 %v4627_v24  ;;  %447 = vmatpush1.bf16.msra.mxu1 %v4628_v25  ;;  %v5765_v11 = vld [vmem:[%s7294_s2 + $0xc8] ss:$16 sps:$4 sm:$0xff]   ;;  %v5771_v12 = vld [vmem:[%s7294_s2 + $0xec] ss:$16 sps:$4 sm:$0xff]   ;;  %v126_v13 = vld [vmem:[%s7292_s0 + $0x40] sm:$0xff] }
  0x2c   :  { %335 = vmatprep.subr.bf16.mxu0 %v4629_v26  ;;  %448 = vmatprep.subr.bf16.mxu1 %v4631_v27  ;;  %v127_v14 = vld [vmem:[%s7292_s0 + $0x48] sm:$0xff]  ;;  %v5784_v15 = vld [vmem:[%s7294_s2 + $0xe0] ss:$16 sps:$4 sm:$0xff]   ;;  %v129_v19 = vld [vmem:[%s7292_s0 + $0x58] sm:$0xff]  ;;  %v143_v27 = vlaneseq }
  0x2d   :  { %v5791_v16 = vld [vmem:[%s7294_s2 + $0xe8] ss:$16 sps:$4 sm:$0xff]   ;;  %v138_v17 = vpack.c.bf16 %v127_v14, %v126_v13  ;;  %v128_v18 = vld [vmem:[%s7292_s0 + $0x50] sm:$0xff]  ;;  %v130_v21 = vld [vmem:[%s7292_s0 + $0x60] sm:$0xff] }
  0x2e   :  { %v139_v20 = vpack.c.bf16 %v129_v19, %v128_v18  ;;  %v131_v22 = vld [vmem:[%s7292_s0 + $0x68] sm:$0xff]  ;;  %v132_v24 = vld [vmem:[%s7292_s0 + $0x70] sm:$0xff]  ;;  %v133_v25 = vld [vmem:[%s7292_s0 + $0x78] sm:$0xff] }
  0x2f   :  { %336 = vmatpush1.bf16.msra.mxu0 %v4633_v28  ;;  %449 = vmatpush1.bf16.msra.mxu1 %v4634_v29  ;;  %v140_v23 = vpack.c.bf16 %v131_v22, %v130_v21  ;;  %v141_v26 = vpack.c.bf16 %v133_v25, %v132_v24  ;;  %v5864_v28 = vshrl.u32 %v143_v27, 7 }
  0x30   :  { %337 = vmatprep.subr.bf16.mxu0 %v4635_v30  ;;  %450 = vmatprep.subr.bf16.mxu1 %v4637_v31  ;;  %v117_v30 = vld [vmem:[#allocation5] sm:$0xf] }
  0x31   :  { %v5867_v29 = vsub.s32 0, %v5864_v28  ;;  %v7306_v31 = vsub.s32 1, %v5864_v28  ;;  %v7304_v3 = vsub.s32 2, %v5864_v28 }
  0x33   :  { %338 = vmatpush1.bf16.msra.mxu0 %v4639_v32  ;;  %451 = vmatpush1.bf16.msra.mxu1 %v4640_v33  ;;  %v5871_v32 = vrot.slane %v117_v30, %v5867_v29  ;;  %v5875_v33 = vrot.slane %v117_v30, %v7306_v31  ;;  %v5889_v22 = vrot.slane %v117_v30, %v7304_v3 }
  0x34   :  { %781 = vmatprep.subr.bf16.mxu0 %v5579_v36  ;;  %824 = vmatprep.subr.bf16.mxu1 %v5584_v37 }
  0x36   :  { %356 = vmatmul.mubr.bf16.vlgmr.msra.gmra.mrb[0].mxu0 %v134_v38  ;;  %469 = vmatmul.mubr.bf16.vlgmr.msra.gmra.mrb[0].mxu1 %v134_v38  ;;  %v7305_v38 = vsub.s32 3, %v5864_v28 }
  0x37   :  { %782 = vmatpush1.bf16.msra.mxu0 %v5589_v39  ;;  %365 = vmatprep.mubr.bf16.mxu0 %v5394_v1 }
  0x38   :  { %478 = vmatprep.mubr.bf16.mxu1 %v5394_v1  ;;  %783 = vmatprep.subr.bf16.mxu0 %v5595_v40  ;;  %v5884_v18 = vrot.slane %v117_v30, %v7305_v38 }
  0x39   :  { %825 = vmatpush1.bf16.msra.mxu1 %v5601_v41 }
  0x3a   :  { %826 = vmatprep.subr.bf16.mxu1 %v5606_v42 }
  0x3b   :  { %784 = vmatpush1.bf16.msra.mxu0 %v5619_v45 }
  0x3c   :  { %785 = vmatprep.subr.bf16.mxu0 %v5626_v46 }
  0x3d   :  { %827 = vmatpush1.bf16.msra.mxu1 %v5632_v47 }
  0x3e   :  { %366 = vmatmul.mubr.bf16.gmra.mrb[4].mxu0 %v135_v48  ;;  %479 = vmatmul.mubr.bf16.gmra.mrb[4].mxu1 %v135_v48 }
  0x3f   :  { %375 = vmatprep.mubr.bf16.mxu0 %v5394_v1  ;;  %488 = vmatprep.mubr.bf16.mxu1 %v5394_v1 }
  0x40   :  { %786 = vmatpush1.bf16.msra.mxu0 %v5640_v49  ;;  %828 = vmatprep.subr.bf16.mxu1 %v5650_v51 }
  0x41   :  { %787 = vmatprep.subr.bf16.mxu0 %v5645_v50  ;;  %829 = vmatpush1.bf16.msra.mxu1 %v5656_v52 }
  0x42   :  { %830 = vmatprep.subr.bf16.mxu1 %v5664_v54 }
  0x44   :  { %788 = vmatpush1.bf16.msra.mxu0 %v5675_v56 }
  0x45   :  { %789 = vmatprep.subr.bf16.mxu0 %v5682_v57  ;;  %831 = vmatpush1.bf16.msra.mxu1 %v5688_v58 }
  0x46   :  { %376 = vmatmul.mubr.bf16.gmra.mrb[8].mxu0 %v136_v59  ;;  %489 = vmatmul.mubr.bf16.gmra.mrb[8].mxu1 %v136_v59 }
  0x47   :  { %385 = vmatprep.mubr.bf16.mxu0 %v5394_v1  ;;  %498 = vmatprep.mubr.bf16.mxu1 %v5394_v1 }
  0x48   :  { %790 = vmatpush1.bf16.msra.mxu0 %v5693_v60  ;;  %832 = vmatprep.subr.bf16.mxu1 %v5699_v61 }
  0x49   :  { %791 = vmatprep.subr.bf16.mxu0 %v5704_v62  ;;  %833 = vmatpush1.bf16.msra.mxu1 %v5709_v63 }
  0x4a   :  { %834 = vmatprep.subr.bf16.mxu1 %v5715_v0 }
  0x4c   :  { %792 = vmatpush1.bf16.msra.mxu0 %v5728_v4 }
  0x4d   :  { %793 = vmatprep.subr.bf16.mxu0 %v5735_v5  ;;  %835 = vmatpush1.bf16.msra.mxu1 %v5740_v6 }
  0x4e   :  { %386 = vmatmul.mubr.bf16.gmra.mrb[12].mxu0 %v137_v7  ;;  %499 = vmatmul.mubr.bf16.gmra.mrb[12].mxu1 %v137_v7 }
  0x4f   :  { %395 = vmatprep.mubr.bf16.mxu0 %v5394_v1  ;;  %508 = vmatprep.mubr.bf16.mxu1 %v5394_v1 }
  0x50   :  { %794 = vmatpush1.bf16.msra.mxu0 %v5749_v8  ;;  %836 = vmatprep.subr.bf16.mxu1 %v5755_v9 }
  0x51   :  { %795 = vmatprep.subr.bf16.mxu0 %v5760_v10  ;;  %837 = vmatpush1.bf16.msra.mxu1 %v5765_v11 }
  0x52   :  { %838 = vmatprep.subr.bf16.mxu1 %v5771_v12 }
  0x54   :  { %796 = vmatpush1.bf16.msra.mxu0 %v5784_v15 }
  0x55   :  { %839 = vmatpush1.bf16.msra.mxu1 %v5791_v16  ;;  %934 = vmatprep.subr.bf16.mxu0 %v5579_v36 }
  0x56   :  { %396 = vmatmul.mubr.bf16.gmra.mrb[16].mxu0 %v138_v17  ;;  %509 = vmatmul.mubr.bf16.gmra.mrb[16].mxu1 %v138_v17 }
  0x57   :  { %405 = vmatprep.mubr.bf16.mxu0 %v5394_v1  ;;  %518 = vmatprep.mubr.bf16.mxu1 %v5394_v1 }
  0x58   :  { %977 = vmatprep.subr.bf16.mxu1 %v5584_v37 }
  0x5e   :  { %406 = vmatmul.mubr.bf16.gmra.mrb[20].mxu0 %v139_v20  ;;  %519 = vmatmul.mubr.bf16.gmra.mrb[20].mxu1 %v139_v20 }
  0x5f   :  { %415 = vmatprep.mubr.bf16.mxu0 %v5394_v1  ;;  %528 = vmatprep.mubr.bf16.mxu1 %v5394_v1 }
  0x66   :  { %416 = vmatmul.mubr.bf16.gmra.mrb[24].mxu0 %v140_v23  ;;  %529 = vmatmul.mubr.bf16.gmra.mrb[24].mxu1 %v140_v23 }
  0x67   :  { %425 = vmatprep.mubr.bf16.mxu0 %v5394_v1  ;;  %538 = vmatprep.mubr.bf16.mxu1 %v5394_v1 }
  0x6e   :  { %426 = vmatmul.mubr.bf16.gmra.mrb[28].mxu0 %v141_v26  ;;  %539 = vmatmul.mubr.bf16.gmra.mrb[28].mxu1 %v141_v26 }
  0x6f   :  { %813 = vmatprep.mubr.bf16.mxu0 %v5394_v1  ;;  %856 = vmatprep.mubr.bf16.mxu1 %v5394_v1 }
  0x76   :  { %814 = vmatmul.mubr.bf16.vlgmr.msra.gmra.mrb[0].mxu0 %v5394_v1  ;;  %857 = vmatmul.mubr.bf16.vlgmr.msra.gmra.mrb[0].mxu1 %v5394_v1 }
  0x77   :  { %935 = vmatpush1.bf16.msra.mxu0 %v5589_v39  ;;  %978 = vmatpush1.bf16.msra.mxu1 %v5601_v41 }
  0x78   :  { %936 = vmatprep.subr.bf16.mxu0 %v5595_v40  ;;  %979 = vmatprep.subr.bf16.mxu1 %v5606_v42 }
  0x79   :  { %966 = vmatprep.mubr.bf16.mxu0 %v5394_v1  ;;  %1009 = vmatprep.mubr.bf16.mxu1 %v5394_v1 }
  0x7b   :  { %937 = vmatpush1.bf16.msra.mxu0 %v5619_v45  ;;  %980 = vmatpush1.bf16.msra.mxu1 %v5632_v47 }
  0x7c   :  { %938 = vmatprep.subr.bf16.mxu0 %v5626_v46  ;;  %981 = vmatprep.subr.bf16.mxu1 %v5650_v51 }
  0x7f   :  { %939 = vmatpush1.bf16.msra.mxu0 %v5640_v49  ;;  %982 = vmatpush1.bf16.msra.mxu1 %v5656_v52 }
  0x80   :  { %940 = vmatprep.subr.bf16.mxu0 %v5645_v50  ;;  %983 = vmatprep.subr.bf16.mxu1 %v5664_v54 }
  0x83   :  { %941 = vmatpush1.bf16.msra.mxu0 %v5675_v56  ;;  %984 = vmatpush1.bf16.msra.mxu1 %v5688_v58 }
  0x84   :  { %942 = vmatprep.subr.bf16.mxu0 %v5682_v57  ;;  %985 = vmatprep.subr.bf16.mxu1 %v5699_v61 }
  0x87   :  { %943 = vmatpush1.bf16.msra.mxu0 %v5693_v60  ;;  %986 = vmatpush1.bf16.msra.mxu1 %v5709_v63 }
  0x88   :  { %944 = vmatprep.subr.bf16.mxu0 %v5704_v62  ;;  %987 = vmatprep.subr.bf16.mxu1 %v5715_v0 }
  0x8b   :  { %945 = vmatpush1.bf16.msra.mxu0 %v5728_v4  ;;  %988 = vmatpush1.bf16.msra.mxu1 %v5740_v6 }
  0x8c   :  { %946 = vmatprep.subr.bf16.mxu0 %v5735_v5  ;;  %989 = vmatprep.subr.bf16.mxu1 %v5755_v9 }
  0x8f   :  { %947 = vmatpush1.bf16.msra.mxu0 %v5749_v8  ;;  %990 = vmatpush1.bf16.msra.mxu1 %v5765_v11 }
  0x90   :  { %948 = vmatprep.subr.bf16.mxu0 %v5760_v10  ;;  %991 = vmatprep.subr.bf16.mxu1 %v5771_v12 }
  0x93   :  { %949 = vmatpush1.bf16.msra.mxu0 %v5784_v15  ;;  %992 = vmatpush1.bf16.msra.mxu1 %v5791_v16 }
  0x94   :  { %1087 = vmatprep.subr.bf16.mxu0 %v5579_v36  ;;  %1130 = vmatprep.subr.bf16.mxu1 %v5584_v37 }
 0x149   :  { %v815_v34 = vpop.f32.mrb[0].mxu0  ;;  %v858_v35 = vpop.f32.mrb[0].mxu1 }
 0x14a   :  { %v4333_v43 = vadd.f32 %v815_v34, %v5871_v32  ;;  %v817_v44 = vpop.f32.mrb[1].mxu0  ;;  %v860_v48 = vpop.f32.mrb[1].mxu1  ;;  %v4365_v24 = vadd.f32 %v858_v35, %v5889_v22 }
 0x14b   :  { %v4334_v53 = vadd.f32 %v817_v44, %v5875_v33  ;;  %v819_v55 = vpop.f32.mrb[2].mxu0  ;;  %v862_v59 = vpop.f32.mrb[2].mxu1  ;;  %v4366_v23 = vadd.f32 %v860_v48, %v5884_v18 }
 0x14c   :  { %v4134_v2 = vmul.f32 -1.442695, %v4333_v43  ;;  %v4335_v7 = vadd.f32 %v819_v55, %v5871_v32  ;;  %v821_v13 = vpop.f32.mrb[3].mxu0  ;;  %v864_v14 = vpop.f32.mrb[3].mxu1  ;;  %v4367_v27 = vadd.f32 %v862_v59, %v5889_v22 }
 0x14d   :  { %v4136_v17 = vmul.f32 -1.442695, %v4334_v53  ;;  %v4336_v19 = vadd.f32 %v821_v13, %v5875_v33  ;;  %v4138_v25 = vmul.f32 -1.442695, %v4366_v23  ;;  %v4368_v26 = vadd.f32 %v864_v14, %v5884_v18 }
 0x14e   :  { %4793 = vpow2.f32 %v4134_v2  ;;  %v4135_v20 = vmul.f32 -1.442695, %v4335_v7 }
 0x14f   :  { %4795 = vpow2.f32 %v4136_v17  ;;  %v4137_v21 = vmul.f32 -1.442695, %v4336_v19  ;;  %v4139_v53 = vmul.f32 -1.442695, %v4368_v26 }
 0x150   :  { %4797 = vpow2.f32 %v4135_v20 }
 0x151   :  { %4799 = vpow2.f32 %v4137_v21 }
 0x152   :  { %4801 = vtanh.f32 %v4365_v24 }
 0x153   :  { %4803 = vpow2.f32 %v4138_v25 }
 0x154   :  { %4805 = vtanh.f32 %v4367_v27 }
 0x158   :  { %v4794_v34 = vpop.eup %4793 }
 0x159   :  { %v4796_v43 = vpop.eup %4795  ;;  %v881_v44 = vadd.f32 1.0, %v4794_v34 }
 0x15a   :  { %v893_v55 = vadd.f32 1.0, %v4796_v43  ;;  %v4798_v30 = vpop.eup %4797 }
 0x15b   :  { %4807 = vrcp.f32 %v881_v44  ;;  %v882_v48 = vadd.f32 1.0, %v4798_v30  ;;  %v4800_v2 = vpop.eup %4799 }
 0x15c   :  { %4809 = vrcp.f32 %v893_v55  ;;  %v894_v35 = vadd.f32 1.0, %v4800_v2  ;;  %v4802_v7 = vpop.eup %4801 }
 0x15d   :  { %4811 = vpow2.f32 %v4139_v53  ;;  %v4804_v13 = vpop.eup %4803 }
 0x15e   :  { %4813 = vrcp.f32 %v882_v48  ;;  %v4806_v59 = vpop.eup %4805  ;;  %v907_v24 = vadd.f32 1.0, %v4804_v13 }
 0x15f   :  { %4815 = vrcp.f32 %v894_v35 }
 0x160   :  { %4817 = vrcp.f32 %v907_v24 }
 0x165   :  { %v4808_v14 = vpop.eup %4807 }
 0x166   :  { %v4810_v17 = vpop.eup %4809  ;;  %v915_v19 = vmul.f32 %v4808_v14, %v4802_v7 }
 0x167   :  { %v4812_v20 = vpop.eup %4811  ;;  %v913_v21 = vmul.f32 0.0, %v4810_v17 }
 0x168   :  { %v4814_v23 = vpop.eup %4813  ;;  %v908_v34 = vadd.f32 1.0, %v4812_v20 }
 0x169   :  { %v5895_v25 = vadd.f32 %v915_v19, %v913_v21  ;;  %v916_v26 = vmul.f32 %v4814_v23, %v4806_v59  ;;  %v4816_v27 = vpop.eup %4815 }
 0x16a   :  { %v914_v43 = vmul.f32 0.0, %v4816_v27  ;;  %v4818_v53 = vpop.eup %4817 }
 0x16b   :  { %4819 = vtanh.f32 %v5895_v25 }
 0x16c   :  { %v5898_v44 = vadd.f32 %v916_v26, %v914_v43  ;;  %4821 = vrcp.f32 %v908_v34 }
 0x16e   :  { %4823 = vtanh.f32 %v5898_v44 }
 0x175   :  { %v4820_v55 = vpop.eup %4819 }
 0x176   :  { %v4822_v30 = vpop.eup %4821  ;;  %v921_v2 = vmul.f32 %v4820_v55, %v4818_v53 }
 0x178   :  { %v4824_v48 = vpop.eup %4823 }
 0x179   :  { %v922_v35 = vmul.f32 %v4824_v48, %v4822_v30 }
 0x17b   :  { %v5901_v7 = vpack.c.bf16 %v922_v35, %v921_v2 }
 0x17d   :  { %967 = vmatmul.mubr.bf16.vlgmr.msra.gmra.mrb[4].mxu0 %v5901_v7  ;;  %1010 = vmatmul.mubr.bf16.vlgmr.msra.gmra.mrb[4].mxu1 %v5901_v7 }
 0x17e   :  { %1088 = vmatpush1.bf16.msra.mxu0 %v5589_v39  ;;  %1131 = vmatpush1.bf16.msra.mxu1 %v5601_v41 }
 0x17f   :  { %1089 = vmatprep.subr.bf16.mxu0 %v5595_v40  ;;  %1132 = vmatprep.subr.bf16.mxu1 %v5606_v42 }
 0x180   :  { %1119 = vmatprep.mubr.bf16.mxu0 %v5394_v1  ;;  %1162 = vmatprep.mubr.bf16.mxu1 %v5394_v1 }
 0x182   :  { %1090 = vmatpush1.bf16.msra.mxu0 %v5619_v45  ;;  %1133 = vmatpush1.bf16.msra.mxu1 %v5632_v47 }
 0x183   :  { %1091 = vmatprep.subr.bf16.mxu0 %v5626_v46  ;;  %1134 = vmatprep.subr.bf16.mxu1 %v5650_v51 }
 0x186   :  { %1092 = vmatpush1.bf16.msra.mxu0 %v5640_v49  ;;  %1135 = vmatpush1.bf16.msra.mxu1 %v5656_v52 }
 0x187   :  { %1093 = vmatprep.subr.bf16.mxu0 %v5645_v50  ;;  %1136 = vmatprep.subr.bf16.mxu1 %v5664_v54 }
 0x18a   :  { %1094 = vmatpush1.bf16.msra.mxu0 %v5675_v56  ;;  %1137 = vmatpush1.bf16.msra.mxu1 %v5688_v58 }
 0x18b   :  { %1095 = vmatprep.subr.bf16.mxu0 %v5682_v57  ;;  %1138 = vmatprep.subr.bf16.mxu1 %v5699_v61 }
 0x18e   :  { %1096 = vmatpush1.bf16.msra.mxu0 %v5693_v60  ;;  %1139 = vmatpush1.bf16.msra.mxu1 %v5709_v63 }
 0x18f   :  { %1097 = vmatprep.subr.bf16.mxu0 %v5704_v62  ;;  %1140 = vmatprep.subr.bf16.mxu1 %v5715_v0 }
 0x192   :  { %1098 = vmatpush1.bf16.msra.mxu0 %v5728_v4  ;;  %1141 = vmatpush1.bf16.msra.mxu1 %v5740_v6 }
 0x193   :  { %1099 = vmatprep.subr.bf16.mxu0 %v5735_v5  ;;  %1142 = vmatprep.subr.bf16.mxu1 %v5755_v9 }
 0x196   :  { %1100 = vmatpush1.bf16.msra.mxu0 %v5749_v8  ;;  %1143 = vmatpush1.bf16.msra.mxu1 %v5765_v11 }
 0x197   :  { %1101 = vmatprep.subr.bf16.mxu0 %v5760_v10  ;;  %1144 = vmatprep.subr.bf16.mxu1 %v5771_v12 }
 0x19a   :  { %1102 = vmatpush1.bf16.msra.mxu0 %v5784_v15  ;;  %1145 = vmatpush1.bf16.msra.mxu1 %v5791_v16 }
 0x19b   :  { %1240 = vmatprep.subr.bf16.mxu0 %v5579_v36  ;;  %1283 = vmatprep.subr.bf16.mxu1 %v5584_v37 }
 0x250   :  { %v968_v13 = vpop.f32.mrb[4].mxu0  ;;  %v1011_v59 = vpop.f32.mrb[4].mxu1 }
 0x251   :  { %v4337_v14 = vadd.f32 %v968_v13, %v5871_v32  ;;  %v970_v17 = vpop.f32.mrb[5].mxu0  ;;  %v1013_v19 = vpop.f32.mrb[5].mxu1  ;;  %v4369_v2 = vadd.f32 %v1011_v59, %v5889_v22 }
 0x252   :  { %v4338_v20 = vadd.f32 %v970_v17, %v5875_v33  ;;  %v972_v21 = vpop.f32.mrb[6].mxu0  ;;  %v1015_v23 = vpop.f32.mrb[6].mxu1  ;;  %v4370_v48 = vadd.f32 %v1013_v19, %v5884_v18 }
 0x253   :  { %v4140_v24 = vmul.f32 -1.442695, %v4337_v14  ;;  %v4339_v26 = vadd.f32 %v972_v21, %v5871_v32  ;;  %v974_v27 = vpop.f32.mrb[7].mxu0  ;;  %v1017_v34 = vpop.f32.mrb[7].mxu1  ;;  %v4371_v14 = vadd.f32 %v1015_v23, %v5889_v22 }
 0x254   :  { %v4142_v43 = vmul.f32 -1.442695, %v4338_v20  ;;  %v4340_v53 = vadd.f32 %v974_v27, %v5875_v33  ;;  %v4144_v35 = vmul.f32 -1.442695, %v4370_v48  ;;  %v4372_v13 = vadd.f32 %v1017_v34, %v5884_v18 }
 0x255   :  { %4825 = vpow2.f32 %v4140_v24  ;;  %v4141_v55 = vmul.f32 -1.442695, %v4339_v26 }
 0x256   :  { %4827 = vpow2.f32 %v4142_v43  ;;  %v4143_v30 = vmul.f32 -1.442695, %v4340_v53  ;;  %v4145_v24 = vmul.f32 -1.442695, %v4372_v13 }
 0x257   :  { %4829 = vpow2.f32 %v4141_v55 }
 0x258   :  { %4831 = vpow2.f32 %v4143_v30 }
 0x259   :  { %4833 = vtanh.f32 %v4369_v2 }
 0x25a   :  { %4835 = vpow2.f32 %v4144_v35 }
 0x25b   :  { %4837 = vtanh.f32 %v4371_v14 }
 0x25f   :  { %v4826_v17 = vpop.eup %4825 }
 0x260   :  { %v4828_v20 = vpop.eup %4827  ;;  %v1034_v21 = vadd.f32 1.0, %v4826_v17 }
 0x261   :  { %v1046_v26 = vadd.f32 1.0, %v4828_v20  ;;  %v4830_v27 = vpop.eup %4829 }
 0x262   :  { %4839 = vrcp.f32 %v1034_v21  ;;  %v1035_v19 = vadd.f32 1.0, %v4830_v27  ;;  %v4832_v43 = vpop.eup %4831 }
 0x263   :  { %4841 = vrcp.f32 %v1046_v26  ;;  %v1047_v59 = vadd.f32 1.0, %v4832_v43  ;;  %v4834_v34 = vpop.eup %4833 }
 0x264   :  { %4843 = vpow2.f32 %v4145_v24  ;;  %v4836_v53 = vpop.eup %4835 }
 0x265   :  { %4845 = vrcp.f32 %v1035_v19  ;;  %v4838_v23 = vpop.eup %4837  ;;  %v1060_v14 = vadd.f32 1.0, %v4836_v53 }
 0x266   :  { %4847 = vrcp.f32 %v1047_v59 }
 0x267   :  { %4849 = vrcp.f32 %v1060_v14 }
 0x26c   :  { %v4840_v55 = vpop.eup %4839 }
 0x26d   :  { %v4842_v30 = vpop.eup %4841  ;;  %v1068_v48 = vmul.f32 %v4840_v55, %v4834_v34 }
 0x26e   :  { %v4844_v2 = vpop.eup %4843  ;;  %v1066_v35 = vmul.f32 %v4842_v30, %v5895_v25 }
 0x26f   :  { %v4846_v13 = vpop.eup %4845  ;;  %v1061_v26 = vadd.f32 1.0, %v4844_v2 }
 0x270   :  { %v5948_v17 = vadd.f32 %v1068_v48, %v1066_v35  ;;  %v1069_v20 = vmul.f32 %v4846_v13, %v4838_v23  ;;  %v4848_v21 = vpop.eup %4847 }
 0x271   :  { %v1067_v24 = vmul.f32 %v4848_v21, %v5898_v44  ;;  %v4850_v19 = vpop.eup %4849 }
 0x272   :  { %4851 = vtanh.f32 %v5948_v17 }
 0x273   :  { %v5952_v27 = vadd.f32 %v1069_v20, %v1067_v24  ;;  %4853 = vrcp.f32 %v1061_v26 }
 0x275   :  { %4855 = vtanh.f32 %v5952_v27 }
 0x27c   :  { %v4852_v43 = vpop.eup %4851 }
 0x27d   :  { %v4854_v25 = vpop.eup %4853  ;;  %v1074_v34 = vmul.f32 %v4852_v43, %v4850_v19 }
 0x27f   :  { %v4856_v59 = vpop.eup %4855 }
 0x280   :  { %v1075_v53 = vmul.f32 %v4856_v59, %v4854_v25 }
 0x282   :  { %v5955_v55 = vpack.c.bf16 %v1075_v53, %v1074_v34 }
 0x284   :  { %1120 = vmatmul.mubr.bf16.vlgmr.msra.gmra.mrb[8].mxu0 %v5955_v55  ;;  %1163 = vmatmul.mubr.bf16.vlgmr.msra.gmra.mrb[8].mxu1 %v5955_v55 }
 0x285   :  { %1241 = vmatpush1.bf16.msra.mxu0 %v5589_v39  ;;  %1284 = vmatpush1.bf16.msra.mxu1 %v5601_v41 }
 0x286   :  { %1242 = vmatprep.subr.bf16.mxu0 %v5595_v40  ;;  %1285 = vmatprep.subr.bf16.mxu1 %v5606_v42 }
 0x287   :  { %1272 = vmatprep.mubr.bf16.mxu0 %v5394_v1  ;;  %1315 = vmatprep.mubr.bf16.mxu1 %v5394_v1 }
 0x289   :  { %1243 = vmatpush1.bf16.msra.mxu0 %v5619_v45  ;;  %1286 = vmatpush1.bf16.msra.mxu1 %v5632_v47 }
 0x28a   :  { %1244 = vmatprep.subr.bf16.mxu0 %v5626_v46  ;;  %1287 = vmatprep.subr.bf16.mxu1 %v5650_v51 }
 0x28d   :  { %1245 = vmatpush1.bf16.msra.mxu0 %v5640_v49  ;;  %1288 = vmatpush1.bf16.msra.mxu1 %v5656_v52 }
 0x28e   :  { %1246 = vmatprep.subr.bf16.mxu0 %v5645_v50  ;;  %1289 = vmatprep.subr.bf16.mxu1 %v5664_v54 }
 0x291   :  { %1247 = vmatpush1.bf16.msra.mxu0 %v5675_v56  ;;  %1290 = vmatpush1.bf16.msra.mxu1 %v5688_v58 }
 0x292   :  { %1248 = vmatprep.subr.bf16.mxu0 %v5682_v57  ;;  %1291 = vmatprep.subr.bf16.mxu1 %v5699_v61 }
 0x295   :  { %1249 = vmatpush1.bf16.msra.mxu0 %v5693_v60  ;;  %1292 = vmatpush1.bf16.msra.mxu1 %v5709_v63 }
 0x296   :  { %1250 = vmatprep.subr.bf16.mxu0 %v5704_v62  ;;  %1293 = vmatprep.subr.bf16.mxu1 %v5715_v0 }
 0x299   :  { %1251 = vmatpush1.bf16.msra.mxu0 %v5728_v4  ;;  %1294 = vmatpush1.bf16.msra.mxu1 %v5740_v6 }
 0x29a   :  { %1252 = vmatprep.subr.bf16.mxu0 %v5735_v5  ;;  %1295 = vmatprep.subr.bf16.mxu1 %v5755_v9 }
 0x29d   :  { %1253 = vmatpush1.bf16.msra.mxu0 %v5749_v8  ;;  %1296 = vmatpush1.bf16.msra.mxu1 %v5765_v11 }
 0x29e   :  { %1254 = vmatprep.subr.bf16.mxu0 %v5760_v10  ;;  %1297 = vmatprep.subr.bf16.mxu1 %v5771_v12 }
 0x2a1   :  { %1255 = vmatpush1.bf16.msra.mxu0 %v5784_v15  ;;  %1298 = vmatpush1.bf16.msra.mxu1 %v5791_v16 }
 0x2a2   :  { %1393 = vmatprep.subr.bf16.mxu0 %v5579_v36  ;;  %1436 = vmatprep.subr.bf16.mxu1 %v5584_v37 }
 0x357   :  { %v1121_v39 = vpop.f32.mrb[8].mxu0  ;;  %v1164_v40 = vpop.f32.mrb[8].mxu1 }
 0x358   :  { %v4341_v41 = vadd.f32 %v1121_v39, %v5871_v32  ;;  %v1123_v42 = vpop.f32.mrb[9].mxu0  ;;  %v1166_v45 = vpop.f32.mrb[9].mxu1  ;;  %v4373_v48 = vadd.f32 %v1164_v40, %v5889_v22 }
 0x359   :  { %v4342_v46 = vadd.f32 %v1123_v42, %v5875_v33  ;;  %v1125_v47 = vpop.f32.mrb[10].mxu0  ;;  %v1168_v49 = vpop.f32.mrb[10].mxu1  ;;  %v4374_v30 = vadd.f32 %v1166_v45, %v5884_v18 }
 0x35a   :  { %v4146_v50 = vmul.f32 -1.442695, %v4341_v41  ;;  %v4343_v51 = vadd.f32 %v1125_v47, %v5871_v32  ;;  %v1127_v52 = vpop.f32.mrb[11].mxu0  ;;  %v1170_v54 = vpop.f32.mrb[11].mxu1  ;;  %v4375_v13 = vadd.f32 %v1168_v49, %v5889_v22 }
 0x35b   :  { %v4148_v44 = vmul.f32 -1.442695, %v4342_v46  ;;  %v4344_v36 = vadd.f32 %v1127_v52, %v5875_v33  ;;  %v4150_v2 = vmul.f32 -1.442695, %v4374_v30  ;;  %v4376_v35 = vadd.f32 %v1170_v54, %v5884_v18 }
 0x35c   :  { %4857 = vpow2.f32 %v4146_v50  ;;  %v4147_v37 = vmul.f32 -1.442695, %v4343_v51 }
 0x35d   :  { %4859 = vpow2.f32 %v4148_v44  ;;  %v4149_v23 = vmul.f32 -1.442695, %v4344_v36  ;;  %v4151_v26 = vmul.f32 -1.442695, %v4376_v35 }
 0x35e   :  { %4861 = vpow2.f32 %v4147_v37 }
 0x35f   :  { %4863 = vpow2.f32 %v4149_v23 }
 0x360   :  { %4865 = vtanh.f32 %v4373_v48 }
 0x361   :  { %4867 = vpow2.f32 %v4150_v2 }
 0x362   :  { %4869 = vtanh.f32 %v4375_v13  ;;  %v6022_v13 = vld [vmem:[%s7294_s2 + $0x8] ss:$16 sps:$4 sm:$0xff]  }
 0x366   :  { %v4858_v14 = vpop.eup %4857 }
 0x367   :  { %v4860_v20 = vpop.eup %4859  ;;  %v1187_v21 = vadd.f32 1.0, %v4858_v14  ;;  %v6028_v14 = vld [vmem:[%s7294_s2 + $0x24] ss:$16 sps:$4 sm:$0xff]  }
 0x368   :  { %v1199_v24 = vadd.f32 1.0, %v4860_v20  ;;  %v4862_v19 = vpop.eup %4861  ;;  %v6034_v20 = vld [vmem:[%s7294_s2 + $0x2c] ss:$16 sps:$4 sm:$0xff]  }
 0x369   :  { %4871 = vrcp.f32 %v1187_v21  ;;  %v1188_v43 = vadd.f32 1.0, %v4862_v19  ;;  %v4864_v25 = vpop.eup %4863  ;;  %v6042_v21 = vld [vmem:[%s7294_s2 + $0x20] ss:$16 sps:$4 sm:$0xff]   ;;  %v6060_v19 = vld [vmem:[%s7294_s2 + $0x4c] ss:$16 sps:$4 sm:$0xff]  }
 0x36a   :  { %4873 = vrcp.f32 %v1199_v24  ;;  %v1200_v59 = vadd.f32 1.0, %v4864_v25  ;;  %v4866_v34 = vpop.eup %4865  ;;  %v6054_v24 = vld [vmem:[%s7294_s2 + $0x44] ss:$16 sps:$4 sm:$0xff]   ;;  %v6072_v25 = vld [vmem:[%s7294_s2 + $0x48] ss:$16 sps:$4 sm:$0xff]  }
 0x36b   :  { %4875 = vpow2.f32 %v4151_v26  ;;  %v4868_v53 = vpop.eup %4867  ;;  %v6048_v26 = vld [vmem:[%s7294_s2 + $0x28] ss:$16 sps:$4 sm:$0xff]  }
 0x36c   :  { %4877 = vrcp.f32 %v1188_v43  ;;  %v4870_v39 = vpop.eup %4869  ;;  %v1213_v49 = vadd.f32 1.0, %v4868_v53  ;;  %v6066_v43 = vld [vmem:[%s7294_s2 + $0x40] ss:$16 sps:$4 sm:$0xff]  }
 0x36d   :  { %4879 = vrcp.f32 %v1200_v59  ;;  %v6078_v59 = vld [vmem:[%s7294_s2 + $0x64] ss:$16 sps:$4 sm:$0xff]  }
 0x36e   :  { %4881 = vrcp.f32 %v1213_v49 }
 0x373   :  { %v4872_v40 = vpop.eup %4871 }
 0x374   :  { %v4874_v41 = vpop.eup %4873  ;;  %v1221_v42 = vmul.f32 %v4872_v40, %v4866_v34  ;;  %v6084_v34 = vld [vmem:[%s7294_s2 + $0x6c] ss:$16 sps:$4 sm:$0xff]  }
 0x375   :  { %v4876_v45 = vpop.eup %4875  ;;  %v1219_v46 = vmul.f32 %v4874_v41, %v5948_v17 }
 0x376   :  { %v4878_v47 = vpop.eup %4877  ;;  %v1214_v54 = vadd.f32 1.0, %v4876_v45 }
 0x377   :  { %v6002_v50 = vadd.f32 %v1221_v42, %v1219_v46  ;;  %v1222_v51 = vmul.f32 %v4878_v47, %v4870_v39  ;;  %v4880_v52 = vpop.eup %4879 }
 0x378   :  { %v1220_v44 = vmul.f32 %v4880_v52, %v5952_v27  ;;  %v4882_v37 = vpop.eup %4881  ;;  %v6016_v27 = vld [vmem:[%s7294_s2] ss:$16 sps:$4 sm:$0xff]  }
 0x379   :  { %4883 = vtanh.f32 %v6002_v50 }
 0x37a   :  { %v6006_v36 = vadd.f32 %v1222_v51, %v1220_v44  ;;  %4885 = vrcp.f32 %v1214_v54 }
 0x37c   :  { %4887 = vtanh.f32 %v6006_v36 }
 0x383   :  { %v4884_v23 = vpop.eup %4883 }
 0x384   :  { %v4886_v17 = vpop.eup %4885  ;;  %v1227_v48 = vmul.f32 %v4884_v23, %v4882_v37 }
 0x386   :  { %v4888_v30 = vpop.eup %4887 }
 0x387   :  { %v1228_v2 = vmul.f32 %v4888_v30, %v4886_v17 }
 0x389   :  { %v6009_v35 = vpack.c.bf16 %v1228_v2, %v1227_v48 }
 0x38b   :  { %1273 = vmatmul.mubr.bf16.vlgmr.msra.gmra.mrb[12].mxu0 %v6009_v35  ;;  %1316 = vmatmul.mubr.bf16.vlgmr.msra.gmra.mrb[12].mxu1 %v6009_v35 }
 0x38c   :  { %1394 = vmatpush1.bf16.msra.mxu0 %v6016_v27  ;;  %1437 = vmatpush1.bf16.msra.mxu1 %v6022_v13 }
 0x38d   :  { %1395 = vmatprep.subr.bf16.mxu0 %v6028_v14  ;;  %1438 = vmatprep.subr.bf16.mxu1 %v6034_v20 }
 0x38e   :  { %1425 = vmatprep.mubr.bf16.mxu0 %v5394_v1  ;;  %1468 = vmatprep.mubr.bf16.mxu1 %v5394_v1 }
 0x390   :  { %1396 = vmatpush1.bf16.msra.mxu0 %v6042_v21  ;;  %1439 = vmatpush1.bf16.msra.mxu1 %v6048_v26 }
 0x391   :  { %1397 = vmatprep.subr.bf16.mxu0 %v6054_v24  ;;  %1440 = vmatprep.subr.bf16.mxu1 %v6060_v19 }
 0x394   :  { %1398 = vmatpush1.bf16.msra.mxu0 %v6066_v43  ;;  %1441 = vmatpush1.bf16.msra.mxu1 %v6072_v25 }
 0x395   :  { %1399 = vmatprep.subr.bf16.mxu0 %v6078_v59  ;;  %1442 = vmatprep.subr.bf16.mxu1 %v6084_v34 }
 0x398   :  { %1400 = vmatpush1.bf16.msra.mxu0 %v5675_v56  ;;  %1443 = vmatpush1.bf16.msra.mxu1 %v5688_v58  ;;  %v6108_v56 = vld [vmem:[%s7294_s2 + $0x4] ss:$16 sps:$4 sm:$0xff]  }
 0x399   :  { %1401 = vmatprep.subr.bf16.mxu0 %v5682_v57  ;;  %1444 = vmatprep.subr.bf16.mxu1 %v5699_v61  ;;  %v6114_v57 = vld [vmem:[%s7294_s2 + $0xc] ss:$16 sps:$4 sm:$0xff]  }
 0x39c   :  { %1402 = vmatpush1.bf16.msra.mxu0 %v5693_v60  ;;  %1445 = vmatpush1.bf16.msra.mxu1 %v5709_v63 }
 0x39d   :  { %1403 = vmatprep.subr.bf16.mxu0 %v5704_v62  ;;  %1446 = vmatprep.subr.bf16.mxu1 %v5715_v0 }
 0x3a0   :  { %1404 = vmatpush1.bf16.msra.mxu0 %v5728_v4  ;;  %1447 = vmatpush1.bf16.msra.mxu1 %v5740_v6 }
 0x3a1   :  { %1405 = vmatprep.subr.bf16.mxu0 %v5735_v5  ;;  %1448 = vmatprep.subr.bf16.mxu1 %v5755_v9 }
 0x3a4   :  { %1406 = vmatpush1.bf16.msra.mxu0 %v5749_v8  ;;  %1449 = vmatpush1.bf16.msra.mxu1 %v5765_v11 }
 0x3a5   :  { %1407 = vmatprep.subr.bf16.mxu0 %v5760_v10  ;;  %1450 = vmatprep.subr.bf16.mxu1 %v5771_v12 }
 0x3a8   :  { %1408 = vmatpush1.bf16.msra.mxu0 %v5784_v15  ;;  %1451 = vmatpush1.bf16.msra.mxu1 %v5791_v16 }
 0x3a9   :  { %1546 = vmatprep.subr.bf16.mxu0 %v6108_v56  ;;  %1589 = vmatprep.subr.bf16.mxu1 %v6114_v57 }
 0x45e   :  { %v1274_v58 = vpop.f32.mrb[12].mxu0  ;;  %v1317_v60 = vpop.f32.mrb[12].mxu1 }
 0x45f   :  { %v4345_v61 = vadd.f32 %v1274_v58, %v5871_v32  ;;  %v1276_v62 = vpop.f32.mrb[13].mxu0  ;;  %v1319_v63 = vpop.f32.mrb[13].mxu1  ;;  %v4377_v39 = vadd.f32 %v1317_v60, %v5889_v22 }
 0x460   :  { %v4346_v0 = vadd.f32 %v1276_v62, %v5875_v33  ;;  %v1278_v4 = vpop.f32.mrb[14].mxu0  ;;  %v1321_v5 = vpop.f32.mrb[14].mxu1  ;;  %v4378_v53 = vadd.f32 %v1319_v63, %v5884_v18 }
 0x461   :  { %v4152_v6 = vmul.f32 -1.442695, %v4345_v61  ;;  %v4347_v8 = vadd.f32 %v1278_v4, %v5871_v32  ;;  %v1280_v9 = vpop.f32.mrb[15].mxu0  ;;  %v1323_v10 = vpop.f32.mrb[15].mxu1  ;;  %v4379_v42 = vadd.f32 %v1321_v5, %v5889_v22 }
 0x462   :  { %v4154_v11 = vmul.f32 -1.442695, %v4346_v0  ;;  %v4348_v12 = vadd.f32 %v1280_v9, %v5875_v33  ;;  %v4156_v40 = vmul.f32 -1.442695, %v4378_v53  ;;  %v4380_v41 = vadd.f32 %v1323_v10, %v5884_v18 }
 0x463   :  { %4889 = vpow2.f32 %v4152_v6  ;;  %v4153_v15 = vmul.f32 -1.442695, %v4347_v8 }
 0x464   :  { %4891 = vpow2.f32 %v4154_v11  ;;  %v4155_v16 = vmul.f32 -1.442695, %v4348_v12  ;;  %v4157_v49 = vmul.f32 -1.442695, %v4380_v41  ;;  %v6172_v41 = vld [vmem:[%s7294_s2 + $0x8c] ss:$16 sps:$4 sm:$0xff]  }
 0x465   :  { %4893 = vpow2.f32 %v4153_v15 }
 0x466   :  { %4895 = vpow2.f32 %v4155_v16 }
 0x467   :  { %4897 = vtanh.f32 %v4377_v39  ;;  %v6160_v39 = vld [vmem:[%s7294_s2 + $0x68] ss:$16 sps:$4 sm:$0xff]  }
 0x468   :  { %4899 = vpow2.f32 %v4156_v40  ;;  %v6166_v40 = vld [vmem:[%s7294_s2 + $0x84] ss:$16 sps:$4 sm:$0xff]  }
 0x469   :  { %4901 = vtanh.f32 %v4379_v42  ;;  %v6178_v42 = vld [vmem:[%s7294_s2 + $0x80] ss:$16 sps:$4 sm:$0xff]  }
 0x46d   :  { %v4890_v45 = vpop.eup %4889 }
 0x46e   :  { %v4892_v46 = vpop.eup %4891  ;;  %v1340_v47 = vadd.f32 1.0, %v4890_v45  ;;  %v6184_v45 = vld [vmem:[%s7294_s2 + $0x88] ss:$16 sps:$4 sm:$0xff]  }
 0x46f   :  { %v1352_v51 = vadd.f32 1.0, %v4892_v46  ;;  %v4894_v52 = vpop.eup %4893  ;;  %v6190_v46 = vld [vmem:[%s7294_s2 + $0xa4] ss:$16 sps:$4 sm:$0xff]  }
 0x470   :  { %4903 = vrcp.f32 %v1340_v47  ;;  %v1341_v54 = vadd.f32 1.0, %v4894_v52  ;;  %v4896_v44 = vpop.eup %4895  ;;  %v6196_v47 = vld [vmem:[%s7294_s2 + $0xac] ss:$16 sps:$4 sm:$0xff]   ;;  %v6214_v52 = vld [vmem:[%s7294_s2 + $0xc4] ss:$16 sps:$4 sm:$0xff]  }
 0x471   :  { %4905 = vrcp.f32 %v1352_v51  ;;  %v1353_v37 = vadd.f32 1.0, %v4896_v44  ;;  %v4898_v23 = vpop.eup %4897  ;;  %v6208_v51 = vld [vmem:[%s7294_s2 + $0xa8] ss:$16 sps:$4 sm:$0xff]   ;;  %v6226_v44 = vld [vmem:[%s7294_s2 + $0xc0] ss:$16 sps:$4 sm:$0xff]  }
 0x472   :  { %4907 = vpow2.f32 %v4157_v49  ;;  %v4900_v17 = vpop.eup %4899  ;;  %v6202_v49 = vld [vmem:[%s7294_s2 + $0xa0] ss:$16 sps:$4 sm:$0xff]  }
 0x473   :  { %4909 = vrcp.f32 %v1341_v54  ;;  %v4902_v30 = vpop.eup %4901  ;;  %v1366_v63 = vadd.f32 1.0, %v4900_v17  ;;  %v6220_v54 = vld [vmem:[%s7294_s2 + $0xcc] ss:$16 sps:$4 sm:$0xff]  }
 0x474   :  { %4911 = vrcp.f32 %v1353_v37  ;;  %v6232_v37 = vld [vmem:[%s7294_s2 + $0xc8] ss:$16 sps:$4 sm:$0xff]   ;;  %v6244_v17 = vld [vmem:[%s7294_s2 + $0xec] ss:$16 sps:$4 sm:$0xff]  }
 0x475   :  { %4913 = vrcp.f32 %v1366_v63 }
 0x47a   :  { %v4904_v48 = vpop.eup %4903 }
 0x47b   :  { %v4906_v2 = vpop.eup %4905  ;;  %v1374_v58 = vmul.f32 %v4904_v48, %v4898_v23  ;;  %v6238_v23 = vld [vmem:[%s7294_s2 + $0xe4] ss:$16 sps:$4 sm:$0xff]   ;;  %v6256_v48 = vld [vmem:[%s7294_s2 + $0xe8] ss:$16 sps:$4 sm:$0xff]  }
 0x47c   :  { %v4908_v60 = vpop.eup %4907  ;;  %v1372_v61 = vmul.f32 %v4906_v2, %v6002_v50 }
 0x47d   :  { %v4910_v62 = vpop.eup %4909  ;;  %v1367_v6 = vadd.f32 1.0, %v4908_v60 }
 0x47e   :  { %v6126_v0 = vadd.f32 %v1374_v58, %v1372_v61  ;;  %v1375_v4 = vmul.f32 %v4910_v62, %v4902_v30  ;;  %v4912_v5 = vpop.eup %4911  ;;  %v6250_v30 = vld [vmem:[%s7294_s2 + $0xe0] ss:$16 sps:$4 sm:$0xff]  }
 0x47f   :  { %v1373_v8 = vmul.f32 %v4912_v5, %v6006_v36  ;;  %v4914_v10 = vpop.eup %4913  ;;  %v6154_v36 = vld [vmem:[%s7294_s2 + $0x60] ss:$16 sps:$4 sm:$0xff]  }
 0x480   :  { %4915 = vtanh.f32 %v6126_v0 }
 0x481   :  { %v6130_v9 = vadd.f32 %v1375_v4, %v1373_v8  ;;  %4917 = vrcp.f32 %v1367_v6 }
 0x483   :  { %4919 = vtanh.f32 %v6130_v9 }
 0x48a   :  { %v4916_v11 = vpop.eup %4915 }
 0x48b   :  { %v4918_v50 = vpop.eup %4917  ;;  %v1380_v15 = vmul.f32 %v4916_v11, %v4914_v10 }
 0x48d   :  { %v4920_v12 = vpop.eup %4919 }
 0x48e   :  { %v1381_v16 = vmul.f32 %v4920_v12, %v4918_v50 }
 0x490   :  { %v6133_v53 = vpack.c.bf16 %v1381_v16, %v1380_v15 }
 0x492   :  { %1426 = vmatmul.mubr.bf16.vlgmr.msra.gmra.mrb[16].mxu0 %v6133_v53  ;;  %1469 = vmatmul.mubr.bf16.vlgmr.msra.gmra.mrb[16].mxu1 %v6133_v53 }
 0x493   :  { %1547 = vmatpush1.bf16.msra.mxu0 %v6016_v27  ;;  %1590 = vmatpush1.bf16.msra.mxu1 %v6022_v13 }
 0x494   :  { %1548 = vmatprep.subr.bf16.mxu0 %v6028_v14  ;;  %1591 = vmatprep.subr.bf16.mxu1 %v6034_v20 }
 0x495   :  { %1578 = vmatprep.mubr.bf16.mxu0 %v5394_v1  ;;  %1621 = vmatprep.mubr.bf16.mxu1 %v5394_v1 }
 0x497   :  { %1549 = vmatpush1.bf16.msra.mxu0 %v6042_v21  ;;  %1592 = vmatpush1.bf16.msra.mxu1 %v6048_v26 }
 0x498   :  { %1550 = vmatprep.subr.bf16.mxu0 %v6054_v24  ;;  %1593 = vmatprep.subr.bf16.mxu1 %v6060_v19 }
 0x49b   :  { %1551 = vmatpush1.bf16.msra.mxu0 %v6066_v43  ;;  %1594 = vmatpush1.bf16.msra.mxu1 %v6072_v25 }
 0x49c   :  { %1552 = vmatprep.subr.bf16.mxu0 %v6078_v59  ;;  %1595 = vmatprep.subr.bf16.mxu1 %v6084_v34 }
 0x49f   :  { %1553 = vmatpush1.bf16.msra.mxu0 %v6154_v36  ;;  %1596 = vmatpush1.bf16.msra.mxu1 %v6160_v39 }
 0x4a0   :  { %1554 = vmatprep.subr.bf16.mxu0 %v6166_v40  ;;  %1597 = vmatprep.subr.bf16.mxu1 %v6172_v41 }
 0x4a3   :  { %1555 = vmatpush1.bf16.msra.mxu0 %v6178_v42  ;;  %1598 = vmatpush1.bf16.msra.mxu1 %v6184_v45 }
 0x4a4   :  { %1556 = vmatprep.subr.bf16.mxu0 %v6190_v46  ;;  %1599 = vmatprep.subr.bf16.mxu1 %v6196_v47 }
 0x4a7   :  { %1557 = vmatpush1.bf16.msra.mxu0 %v6202_v49  ;;  %1600 = vmatpush1.bf16.msra.mxu1 %v6208_v51 }
 0x4a8   :  { %1558 = vmatprep.subr.bf16.mxu0 %v6214_v52  ;;  %1601 = vmatprep.subr.bf16.mxu1 %v6220_v54 }
 0x4ab   :  { %1559 = vmatpush1.bf16.msra.mxu0 %v6226_v44  ;;  %1602 = vmatpush1.bf16.msra.mxu1 %v6232_v37 }
 0x4ac   :  { %1560 = vmatprep.subr.bf16.mxu0 %v6238_v23  ;;  %1603 = vmatprep.subr.bf16.mxu1 %v6244_v17 }
 0x4af   :  { %1561 = vmatpush1.bf16.msra.mxu0 %v6250_v30  ;;  %1604 = vmatpush1.bf16.msra.mxu1 %v6256_v48 }
 0x4b0   :  { %1699 = vmatprep.subr.bf16.mxu0 %v6108_v56  ;;  %1742 = vmatprep.subr.bf16.mxu1 %v6114_v57 }
 0x565   :  { %v1427_v2 = vpop.f32.mrb[16].mxu0  ;;  %v1470_v58 = vpop.f32.mrb[16].mxu1 }
 0x566   :  { %v4349_v60 = vadd.f32 %v1427_v2, %v5871_v32  ;;  %v1429_v61 = vpop.f32.mrb[17].mxu0  ;;  %v1472_v62 = vpop.f32.mrb[17].mxu1 }
 0x567   :  { %v4350_v63 = vadd.f32 %v1429_v61, %v5875_v33  ;;  %v1431_v4 = vpop.f32.mrb[18].mxu0  ;;  %v1474_v5 = vpop.f32.mrb[18].mxu1  ;;  %v4382_v2 = vadd.f32 %v1472_v62, %v5884_v18  ;;  %v4381_v61 = vadd.f32 %v1470_v58, %v5889_v22 }
 0x568   :  { %v4158_v6 = vmul.f32 -1.442695, %v4349_v60  ;;  %v4351_v8 = vadd.f32 %v1431_v4, %v5871_v32  ;;  %v1433_v10 = vpop.f32.mrb[19].mxu0  ;;  %v1476_v11 = vpop.f32.mrb[19].mxu1  ;;  %v4383_v4 = vadd.f32 %v1474_v5, %v5889_v22 }
 0x569   :  { %v4160_v50 = vmul.f32 -1.442695, %v4350_v63  ;;  %v4352_v12 = vadd.f32 %v1433_v10, %v5875_v33  ;;  %v4162_v3 = vmul.f32 -1.442695, %v4382_v2  ;;  %v4384_v60 = vadd.f32 %v1476_v11, %v5884_v18 }
 0x56a   :  { %4921 = vpow2.f32 %v4158_v6  ;;  %v4159_v15 = vmul.f32 -1.442695, %v4351_v8 }
 0x56b   :  { %4923 = vpow2.f32 %v4160_v50  ;;  %v4161_v16 = vmul.f32 -1.442695, %v4352_v12  ;;  %v4163_v6 = vmul.f32 -1.442695, %v4384_v60 }
 0x56c   :  { %4925 = vpow2.f32 %v4159_v15 }
 0x56d   :  { %4927 = vpow2.f32 %v4161_v16 }
 0x56e   :  { %4929 = vtanh.f32 %v4381_v61 }
 0x56f   :  { %4931 = vpow2.f32 %v4162_v3 }
 0x570   :  { %4933 = vtanh.f32 %v4383_v4 }
 0x574   :  { %v4922_v38 = vpop.eup %4921 }
 0x575   :  { %v4924_v63 = vpop.eup %4923  ;;  %v1493_v31 = vadd.f32 1.0, %v4922_v38 }
 0x576   :  { %v1505_v8 = vadd.f32 1.0, %v4924_v63  ;;  %v4926_v10 = vpop.eup %4925 }
 0x577   :  { %4935 = vrcp.f32 %v1493_v31  ;;  %v1494_v62 = vadd.f32 1.0, %v4926_v10  ;;  %v4928_v50 = vpop.eup %4927 }
 0x578   :  { %4937 = vrcp.f32 %v1505_v8  ;;  %v1506_v58 = vadd.f32 1.0, %v4928_v50  ;;  %v4930_v11 = vpop.eup %4929 }
 0x579   :  { %4939 = vpow2.f32 %v4163_v6  ;;  %v4932_v12 = vpop.eup %4931 }
 0x57a   :  { %4941 = vrcp.f32 %v1494_v62  ;;  %v4934_v5 = vpop.eup %4933  ;;  %v1519_v60 = vadd.f32 1.0, %v4932_v12 }
 0x57b   :  { %4943 = vrcp.f32 %v1506_v58 }
 0x57c   :  { %4945 = vrcp.f32 %v1519_v60 }
 0x581   :  { %v4936_v15 = vpop.eup %4935 }
 0x582   :  { %v4938_v16 = vpop.eup %4937  ;;  %v1527_v2 = vmul.f32 %v4936_v15, %v4930_v11 }
 0x583   :  { %v4940_v38 = vpop.eup %4939  ;;  %v1525_v3 = vmul.f32 %v4938_v16, %v6126_v0 }
 0x584   :  { %v4942_v61 = vpop.eup %4941  ;;  %v1520_v8 = vadd.f32 1.0, %v4940_v38 }
 0x585   :  { %v6270_v4 = vadd.f32 %v1527_v2, %v1525_v3  ;;  %v1528_v31 = vmul.f32 %v4942_v61, %v4934_v5  ;;  %v4944_v63 = vpop.eup %4943 }
 0x586   :  { %v1526_v6 = vmul.f32 %v4944_v63, %v6130_v9  ;;  %v4946_v62 = vpop.eup %4945 }
 0x587   :  { %4947 = vtanh.f32 %v6270_v4 }
 0x588   :  { %v6274_v10 = vadd.f32 %v1528_v31, %v1526_v6  ;;  %4949 = vrcp.f32 %v1520_v8 }
 0x58a   :  { %4951 = vtanh.f32 %v6274_v10 }
 0x591   :  { %v4948_v50 = vpop.eup %4947 }
 0x592   :  { %v4950_v0 = vpop.eup %4949  ;;  %v1533_v11 = vmul.f32 %v4948_v50, %v4946_v62 }
 0x594   :  { %v4952_v58 = vpop.eup %4951 }
 0x595   :  { %v1534_v12 = vmul.f32 %v4952_v58, %v4950_v0 }
 0x597   :  { %v6277_v15 = vpack.c.bf16 %v1534_v12, %v1533_v11 }
 0x599   :  { %1579 = vmatmul.mubr.bf16.vlgmr.msra.gmra.mrb[20].mxu0 %v6277_v15  ;;  %1622 = vmatmul.mubr.bf16.vlgmr.msra.gmra.mrb[20].mxu1 %v6277_v15 }
 0x59a   :  { %1700 = vmatpush1.bf16.msra.mxu0 %v6016_v27  ;;  %1743 = vmatpush1.bf16.msra.mxu1 %v6022_v13 }
 0x59b   :  { %1701 = vmatprep.subr.bf16.mxu0 %v6028_v14  ;;  %1744 = vmatprep.subr.bf16.mxu1 %v6034_v20 }
 0x59c   :  { %1731 = vmatprep.mubr.bf16.mxu0 %v5394_v1  ;;  %1774 = vmatprep.mubr.bf16.mxu1 %v5394_v1 }
 0x59e   :  { %1702 = vmatpush1.bf16.msra.mxu0 %v6042_v21  ;;  %1745 = vmatpush1.bf16.msra.mxu1 %v6048_v26 }
 0x59f   :  { %1703 = vmatprep.subr.bf16.mxu0 %v6054_v24  ;;  %1746 = vmatprep.subr.bf16.mxu1 %v6060_v19 }
 0x5a2   :  { %1704 = vmatpush1.bf16.msra.mxu0 %v6066_v43  ;;  %1747 = vmatpush1.bf16.msra.mxu1 %v6072_v25 }
 0x5a3   :  { %1705 = vmatprep.subr.bf16.mxu0 %v6078_v59  ;;  %1748 = vmatprep.subr.bf16.mxu1 %v6084_v34 }
 0x5a6   :  { %1706 = vmatpush1.bf16.msra.mxu0 %v6154_v36  ;;  %1749 = vmatpush1.bf16.msra.mxu1 %v6160_v39 }
 0x5a7   :  { %1707 = vmatprep.subr.bf16.mxu0 %v6166_v40  ;;  %1750 = vmatprep.subr.bf16.mxu1 %v6172_v41 }
 0x5aa   :  { %1708 = vmatpush1.bf16.msra.mxu0 %v6178_v42  ;;  %1751 = vmatpush1.bf16.msra.mxu1 %v6184_v45 }
 0x5ab   :  { %1709 = vmatprep.subr.bf16.mxu0 %v6190_v46  ;;  %1752 = vmatprep.subr.bf16.mxu1 %v6196_v47 }
 0x5ae   :  { %1710 = vmatpush1.bf16.msra.mxu0 %v6202_v49  ;;  %1753 = vmatpush1.bf16.msra.mxu1 %v6208_v51 }
 0x5af   :  { %1711 = vmatprep.subr.bf16.mxu0 %v6214_v52  ;;  %1754 = vmatprep.subr.bf16.mxu1 %v6220_v54 }
 0x5b2   :  { %1712 = vmatpush1.bf16.msra.mxu0 %v6226_v44  ;;  %1755 = vmatpush1.bf16.msra.mxu1 %v6232_v37 }
 0x5b3   :  { %1713 = vmatprep.subr.bf16.mxu0 %v6238_v23  ;;  %1756 = vmatprep.subr.bf16.mxu1 %v6244_v17 }
 0x5b6   :  { %1714 = vmatpush1.bf16.msra.mxu0 %v6250_v30  ;;  %1757 = vmatpush1.bf16.msra.mxu1 %v6256_v48 }
 0x5b7   :  { %1852 = vmatprep.subr.bf16.mxu0 %v6108_v56  ;;  %1895 = vmatprep.subr.bf16.mxu1 %v6114_v57 }
 0x66c   :  { %v1580_v9 = vpop.f32.mrb[20].mxu0  ;;  %v1623_v5 = vpop.f32.mrb[20].mxu1 }
 0x66d   :  { %v4353_v16 = vadd.f32 %v1580_v9, %v5871_v32  ;;  %v1582_v2 = vpop.f32.mrb[21].mxu0  ;;  %v1625_v38 = vpop.f32.mrb[21].mxu1  ;;  %v4385_v58 = vadd.f32 %v1623_v5, %v5889_v22 }
 0x66e   :  { %v4354_v3 = vadd.f32 %v1582_v2, %v5875_v33  ;;  %v1584_v61 = vpop.f32.mrb[22].mxu0  ;;  %v1627_v60 = vpop.f32.mrb[22].mxu1  ;;  %v4386_v0 = vadd.f32 %v1625_v38, %v5884_v18 }
 0x66f   :  { %v4164_v31 = vmul.f32 -1.442695, %v4353_v16  ;;  %v4355_v63 = vadd.f32 %v1584_v61, %v5871_v32  ;;  %v1586_v8 = vpop.f32.mrb[23].mxu0  ;;  %v1629_v6 = vpop.f32.mrb[23].mxu1  ;;  %v4387_v9 = vadd.f32 %v1627_v60, %v5889_v22 }
 0x670   :  { %v4166_v62 = vmul.f32 -1.442695, %v4354_v3  ;;  %v4356_v56 = vadd.f32 %v1586_v8, %v5875_v33  ;;  %v4168_v11 = vmul.f32 -1.442695, %v4386_v0  ;;  %v4388_v12 = vadd.f32 %v1629_v6, %v5884_v18 }
 0x671   :  { %4953 = vpow2.f32 %v4164_v31  ;;  %v4165_v57 = vmul.f32 -1.442695, %v4355_v63 }
 0x672   :  { %4955 = vpow2.f32 %v4166_v62  ;;  %v4167_v50 = vmul.f32 -1.442695, %v4356_v56  ;;  %v4169_v61 = vmul.f32 -1.442695, %v4388_v12 }
 0x673   :  { %4957 = vpow2.f32 %v4165_v57 }
 0x674   :  { %4959 = vpow2.f32 %v4167_v50 }
 0x675   :  { %4961 = vtanh.f32 %v4385_v58 }
 0x676   :  { %4963 = vpow2.f32 %v4168_v11 }
 0x677   :  { %4965 = vtanh.f32 %v4387_v9 }
 0x67b   :  { %v4954_v16 = vpop.eup %4953 }
 0x67c   :  { %v4956_v2 = vpop.eup %4955  ;;  %v1646_v3 = vadd.f32 1.0, %v4954_v16 }
 0x67d   :  { %v1658_v31 = vadd.f32 1.0, %v4956_v2  ;;  %v4958_v63 = vpop.eup %4957 }
 0x67e   :  { %4967 = vrcp.f32 %v1646_v3  ;;  %v1647_v38 = vadd.f32 1.0, %v4958_v63  ;;  %v4960_v8 = vpop.eup %4959 }
 0x67f   :  { %4969 = vrcp.f32 %v1658_v31  ;;  %v1659_v5 = vadd.f32 1.0, %v4960_v8  ;;  %v4962_v6 = vpop.eup %4961 }
 0x680   :  { %4971 = vpow2.f32 %v4169_v61  ;;  %v4964_v62 = vpop.eup %4963 }
 0x681   :  { %4973 = vrcp.f32 %v1647_v38  ;;  %v4966_v60 = vpop.eup %4965  ;;  %v1672_v12 = vadd.f32 1.0, %v4964_v62 }
 0x682   :  { %4975 = vrcp.f32 %v1659_v5 }
 0x683   :  { %4977 = vrcp.f32 %v1672_v12 }
 0x688   :  { %v4968_v56 = vpop.eup %4967 }
 0x689   :  { %v4970_v57 = vpop.eup %4969  ;;  %v1680_v50 = vmul.f32 %v4968_v56, %v4962_v6 }
 0x68a   :  { %v4972_v0 = vpop.eup %4971  ;;  %v1678_v58 = vmul.f32 %v4970_v57, %v6270_v4 }
 0x68b   :  { %v4974_v11 = vpop.eup %4973  ;;  %v1673_v3 = vadd.f32 1.0, %v4972_v0 }
 0x68c   :  { %v6324_v9 = vadd.f32 %v1680_v50, %v1678_v58  ;;  %v1681_v16 = vmul.f32 %v4974_v11, %v4966_v60  ;;  %v4976_v2 = vpop.eup %4975 }
 0x68d   :  { %v1679_v61 = vmul.f32 %v4976_v2, %v6274_v10  ;;  %v4978_v63 = vpop.eup %4977 }
 0x68e   :  { %4979 = vtanh.f32 %v6324_v9 }
 0x68f   :  { %v6328_v31 = vadd.f32 %v1681_v16, %v1679_v61  ;;  %4981 = vrcp.f32 %v1673_v3 }
 0x691   :  { %4983 = vtanh.f32 %v6328_v31 }
 0x698   :  { %v4980_v38 = vpop.eup %4979 }
 0x699   :  { %v4982_v4 = vpop.eup %4981  ;;  %v1686_v5 = vmul.f32 %v4980_v38, %v4978_v63 }
 0x69b   :  { %v4984_v8 = vpop.eup %4983 }
 0x69c   :  { %v1687_v6 = vmul.f32 %v4984_v8, %v4982_v4 }
 0x69e   :  { %v6331_v62 = vpack.c.bf16 %v1687_v6, %v1686_v5 }
 0x6a0   :  { %1732 = vmatmul.mubr.bf16.vlgmr.msra.gmra.mrb[24].mxu0 %v6331_v62  ;;  %1775 = vmatmul.mubr.bf16.vlgmr.msra.gmra.mrb[24].mxu1 %v6331_v62 }
 0x6a1   :  { %1853 = vmatpush1.bf16.msra.mxu0 %v6016_v27  ;;  %1896 = vmatpush1.bf16.msra.mxu1 %v6022_v13  ;;  %v4691_v27 = vld [vmem:[%s7296_s4 + $0x4] ss:$16 sps:$4 sm:$0xff]   ;;  %v4694_v13 = vld [vmem:[%s7296_s4 + $0xc] ss:$16 sps:$4 sm:$0xff]  }
 0x6a2   :  { %1854 = vmatprep.subr.bf16.mxu0 %v6028_v14  ;;  %1897 = vmatprep.subr.bf16.mxu1 %v6034_v20 }
 0x6a3   :  { %1884 = vmatprep.mubr.bf16.mxu0 %v5394_v1  ;;  %1927 = vmatprep.mubr.bf16.mxu1 %v5394_v1 }
 0x6a5   :  { %1855 = vmatpush1.bf16.msra.mxu0 %v6042_v21  ;;  %1898 = vmatpush1.bf16.msra.mxu1 %v6048_v26 }
 0x6a6   :  { %1856 = vmatprep.subr.bf16.mxu0 %v6054_v24  ;;  %1899 = vmatprep.subr.bf16.mxu1 %v6060_v19 }
 0x6a9   :  { %1857 = vmatpush1.bf16.msra.mxu0 %v6066_v43  ;;  %1900 = vmatpush1.bf16.msra.mxu1 %v6072_v25 }
 0x6aa   :  { %1858 = vmatprep.subr.bf16.mxu0 %v6078_v59  ;;  %1901 = vmatprep.subr.bf16.mxu1 %v6084_v34 }
 0x6ad   :  { %1859 = vmatpush1.bf16.msra.mxu0 %v6154_v36  ;;  %1902 = vmatpush1.bf16.msra.mxu1 %v6160_v39 }
 0x6ae   :  { %1860 = vmatprep.subr.bf16.mxu0 %v6166_v40  ;;  %1903 = vmatprep.subr.bf16.mxu1 %v6172_v41 }
 0x6b1   :  { %1861 = vmatpush1.bf16.msra.mxu0 %v6178_v42  ;;  %1904 = vmatpush1.bf16.msra.mxu1 %v6184_v45 }
 0x6b2   :  { %1862 = vmatprep.subr.bf16.mxu0 %v6190_v46  ;;  %1905 = vmatprep.subr.bf16.mxu1 %v6196_v47 }
 0x6b5   :  { %1863 = vmatpush1.bf16.msra.mxu0 %v6202_v49  ;;  %1906 = vmatpush1.bf16.msra.mxu1 %v6208_v51 }
 0x6b6   :  { %1864 = vmatprep.subr.bf16.mxu0 %v6214_v52  ;;  %1907 = vmatprep.subr.bf16.mxu1 %v6220_v54 }
 0x6b9   :  { %1865 = vmatpush1.bf16.msra.mxu0 %v6226_v44  ;;  %1908 = vmatpush1.bf16.msra.mxu1 %v6232_v37 }
 0x6ba   :  { %1866 = vmatprep.subr.bf16.mxu0 %v6238_v23  ;;  %1909 = vmatprep.subr.bf16.mxu1 %v6244_v17 }
 0x6bd   :  { %1867 = vmatpush1.bf16.msra.mxu0 %v6250_v30  ;;  %1910 = vmatpush1.bf16.msra.mxu1 %v6256_v48 }
 0x6be   :  { %2266 = vmatprep.subr.bf16.mxu0 %v4691_v27  ;;  %2379 = vmatprep.subr.bf16.mxu1 %v4694_v13 }
 0x773   :  { %v1733_v14 = vpop.f32.mrb[24].mxu0  ;;  %v1776_v20 = vpop.f32.mrb[24].mxu1 }
 0x774   :  { %v4357_v21 = vadd.f32 %v1733_v14, %v5871_v32  ;;  %v1735_v26 = vpop.f32.mrb[25].mxu0  ;;  %v1778_v24 = vpop.f32.mrb[25].mxu1  ;;  %v4389_v47 = vadd.f32 %v1776_v20, %v5889_v22 }
 0x775   :  { %v4358_v19 = vadd.f32 %v1735_v26, %v5875_v33  ;;  %v1737_v43 = vpop.f32.mrb[26].mxu0  ;;  %v1780_v25 = vpop.f32.mrb[26].mxu1  ;;  %v4390_v46 = vadd.f32 %v1778_v24, %v5884_v18  ;;  %v4697_v24 = vld [vmem:[%s7296_s4 + $0x24] ss:$16 sps:$4 sm:$0xff]  }
 0x776   :  { %v4170_v59 = vmul.f32 -1.442695, %v4357_v21  ;;  %v4359_v34 = vadd.f32 %v1737_v43, %v5871_v32  ;;  %v1739_v36 = vpop.f32.mrb[27].mxu0  ;;  %v1782_v39 = vpop.f32.mrb[27].mxu1  ;;  %v4391_v52 = vadd.f32 %v1780_v25, %v5889_v22  ;;  %v4689_v21 = vld [vmem:[%s7296_s4] ss:$16 sps:$4 sm:$0xff]  }
 0x777   :  { %v4172_v40 = vmul.f32 -1.442695, %v4358_v19  ;;  %v4360_v41 = vadd.f32 %v1739_v36, %v5875_v33  ;;  %v4174_v49 = vmul.f32 -1.442695, %v4390_v46  ;;  %v4392_v51 = vadd.f32 %v1782_v39, %v5884_v18  ;;  %v4700_v19 = vld [vmem:[%s7296_s4 + $0x2c] ss:$16 sps:$4 sm:$0xff]  }
 0x778   :  { %4985 = vpow2.f32 %v4170_v59  ;;  %v4171_v42 = vmul.f32 -1.442695, %v4359_v34  ;;  %v4695_v43 = vld [vmem:[%s7296_s4 + $0x20] ss:$16 sps:$4 sm:$0xff]   ;;  %v4698_v25 = vld [vmem:[%s7296_s4 + $0x28] ss:$16 sps:$4 sm:$0xff]  }
 0x779   :  { %4987 = vpow2.f32 %v4172_v40  ;;  %v4173_v45 = vmul.f32 -1.442695, %v4360_v41  ;;  %v4175_v23 = vmul.f32 -1.442695, %v4392_v51  ;;  %v4703_v59 = vld [vmem:[%s7296_s4 + $0x44] ss:$16 sps:$4 sm:$0xff]  }
 0x77a   :  { %4989 = vpow2.f32 %v4171_v42  ;;  %v4706_v34 = vld [vmem:[%s7296_s4 + $0x4c] ss:$16 sps:$4 sm:$0xff]   ;;  %v4701_v36 = vld [vmem:[%s7296_s4 + $0x40] ss:$16 sps:$4 sm:$0xff]   ;;  %v4704_v39 = vld [vmem:[%s7296_s4 + $0x48] ss:$16 sps:$4 sm:$0xff]  }
 0x77b   :  { %4991 = vpow2.f32 %v4173_v45  ;;  %v4709_v40 = vld [vmem:[%s7296_s4 + $0x64] ss:$16 sps:$4 sm:$0xff]   ;;  %v4712_v41 = vld [vmem:[%s7296_s4 + $0x6c] ss:$16 sps:$4 sm:$0xff]   ;;  %v4707_v42 = vld [vmem:[%s7296_s4 + $0x60] ss:$16 sps:$4 sm:$0xff]  }
 0x77c   :  { %4993 = vtanh.f32 %v4389_v47  ;;  %v4710_v45 = vld [vmem:[%s7296_s4 + $0x68] ss:$16 sps:$4 sm:$0xff]   ;;  %v4715_v46 = vld [vmem:[%s7296_s4 + $0x84] ss:$16 sps:$4 sm:$0xff]   ;;  %v4718_v47 = vld [vmem:[%s7296_s4 + $0x8c] ss:$16 sps:$4 sm:$0xff]  }
 0x77d   :  { %4995 = vpow2.f32 %v4174_v49  ;;  %v4713_v49 = vld [vmem:[%s7296_s4 + $0x80] ss:$16 sps:$4 sm:$0xff]   ;;  %v4716_v51 = vld [vmem:[%s7296_s4 + $0x88] ss:$16 sps:$4 sm:$0xff]  }
 0x77e   :  { %4997 = vtanh.f32 %v4391_v52  ;;  %v4721_v52 = vld [vmem:[%s7296_s4 + $0xa4] ss:$16 sps:$4 sm:$0xff]  }
 0x782   :  { %v4986_v54 = vpop.eup %4985 }
 0x783   :  { %v4988_v44 = vpop.eup %4987  ;;  %v1799_v37 = vadd.f32 1.0, %v4986_v54  ;;  %v4724_v54 = vld [vmem:[%s7296_s4 + $0xac] ss:$16 sps:$4 sm:$0xff]  }
 0x784   :  { %v1811_v17 = vadd.f32 1.0, %v4988_v44  ;;  %v4990_v30 = vpop.eup %4989  ;;  %v4719_v44 = vld [vmem:[%s7296_s4 + $0xa0] ss:$16 sps:$4 sm:$0xff]  }
 0x785   :  { %4999 = vrcp.f32 %v1799_v37  ;;  %v1800_v48 = vadd.f32 1.0, %v4990_v30  ;;  %v4992_v10 = vpop.eup %4991  ;;  %v4722_v37 = vld [vmem:[%s7296_s4 + $0xa8] ss:$16 sps:$4 sm:$0xff]   ;;  %v4725_v30 = vld [vmem:[%s7296_s4 + $0xc0] ss:$16 sps:$4 sm:$0xff]  }
 0x786   :  { %5001 = vrcp.f32 %v1811_v17  ;;  %v1812_v60 = vadd.f32 1.0, %v4992_v10  ;;  %v4994_v56 = vpop.eup %4993  ;;  %v4730_v17 = vld [vmem:[%s7296_s4 + $0xcc] ss:$16 sps:$4 sm:$0xff]   ;;  %v4733_v10 = vld [vmem:[%s7296_s4 + $0xe4] ss:$16 sps:$4 sm:$0xff]  }
 0x787   :  { %5003 = vpow2.f32 %v4175_v23  ;;  %v4996_v57 = vpop.eup %4995  ;;  %v4727_v23 = vld [vmem:[%s7296_s4 + $0xc4] ss:$16 sps:$4 sm:$0xff]  }
 0x788   :  { %5005 = vrcp.f32 %v1800_v48  ;;  %v4998_v50 = vpop.eup %4997  ;;  %v1825_v3 = vadd.f32 1.0, %v4996_v57  ;;  %v4728_v48 = vld [vmem:[%s7296_s4 + $0xc8] ss:$16 sps:$4 sm:$0xff]  }
 0x789   :  { %5007 = vrcp.f32 %v1812_v60  ;;  %v4736_v60 = vld [vmem:[%s7296_s4 + $0xec] ss:$16 sps:$4 sm:$0xff]   ;;  %v4734_v57 = vld [vmem:[%s7296_s4 + $0xe8] ss:$16 sps:$4 sm:$0xff]  }
 0x78a   :  { %5009 = vrcp.f32 %v1825_v3  ;;  %v6591_v3 = vld [vmem:[%s7297_s5 + $0x6c] ss:$16 sps:$4 sm:$0xff]  }
 0x78f   :  { %v5000_v0 = vpop.eup %4999 }
 0x790   :  { %v5002_v58 = vpop.eup %5001  ;;  %v1833_v11 = vmul.f32 %v5000_v0, %v4994_v56  ;;  %v4731_v56 = vld [vmem:[%s7296_s4 + $0xe0] ss:$16 sps:$4 sm:$0xff]  }
 0x791   :  { %v5004_v12 = vpop.eup %5003  ;;  %v1831_v16 = vmul.f32 %v5002_v58, %v6324_v9  ;;  %v6494_v0 = vld [vmem:[%s7297_s5] ss:$16 sps:$4 sm:$0xff]   ;;  %v6562_v58 = vld [vmem:[%s7297_s5 + $0x28] ss:$16 sps:$4 sm:$0xff]  }
 0x792   :  { %v5006_v2 = vpop.eup %5005  ;;  %v1826_v4 = vadd.f32 1.0, %v5004_v12  ;;  %v6573_v12 = vld [vmem:[%s7297_s5 + $0x4c] ss:$16 sps:$4 sm:$0xff]  }
 0x793   :  { %v6382_v61 = vadd.f32 %v1833_v11, %v1831_v16  ;;  %v1834_v63 = vmul.f32 %v5006_v2, %v4998_v50  ;;  %v5008_v38 = vpop.eup %5007  ;;  %v6488_v50 = vld [vmem:[%s7297_s5 + $0x4] ss:$16 sps:$4 sm:$0xff]   ;;  %v6568_v11 = vld [vmem:[%s7297_s5 + $0x40] ss:$16 sps:$4 sm:$0xff]   ;;  %v6585_v2 = vld [vmem:[%s7297_s5 + $0x48] ss:$16 sps:$4 sm:$0xff]  }
 0x794   :  { %v1832_v8 = vmul.f32 %v5008_v38, %v6328_v31  ;;  %v5010_v6 = vpop.eup %5009  ;;  %v4692_v31 = vld [vmem:[%s7296_s4 + $0x8] ss:$16 sps:$4 sm:$0xff]   ;;  %v6579_v16 = vld [vmem:[%s7297_s5 + $0x64] ss:$16 sps:$4 sm:$0xff]  }
 0x795   :  { %5011 = vtanh.f32 %v6382_v61  ;;  %v6603_v38 = vld [vmem:[%s7297_s5 + $0x84] ss:$16 sps:$4 sm:$0xff]  }
 0x796   :  { %v6386_v5 = vadd.f32 %v1834_v63, %v1832_v8  ;;  %5013 = vrcp.f32 %v1826_v4  ;;  %v6597_v63 = vld [vmem:[%s7297_s5 + $0x60] ss:$16 sps:$4 sm:$0xff]   ;;  %v6609_v4 = vld [vmem:[%s7297_s5 + $0x68] ss:$16 sps:$4 sm:$0xff]   ;;  %v6615_v8 = vld [vmem:[%s7297_s5 + $0x8c] ss:$16 sps:$4 sm:$0xff]  }
 0x798   :  { %5015 = vtanh.f32 %v6386_v5 }
 0x79f   :  { %v5012_v27 = vpop.eup %5011 }
 0x7a0   :  { %v5014_v9 = vpop.eup %5013  ;;  %v1839_v14 = vmul.f32 %v5012_v27, %v5010_v6  ;;  %v6621_v6 = vld [vmem:[%s7297_s5 + $0x80] ss:$16 sps:$4 sm:$0xff]   ;;  %v6627_v27 = vld [vmem:[%s7297_s5 + $0xa4] ss:$16 sps:$4 sm:$0xff]  }
 0x7a2   :  { %v5016_v13 = vpop.eup %5015 }
 0x7a3   :  { %v1840_v20 = vmul.f32 %v5016_v13, %v5014_v9  ;;  %v6633_v9 = vld [vmem:[%s7297_s5 + $0x88] ss:$16 sps:$4 sm:$0xff]   ;;  %v6639_v13 = vld [vmem:[%s7297_s5 + $0xac] ss:$16 sps:$4 sm:$0xff]  }
 0x7a5   :  { %v6395_v26 = vpack.c.bf16 %v1840_v20, %v1839_v14  ;;  %v6645_v14 = vld [vmem:[%s7297_s5 + $0xa0] ss:$16 sps:$4 sm:$0xff]   ;;  %v6651_v20 = vld [vmem:[%s7297_s5 + $0xc4] ss:$16 sps:$4 sm:$0xff]  }
 0x7a7   :  { %1885 = vmatmul.mubr.bf16.vlgmr.msra.gmra.mrb[28].mxu0 %v6395_v26  ;;  %1928 = vmatmul.mubr.bf16.vlgmr.msra.gmra.mrb[28].mxu1 %v6395_v26 }
 0x7a8   :  { %2267 = vmatpush1.bf16.msra.mxu0 %v4689_v21  ;;  %2380 = vmatpush1.bf16.msra.mxu1 %v4692_v31  ;;  %v6657_v21 = vld [vmem:[%s7297_s5 + $0xa8] ss:$16 sps:$4 sm:$0xff]   ;;  %v6664_v31 = vld [vmem:[%s7297_s5 + $0xc0] ss:$16 sps:$4 sm:$0xff]  }
 0x7a9   :  { %2268 = vmatprep.subr.bf16.mxu0 %v4697_v24  ;;  %2381 = vmatprep.subr.bf16.mxu1 %v4700_v19  ;;  %v6676_v24 = vld [vmem:[%s7297_s5 + $0xcc] ss:$16 sps:$4 sm:$0xff]   ;;  %v6681_v19 = vld [vmem:[%s7297_s5 + $0xc8] ss:$16 sps:$4 sm:$0xff]  }
 0x7aa   :  { %2298 = vmatprep.mubr.bf16.mxu0 %v5394_v1  ;;  %2411 = vmatprep.mubr.bf16.mxu1 %v5394_v1 }
 0x7ac   :  { %2269 = vmatpush1.bf16.msra.mxu0 %v4695_v43  ;;  %2382 = vmatpush1.bf16.msra.mxu1 %v4698_v25  ;;  %v6686_v43 = vld [vmem:[%s7297_s5 + $0xec] ss:$16 sps:$4 sm:$0xff]   ;;  %v6693_v25 = vld [vmem:[%s7297_s5 + $0xe0] ss:$16 sps:$4 sm:$0xff]  }
 0x7ad   :  { %2270 = vmatprep.subr.bf16.mxu0 %v4703_v59  ;;  %2383 = vmatprep.subr.bf16.mxu1 %v4706_v34  ;;  %v6700_v59 = vld [vmem:[%s7297_s5 + $0xe8] ss:$16 sps:$4 sm:$0xff]  }
 0x7b0   :  { %2271 = vmatpush1.bf16.msra.mxu0 %v4701_v36  ;;  %2384 = vmatpush1.bf16.msra.mxu1 %v4704_v39 }
 0x7b1   :  { %2272 = vmatprep.subr.bf16.mxu0 %v4709_v40  ;;  %2385 = vmatprep.subr.bf16.mxu1 %v4712_v41 }
 0x7b4   :  { %2273 = vmatpush1.bf16.msra.mxu0 %v4707_v42  ;;  %2386 = vmatpush1.bf16.msra.mxu1 %v4710_v45 }
 0x7b5   :  { %2274 = vmatprep.subr.bf16.mxu0 %v4715_v46  ;;  %2387 = vmatprep.subr.bf16.mxu1 %v4718_v47 }
 0x7b8   :  { %2275 = vmatpush1.bf16.msra.mxu0 %v4713_v49  ;;  %2388 = vmatpush1.bf16.msra.mxu1 %v4716_v51 }
 0x7b9   :  { %2276 = vmatprep.subr.bf16.mxu0 %v4721_v52  ;;  %2389 = vmatprep.subr.bf16.mxu1 %v4724_v54 }
 0x7bc   :  { %2277 = vmatpush1.bf16.msra.mxu0 %v4719_v44  ;;  %2390 = vmatpush1.bf16.msra.mxu1 %v4722_v37 }
 0x7bd   :  { %2278 = vmatprep.subr.bf16.mxu0 %v4727_v23  ;;  %2391 = vmatprep.subr.bf16.mxu1 %v4730_v17 }
 0x7c0   :  { %2279 = vmatpush1.bf16.msra.mxu0 %v4725_v30  ;;  %2392 = vmatpush1.bf16.msra.mxu1 %v4728_v48 }
 0x7c1   :  { %2280 = vmatprep.subr.bf16.mxu0 %v4733_v10  ;;  %2393 = vmatprep.subr.bf16.mxu1 %v4736_v60 }
 0x7c4   :  { %2281 = vmatpush1.bf16.msra.mxu0 %v4731_v56  ;;  %2394 = vmatpush1.bf16.msra.mxu1 %v4734_v57 }
 0x7c5   :  { %2724 = vmatprep.subr.bf16.mxu0 %v6488_v50 }
 0x7c7   :  { %2299 = vmatmul.mubr.bf16.vlgmr.msra.gmra.mrb[32].mxu0 %v5901_v7  ;;  %2412 = vmatmul.mubr.bf16.vlgmr.msra.gmra.mrb[32].mxu1 %v5901_v7  ;;  %v6528_v7 = vld [vmem:[%s7297_s5 + $0xc] ss:$16 sps:$4 sm:$0xff]  }
 0x7c8   :  { %2308 = vmatprep.mubr.bf16.mxu0 %v5394_v1  ;;  %2421 = vmatprep.mubr.bf16.mxu1 %v5394_v1 }
 0x7c9   :  { %2725 = vmatpush1.bf16.msra.mxu0 %v6494_v0  ;;  %2767 = vmatprep.subr.bf16.mxu1 %v6528_v7 }
 0x7cf   :  { %2309 = vmatmul.mubr.bf16.gmra.mrb[36].mxu0 %v5955_v55  ;;  %2422 = vmatmul.mubr.bf16.gmra.mrb[36].mxu1 %v5955_v55  ;;  %v6533_v55 = vld [vmem:[%s7297_s5 + $0x8] ss:$16 sps:$4 sm:$0xff]  }
 0x7d0   :  { %2318 = vmatprep.mubr.bf16.mxu0 %v5394_v1  ;;  %2431 = vmatprep.mubr.bf16.mxu1 %v5394_v1 }
 0x7d1   :  { %2768 = vmatpush1.bf16.msra.mxu1 %v6533_v55 }
 0x7d7   :  { %2319 = vmatmul.mubr.bf16.gmra.mrb[40].mxu0 %v6009_v35  ;;  %2432 = vmatmul.mubr.bf16.gmra.mrb[40].mxu1 %v6009_v35  ;;  %v6540_v35 = vld [vmem:[%s7297_s5 + $0x24] ss:$16 sps:$4 sm:$0xff]  }
 0x7d8   :  { %2328 = vmatprep.mubr.bf16.mxu0 %v5394_v1  ;;  %2441 = vmatprep.mubr.bf16.mxu1 %v5394_v1 }
 0x7d9   :  { %2726 = vmatprep.subr.bf16.mxu0 %v6540_v35 }
 0x7df   :  { %2329 = vmatmul.mubr.bf16.gmra.mrb[44].mxu0 %v6133_v53  ;;  %2442 = vmatmul.mubr.bf16.gmra.mrb[44].mxu1 %v6133_v53  ;;  %v6545_v53 = vld [vmem:[%s7297_s5 + $0x2c] ss:$16 sps:$4 sm:$0xff]  }
 0x7e0   :  { %2338 = vmatprep.mubr.bf16.mxu0 %v5394_v1  ;;  %2451 = vmatprep.mubr.bf16.mxu1 %v5394_v1 }
 0x7e1   :  { %2769 = vmatprep.subr.bf16.mxu1 %v6545_v53 }
 0x7e2   :  { %2770 = vmatpush1.bf16.msra.mxu1 %v6562_v58 }
 0x7e3   :  { %2771 = vmatprep.subr.bf16.mxu1 %v6573_v12 }
 0x7e6   :  { %2772 = vmatpush1.bf16.msra.mxu1 %v6585_v2 }
 0x7e7   :  { %2339 = vmatmul.mubr.bf16.gmra.mrb[48].mxu0 %v6277_v15  ;;  %2452 = vmatmul.mubr.bf16.gmra.mrb[48].mxu1 %v6277_v15  ;;  %v6550_v15 = vld [vmem:[%s7297_s5 + $0x20] ss:$16 sps:$4 sm:$0xff]  }
 0x7e8   :  { %2348 = vmatprep.mubr.bf16.mxu0 %v5394_v1  ;;  %2461 = vmatprep.mubr.bf16.mxu1 %v5394_v1 }
 0x7e9   :  { %2727 = vmatpush1.bf16.msra.mxu0 %v6550_v15  ;;  %2773 = vmatprep.subr.bf16.mxu1 %v6591_v3 }
 0x7ea   :  { %2774 = vmatpush1.bf16.msra.mxu1 %v6609_v4 }
 0x7eb   :  { %2775 = vmatprep.subr.bf16.mxu1 %v6615_v8 }
 0x7ee   :  { %2776 = vmatpush1.bf16.msra.mxu1 %v6633_v9 }
 0x7ef   :  { %2349 = vmatmul.mubr.bf16.gmra.mrb[52].mxu0 %v6331_v62  ;;  %2462 = vmatmul.mubr.bf16.gmra.mrb[52].mxu1 %v6331_v62  ;;  %v6555_v62 = vld [vmem:[%s7297_s5 + $0x44] ss:$16 sps:$4 sm:$0xff]  }
 0x7f0   :  { %2358 = vmatprep.mubr.bf16.mxu0 %v5394_v1  ;;  %2471 = vmatprep.mubr.bf16.mxu1 %v5394_v1 }
 0x7f1   :  { %2728 = vmatprep.subr.bf16.mxu0 %v6555_v62  ;;  %2777 = vmatprep.subr.bf16.mxu1 %v6639_v13 }
 0x7f2   :  { %2729 = vmatpush1.bf16.msra.mxu0 %v6568_v11  ;;  %2778 = vmatpush1.bf16.msra.mxu1 %v6657_v21 }
 0x7f3   :  { %2730 = vmatprep.subr.bf16.mxu0 %v6579_v16  ;;  %2779 = vmatprep.subr.bf16.mxu1 %v6676_v24 }
 0x7f6   :  { %2731 = vmatpush1.bf16.msra.mxu0 %v6597_v63  ;;  %2780 = vmatpush1.bf16.msra.mxu1 %v6681_v19 }
 0x7f7   :  { %2359 = vmatmul.mubr.bf16.gmra.mrb[56].mxu0 %v6395_v26  ;;  %2472 = vmatmul.mubr.bf16.gmra.mrb[56].mxu1 %v6395_v26  ;;  %v6671_v26 = vld [vmem:[%s7297_s5 + $0xe4] ss:$16 sps:$4 sm:$0xff]  }
 0x7f8   :  { %2368 = vmatprep.mubr.bf16.mxu0 %v5394_v1  ;;  %2481 = vmatprep.mubr.bf16.mxu1 %v5394_v1 }
 0x7f9   :  { %2732 = vmatprep.subr.bf16.mxu0 %v6603_v38  ;;  %2781 = vmatprep.subr.bf16.mxu1 %v6686_v43 }
 0x7fa   :  { %2733 = vmatpush1.bf16.msra.mxu0 %v6621_v6  ;;  %2782 = vmatpush1.bf16.msra.mxu1 %v6700_v59 }
 0x7fb   :  { %2734 = vmatprep.subr.bf16.mxu0 %v6627_v27  ;;  %2918 = vmatprep.subr.bf16.mxu1 %v6528_v7 }
 0x7fe   :  { %2735 = vmatpush1.bf16.msra.mxu0 %v6645_v14 }
 0x7ff   :  { %2736 = vmatprep.subr.bf16.mxu0 %v6651_v20 }
 0x802   :  { %2737 = vmatpush1.bf16.msra.mxu0 %v6664_v31 }
 0x803   :  { %2738 = vmatprep.subr.bf16.mxu0 %v6671_v26 }
 0x806   :  { %2739 = vmatpush1.bf16.msra.mxu0 %v6693_v25 }
 0x807   :  { %2875 = vmatprep.subr.bf16.mxu0 %v6488_v50 }
 0x87a   :  { %v1886_v34 = vpop.f32.mrb[28].mxu0  ;;  %v1929_v36 = vpop.f32.mrb[28].mxu1 }
 0x87b   :  { %v4361_v39 = vadd.f32 %v1886_v34, %v5871_v32  ;;  %v1888_v40 = vpop.f32.mrb[29].mxu0  ;;  %v1931_v41 = vpop.f32.mrb[29].mxu1  ;;  %v4393_v30 = vadd.f32 %v1929_v36, %v5889_v22 }
 0x87c   :  { %v4362_v42 = vadd.f32 %v1888_v40, %v5875_v33  ;;  %v1890_v45 = vpop.f32.mrb[30].mxu0  ;;  %v1933_v46 = vpop.f32.mrb[30].mxu1  ;;  %v4394_v17 = vadd.f32 %v1931_v41, %v5884_v18 }
 0x87d   :  { %v4176_v47 = vmul.f32 -1.442695, %v4361_v39  ;;  %v4363_v49 = vadd.f32 %v1890_v45, %v5871_v32  ;;  %v1892_v51 = vpop.f32.mrb[31].mxu0  ;;  %v1935_v52 = vpop.f32.mrb[31].mxu1  ;;  %v4395_v32 = vadd.f32 %v1933_v46, %v5889_v22 }
 0x87e   :  { %v4178_v54 = vmul.f32 -1.442695, %v4362_v42  ;;  %v4364_v44 = vadd.f32 %v1892_v51, %v5875_v33  ;;  %v4180_v48 = vmul.f32 -1.442695, %v4394_v17  ;;  %v4396_v10 = vadd.f32 %v1935_v52, %v5884_v18 }
 0x87f   :  { %5017 = vpow2.f32 %v4176_v47  ;;  %v4177_v37 = vmul.f32 -1.442695, %v4363_v49 }
 0x880   :  { %5019 = vpow2.f32 %v4178_v54  ;;  %v4179_v23 = vmul.f32 -1.442695, %v4364_v44  ;;  %v4181_v33 = vmul.f32 -1.442695, %v4396_v10 }
 0x881   :  { %5021 = vpow2.f32 %v4177_v37 }
 0x882   :  { %5023 = vpow2.f32 %v4179_v23 }
 0x883   :  { %5025 = vtanh.f32 %v4393_v30 }
 0x884   :  { %5027 = vpow2.f32 %v4180_v48 }
 0x885   :  { %5029 = vtanh.f32 %v4395_v32 }
 0x889   :  { %v5018_v60 = vpop.eup %5017 }
 0x88a   :  { %v5020_v56 = vpop.eup %5019  ;;  %v1952_v57 = vadd.f32 1.0, %v5018_v60 }
 0x88b   :  { %v1964_v34 = vadd.f32 1.0, %v5020_v56  ;;  %v5022_v39 = vpop.eup %5021 }
 0x88c   :  { %5031 = vrcp.f32 %v1952_v57  ;;  %v1953_v40 = vadd.f32 1.0, %v5022_v39  ;;  %v5024_v41 = vpop.eup %5023  ;;  %v7307_v39 = vsub.s32 1, %v5864_v28 }
 0x88d   :  { %5033 = vrcp.f32 %v1964_v34  ;;  %v1965_v36 = vadd.f32 1.0, %v5024_v41  ;;  %v5026_v18 = vpop.eup %5025 }
 0x88e   :  { %5035 = vpow2.f32 %v4181_v33  ;;  %v5028_v42 = vpop.eup %5027 }
 0x88f   :  { %5037 = vrcp.f32 %v1953_v40  ;;  %v5030_v22 = vpop.eup %5029  ;;  %v1978_v49 = vadd.f32 1.0, %v5028_v42 }
 0x890   :  { %5039 = vrcp.f32 %v1965_v36 }
 0x891   :  { %5041 = vrcp.f32 %v1978_v49 }
 0x896   :  { %v5032_v45 = vpop.eup %5031 }
 0x897   :  { %v5034_v46 = vpop.eup %5033  ;;  %v1986_v47 = vmul.f32 %v5032_v45, %v5026_v18 }
 0x898   :  { %v5036_v51 = vpop.eup %5035  ;;  %v1984_v52 = vmul.f32 %v5034_v46, %v6382_v61  ;;  %v2060_v61 = vld [vmem:[%s7298_s6] sm:$0xf] }
 0x899   :  { %v5038_v54 = vpop.eup %5037  ;;  %v1979_v17 = vadd.f32 1.0, %v5036_v51  ;;  %v6763_v40 = vrot.slane %v2060_v61, %v7307_v39 }
 0x89a   :  { %v1987_v44 = vmul.f32 %v5038_v54, %v5030_v22  ;;  %v1988_v37 = vadd.f32 %v1986_v47, %v1984_v52  ;;  %v5040_v23 = vpop.eup %5039 }
 0x89b   :  { %v1985_v30 = vmul.f32 %v5040_v23, %v6386_v5  ;;  %v5042_v10 = vpop.eup %5041  ;;  %v6759_v5 = vrot.slane %v2060_v61, %v5867_v29 }
 0x89c   :  { %5043 = vtanh.f32 %v1988_v37  ;;  %v7308_v37 = vsub.s32 3, %v5864_v28 }
 0x89d   :  { %v1989_v48 = vadd.f32 %v1987_v44, %v1985_v30  ;;  %5045 = vrcp.f32 %v1979_v17 }
 0x89e   :  { %v6770_v23 = vrot.slane %v2060_v61, %v7308_v37 }
 0x89f   :  { %5047 = vtanh.f32 %v1989_v48 }
 0x8a6   :  { %v5044_v32 = vpop.eup %5043 }
 0x8a7   :  { %v1992_v60 = vmul.f32 %v5044_v32, %v5042_v10  ;;  %v5046_v56 = vpop.eup %5045  ;;  %v7309_v10 = vsub.s32 2, %v5864_v28 }
 0x8a9   :  { %v5048_v57 = vpop.eup %5047  ;;  %v6775_v32 = vrot.slane %v2060_v61, %v7309_v10 }
 0x8aa   :  { %v1993_v33 = vmul.f32 %v5048_v57, %v5046_v56 }
 0x8ac   :  { %v2084_v34 = vpack.c.bf16 %v1993_v33, %v1992_v60 }
 0x8ae   :  { %2369 = vmatmul.mubr.bf16.gmra.mrb[60].mxu0 %v2084_v34  ;;  %2482 = vmatmul.mubr.bf16.gmra.mrb[60].mxu1 %v2084_v34 }
 0x8af   :  { %2756 = vmatprep.mubr.bf16.mxu0 %v5394_v1  ;;  %2799 = vmatprep.mubr.bf16.mxu1 %v5394_v1 }
 0x8b6   :  { %2757 = vmatmul.mubr.bf16.vlgmr.msra.gmra.mrb[32].mxu0 %v5394_v1  ;;  %2800 = vmatmul.mubr.bf16.vlgmr.msra.gmra.mrb[32].mxu1 %v5394_v1 }
 0x8b7   :  { %2876 = vmatpush1.bf16.msra.mxu0 %v6494_v0  ;;  %2919 = vmatpush1.bf16.msra.mxu1 %v6533_v55 }
 0x8b8   :  { %2877 = vmatprep.subr.bf16.mxu0 %v6540_v35  ;;  %2920 = vmatprep.subr.bf16.mxu1 %v6545_v53 }
 0x8b9   :  { %2907 = vmatprep.mubr.bf16.mxu0 %v5394_v1  ;;  %2950 = vmatprep.mubr.bf16.mxu1 %v5394_v1 }
 0x8bb   :  { %2878 = vmatpush1.bf16.msra.mxu0 %v6550_v15  ;;  %2921 = vmatpush1.bf16.msra.mxu1 %v6562_v58 }
 0x8bc   :  { %2879 = vmatprep.subr.bf16.mxu0 %v6555_v62  ;;  %2922 = vmatprep.subr.bf16.mxu1 %v6573_v12 }
 0x8bf   :  { %2880 = vmatpush1.bf16.msra.mxu0 %v6568_v11  ;;  %2923 = vmatpush1.bf16.msra.mxu1 %v6585_v2 }
 0x8c0   :  { %2881 = vmatprep.subr.bf16.mxu0 %v6579_v16  ;;  %2924 = vmatprep.subr.bf16.mxu1 %v6591_v3 }
 0x8c3   :  { %2882 = vmatpush1.bf16.msra.mxu0 %v6597_v63  ;;  %2925 = vmatpush1.bf16.msra.mxu1 %v6609_v4 }
 0x8c4   :  { %2883 = vmatprep.subr.bf16.mxu0 %v6603_v38  ;;  %2926 = vmatprep.subr.bf16.mxu1 %v6615_v8 }
 0x8c7   :  { %2884 = vmatpush1.bf16.msra.mxu0 %v6621_v6  ;;  %2927 = vmatpush1.bf16.msra.mxu1 %v6633_v9 }
 0x8c8   :  { %2885 = vmatprep.subr.bf16.mxu0 %v6627_v27  ;;  %2928 = vmatprep.subr.bf16.mxu1 %v6639_v13 }
 0x8cb   :  { %2886 = vmatpush1.bf16.msra.mxu0 %v6645_v14  ;;  %2929 = vmatpush1.bf16.msra.mxu1 %v6657_v21 }
 0x8cc   :  { %2887 = vmatprep.subr.bf16.mxu0 %v6651_v20  ;;  %2930 = vmatprep.subr.bf16.mxu1 %v6676_v24 }
 0x8cf   :  { %2888 = vmatpush1.bf16.msra.mxu0 %v6664_v31  ;;  %2931 = vmatpush1.bf16.msra.mxu1 %v6681_v19 }
 0x8d0   :  { %2889 = vmatprep.subr.bf16.mxu0 %v6671_v26  ;;  %2932 = vmatprep.subr.bf16.mxu1 %v6686_v43 }
 0x8d3   :  { %2890 = vmatpush1.bf16.msra.mxu0 %v6693_v25  ;;  %2933 = vmatpush1.bf16.msra.mxu1 %v6700_v59 }
 0x8d4   :  { %3026 = vmatprep.subr.bf16.mxu0 %v6488_v50  ;;  %3069 = vmatprep.subr.bf16.mxu1 %v6528_v7 }
 0x989   :  { %v2758_v41 = vpop.f32.mrb[32].mxu0  ;;  %v2801_v36 = vpop.f32.mrb[32].mxu1 }
 0x98a   :  { %v4397_v18 = vadd.f32 %v2758_v41, %v6759_v5  ;;  %v2760_v42 = vpop.f32.mrb[33].mxu0  ;;  %v2803_v22 = vpop.f32.mrb[33].mxu1  ;;  %v4429_v56 = vadd.f32 %v2801_v36, %v6775_v32 }
 0x98b   :  { %v4398_v45 = vadd.f32 %v2760_v42, %v6763_v40  ;;  %v2762_v46 = vpop.f32.mrb[34].mxu0  ;;  %v2805_v47 = vpop.f32.mrb[34].mxu1  ;;  %v4430_v60 = vadd.f32 %v2803_v22, %v6770_v23 }
 0x98c   :  { %v4246_v49 = vmul.f32 -1.442695, %v4397_v18  ;;  %v4399_v51 = vadd.f32 %v2762_v46, %v6759_v5  ;;  %v2764_v52 = vpop.f32.mrb[35].mxu0  ;;  %v2807_v54 = vpop.f32.mrb[35].mxu1  ;;  %v4431_v34 = vadd.f32 %v2805_v47, %v6775_v32 }
 0x98d   :  { %v4248_v44 = vmul.f32 -1.442695, %v4398_v45  ;;  %v4400_v17 = vadd.f32 %v2764_v52, %v6763_v40  ;;  %v4250_v57 = vmul.f32 -1.442695, %v4430_v60  ;;  %v4432_v33 = vadd.f32 %v2807_v54, %v6770_v23 }
 0x98e   :  { %5049 = vpow2.f32 %v4246_v49  ;;  %v4247_v30 = vmul.f32 -1.442695, %v4399_v51 }
 0x98f   :  { %5051 = vpow2.f32 %v4248_v44  ;;  %v4249_v48 = vmul.f32 -1.442695, %v4400_v17  ;;  %v4251_v42 = vmul.f32 -1.442695, %v4432_v33 }
 0x990   :  { %5053 = vpow2.f32 %v4247_v30 }
 0x991   :  { %5055 = vpow2.f32 %v4249_v48 }
 0x992   :  { %5057 = vtanh.f32 %v4429_v56 }
 0x993   :  { %5059 = vpow2.f32 %v4250_v57 }
 0x994   :  { %5061 = vtanh.f32 %v4431_v34 }
 0x998   :  { %v5050_v39 = vpop.eup %5049 }
 0x999   :  { %v5052_v41 = vpop.eup %5051  ;;  %v2824_v18 = vadd.f32 1.0, %v5050_v39 }
 0x99a   :  { %v2836_v28 = vadd.f32 1.0, %v5052_v41  ;;  %v5054_v61 = vpop.eup %5053 }
 0x99b   :  { %5063 = vrcp.f32 %v2824_v18  ;;  %v2825_v22 = vadd.f32 1.0, %v5054_v61  ;;  %v5056_v45 = vpop.eup %5055 }
 0x99c   :  { %5065 = vrcp.f32 %v2836_v28  ;;  %v2837_v36 = vadd.f32 1.0, %v5056_v45  ;;  %v5058_v46 = vpop.eup %5057 }
 0x99d   :  { %5067 = vpow2.f32 %v4251_v42  ;;  %v5060_v49 = vpop.eup %5059 }
 0x99e   :  { %5069 = vrcp.f32 %v2825_v22  ;;  %v5062_v47 = vpop.eup %5061  ;;  %v2850_v30 = vadd.f32 1.0, %v5060_v49 }
 0x99f   :  { %5071 = vrcp.f32 %v2837_v36 }
 0x9a0   :  { %5073 = vrcp.f32 %v2850_v30 }
 0x9a5   :  { %v5064_v51 = vpop.eup %5063 }
 0x9a6   :  { %v5066_v52 = vpop.eup %5065  ;;  %v2858_v54 = vmul.f32 %v5064_v51, %v5058_v46 }
 0x9a7   :  { %v5068_v44 = vpop.eup %5067  ;;  %v2856_v37 = vmul.f32 0.0, %v5066_v52 }
 0x9a8   :  { %v5070_v17 = vpop.eup %5069  ;;  %v2851_v56 = vadd.f32 1.0, %v5068_v44 }
 0x9a9   :  { %v6781_v48 = vadd.f32 %v2858_v54, %v2856_v37  ;;  %v2859_v10 = vmul.f32 %v5070_v17, %v5062_v47  ;;  %v5072_v60 = vpop.eup %5071 }
 0x9aa   :  { %v2857_v57 = vmul.f32 0.0, %v5072_v60  ;;  %v5074_v34 = vpop.eup %5073 }
 0x9ab   :  { %5075 = vtanh.f32 %v6781_v48 }
 0x9ac   :  { %v6784_v33 = vadd.f32 %v2859_v10, %v2857_v57  ;;  %5077 = vrcp.f32 %v2851_v56 }
 0x9ae   :  { %5079 = vtanh.f32 %v6784_v33 }
 0x9b5   :  { %v5076_v39 = vpop.eup %5075 }
 0x9b6   :  { %v5078_v41 = vpop.eup %5077  ;;  %v2864_v42 = vmul.f32 %v5076_v39, %v5074_v34 }
 0x9b8   :  { %v5080_v18 = vpop.eup %5079 }
 0x9b9   :  { %v2865_v28 = vmul.f32 %v5080_v18, %v5078_v41 }
 0x9bb   :  { %v2874_v61 = vpack.c.bf16 %v2865_v28, %v2864_v42 }
 0x9bd   :  { %2908 = vmatmul.mubr.bf16.vlgmr.msra.gmra.mrb[36].mxu0 %v2874_v61  ;;  %2951 = vmatmul.mubr.bf16.vlgmr.msra.gmra.mrb[36].mxu1 %v2874_v61 }
 0x9be   :  { %3027 = vmatpush1.bf16.msra.mxu0 %v6494_v0  ;;  %3070 = vmatpush1.bf16.msra.mxu1 %v6533_v55 }
 0x9bf   :  { %3028 = vmatprep.subr.bf16.mxu0 %v6540_v35  ;;  %3071 = vmatprep.subr.bf16.mxu1 %v6545_v53 }
 0x9c0   :  { %3058 = vmatprep.mubr.bf16.mxu0 %v5394_v1  ;;  %3101 = vmatprep.mubr.bf16.mxu1 %v5394_v1 }
 0x9c2   :  { %3029 = vmatpush1.bf16.msra.mxu0 %v6550_v15  ;;  %3072 = vmatpush1.bf16.msra.mxu1 %v6562_v58 }
 0x9c3   :  { %3030 = vmatprep.subr.bf16.mxu0 %v6555_v62  ;;  %3073 = vmatprep.subr.bf16.mxu1 %v6573_v12 }
 0x9c6   :  { %3031 = vmatpush1.bf16.msra.mxu0 %v6568_v11  ;;  %3074 = vmatpush1.bf16.msra.mxu1 %v6585_v2 }
 0x9c7   :  { %3032 = vmatprep.subr.bf16.mxu0 %v6579_v16  ;;  %3075 = vmatprep.subr.bf16.mxu1 %v6591_v3 }
 0x9ca   :  { %3033 = vmatpush1.bf16.msra.mxu0 %v6597_v63  ;;  %3076 = vmatpush1.bf16.msra.mxu1 %v6609_v4 }
 0x9cb   :  { %3034 = vmatprep.subr.bf16.mxu0 %v6603_v38  ;;  %3077 = vmatprep.subr.bf16.mxu1 %v6615_v8 }
 0x9ce   :  { %3035 = vmatpush1.bf16.msra.mxu0 %v6621_v6  ;;  %3078 = vmatpush1.bf16.msra.mxu1 %v6633_v9 }
 0x9cf   :  { %3036 = vmatprep.subr.bf16.mxu0 %v6627_v27  ;;  %3079 = vmatprep.subr.bf16.mxu1 %v6639_v13 }
 0x9d2   :  { %3037 = vmatpush1.bf16.msra.mxu0 %v6645_v14  ;;  %3080 = vmatpush1.bf16.msra.mxu1 %v6657_v21 }
 0x9d3   :  { %3038 = vmatprep.subr.bf16.mxu0 %v6651_v20  ;;  %3081 = vmatprep.subr.bf16.mxu1 %v6676_v24 }
 0x9d6   :  { %3039 = vmatpush1.bf16.msra.mxu0 %v6664_v31  ;;  %3082 = vmatpush1.bf16.msra.mxu1 %v6681_v19 }
 0x9d7   :  { %3040 = vmatprep.subr.bf16.mxu0 %v6671_v26  ;;  %3083 = vmatprep.subr.bf16.mxu1 %v6686_v43 }
 0x9da   :  { %3041 = vmatpush1.bf16.msra.mxu0 %v6693_v25  ;;  %3084 = vmatpush1.bf16.msra.mxu1 %v6700_v59 }
 0x9db   :  { %3177 = vmatprep.subr.bf16.mxu0 %v6488_v50  ;;  %3220 = vmatprep.subr.bf16.mxu1 %v6528_v7 }
 0xa90   :  { %v2909_v22 = vpop.f32.mrb[36].mxu0  ;;  %v2952_v45 = vpop.f32.mrb[36].mxu1 }
 0xa91   :  { %v4401_v36 = vadd.f32 %v2909_v22, %v6759_v5  ;;  %v2911_v46 = vpop.f32.mrb[37].mxu0  ;;  %v2954_v49 = vpop.f32.mrb[37].mxu1  ;;  %v4433_v34 = vadd.f32 %v2952_v45, %v6775_v32 }
 0xa92   :  { %v4402_v47 = vadd.f32 %v2911_v46, %v6763_v40  ;;  %v2913_v51 = vpop.f32.mrb[38].mxu0  ;;  %v2956_v52 = vpop.f32.mrb[38].mxu1  ;;  %v4434_v57 = vadd.f32 %v2954_v49, %v6770_v23 }
 0xa93   :  { %v4252_v54 = vmul.f32 -1.442695, %v4401_v36  ;;  %v4403_v44 = vadd.f32 %v2913_v51, %v6759_v5  ;;  %v2915_v37 = vpop.f32.mrb[39].mxu0  ;;  %v2958_v17 = vpop.f32.mrb[39].mxu1  ;;  %v4435_v18 = vadd.f32 %v2956_v52, %v6775_v32 }
 0xa94   :  { %v4254_v30 = vmul.f32 -1.442695, %v4402_v47  ;;  %v4404_v10 = vadd.f32 %v2915_v37, %v6763_v40  ;;  %v4256_v39 = vmul.f32 -1.442695, %v4434_v57  ;;  %v4436_v41 = vadd.f32 %v2958_v17, %v6770_v23 }
 0xa95   :  { %5081 = vpow2.f32 %v4252_v54  ;;  %v4253_v60 = vmul.f32 -1.442695, %v4403_v44 }
 0xa96   :  { %5083 = vpow2.f32 %v4254_v30  ;;  %v4255_v56 = vmul.f32 -1.442695, %v4404_v10  ;;  %v4257_v22 = vmul.f32 -1.442695, %v4436_v41 }
 0xa97   :  { %5085 = vpow2.f32 %v4253_v60 }
 0xa98   :  { %5087 = vpow2.f32 %v4255_v56 }
 0xa99   :  { %5089 = vtanh.f32 %v4433_v34 }
 0xa9a   :  { %5091 = vpow2.f32 %v4256_v39 }
 0xa9b   :  { %5093 = vtanh.f32 %v4435_v18 }
 0xa9f   :  { %v5082_v42 = vpop.eup %5081 }
 0xaa0   :  { %v5084_v28 = vpop.eup %5083  ;;  %v2975_v61 = vadd.f32 1.0, %v5082_v42 }
 0xaa1   :  { %v2987_v36 = vadd.f32 1.0, %v5084_v28  ;;  %v5086_v46 = vpop.eup %5085 }
 0xaa2   :  { %5095 = vrcp.f32 %v2975_v61  ;;  %v2976_v49 = vadd.f32 1.0, %v5086_v46  ;;  %v5088_v47 = vpop.eup %5087 }
 0xaa3   :  { %5097 = vrcp.f32 %v2987_v36  ;;  %v2988_v45 = vadd.f32 1.0, %v5088_v47  ;;  %v5090_v51 = vpop.eup %5089 }
 0xaa4   :  { %5099 = vpow2.f32 %v4257_v22  ;;  %v5092_v54 = vpop.eup %5091 }
 0xaa5   :  { %5101 = vrcp.f32 %v2976_v49  ;;  %v5094_v52 = vpop.eup %5093  ;;  %v3001_v56 = vadd.f32 1.0, %v5092_v54 }
 0xaa6   :  { %5103 = vrcp.f32 %v2988_v45 }
 0xaa7   :  { %5105 = vrcp.f32 %v3001_v56 }
 0xaac   :  { %v5096_v44 = vpop.eup %5095 }
 0xaad   :  { %v5098_v37 = vpop.eup %5097  ;;  %v3009_v17 = vmul.f32 %v5096_v44, %v5090_v51 }
 0xaae   :  { %v5100_v30 = vpop.eup %5099  ;;  %v3007_v10 = vmul.f32 %v5098_v37, %v6781_v48 }
 0xaaf   :  { %v5102_v60 = vpop.eup %5101  ;;  %v3002_v41 = vadd.f32 1.0, %v5100_v30 }
 0xab0   :  { %v6830_v57 = vadd.f32 %v3009_v17, %v3007_v10  ;;  %v3010_v34 = vmul.f32 %v5102_v60, %v5094_v52  ;;  %v5104_v39 = vpop.eup %5103 }
 0xab1   :  { %v3008_v18 = vmul.f32 %v5104_v39, %v6784_v33  ;;  %v5106_v28 = vpop.eup %5105 }
 0xab2   :  { %5107 = vtanh.f32 %v6830_v57 }
 0xab3   :  { %v6834_v42 = vadd.f32 %v3010_v34, %v3008_v18  ;;  %5109 = vrcp.f32 %v3002_v41 }
 0xab5   :  { %5111 = vtanh.f32 %v6834_v42 }
 0xabc   :  { %v5108_v61 = vpop.eup %5107 }
 0xabd   :  { %v5110_v48 = vpop.eup %5109  ;;  %v3015_v36 = vmul.f32 %v5108_v61, %v5106_v28 }
 0xabf   :  { %v5112_v22 = vpop.eup %5111 }
 0xac0   :  { %v3016_v46 = vmul.f32 %v5112_v22, %v5110_v48 }
 0xac2   :  { %v3025_v49 = vpack.c.bf16 %v3016_v46, %v3015_v36 }
 0xac4   :  { %3059 = vmatmul.mubr.bf16.vlgmr.msra.gmra.mrb[40].mxu0 %v3025_v49  ;;  %3102 = vmatmul.mubr.bf16.vlgmr.msra.gmra.mrb[40].mxu1 %v3025_v49 }
 0xac5   :  { %3178 = vmatpush1.bf16.msra.mxu0 %v6494_v0  ;;  %3221 = vmatpush1.bf16.msra.mxu1 %v6533_v55 }
 0xac6   :  { %3179 = vmatprep.subr.bf16.mxu0 %v6540_v35  ;;  %3222 = vmatprep.subr.bf16.mxu1 %v6545_v53 }
 0xac7   :  { %3209 = vmatprep.mubr.bf16.mxu0 %v5394_v1  ;;  %3252 = vmatprep.mubr.bf16.mxu1 %v5394_v1 }
 0xac9   :  { %3180 = vmatpush1.bf16.msra.mxu0 %v6550_v15  ;;  %3223 = vmatpush1.bf16.msra.mxu1 %v6562_v58 }
 0xaca   :  { %3181 = vmatprep.subr.bf16.mxu0 %v6555_v62  ;;  %3224 = vmatprep.subr.bf16.mxu1 %v6573_v12 }
 0xacd   :  { %3182 = vmatpush1.bf16.msra.mxu0 %v6568_v11  ;;  %3225 = vmatpush1.bf16.msra.mxu1 %v6585_v2 }
 0xace   :  { %3183 = vmatprep.subr.bf16.mxu0 %v6579_v16  ;;  %3226 = vmatprep.subr.bf16.mxu1 %v6591_v3 }
 0xad1   :  { %3184 = vmatpush1.bf16.msra.mxu0 %v6597_v63  ;;  %3227 = vmatpush1.bf16.msra.mxu1 %v6609_v4 }
 0xad2   :  { %3185 = vmatprep.subr.bf16.mxu0 %v6603_v38  ;;  %3228 = vmatprep.subr.bf16.mxu1 %v6615_v8 }
 0xad5   :  { %3186 = vmatpush1.bf16.msra.mxu0 %v6621_v6  ;;  %3229 = vmatpush1.bf16.msra.mxu1 %v6633_v9 }
 0xad6   :  { %3187 = vmatprep.subr.bf16.mxu0 %v6627_v27  ;;  %3230 = vmatprep.subr.bf16.mxu1 %v6639_v13 }
 0xad9   :  { %3188 = vmatpush1.bf16.msra.mxu0 %v6645_v14  ;;  %3231 = vmatpush1.bf16.msra.mxu1 %v6657_v21 }
 0xada   :  { %3189 = vmatprep.subr.bf16.mxu0 %v6651_v20  ;;  %3232 = vmatprep.subr.bf16.mxu1 %v6676_v24 }
 0xadd   :  { %3190 = vmatpush1.bf16.msra.mxu0 %v6664_v31  ;;  %3233 = vmatpush1.bf16.msra.mxu1 %v6681_v19 }
 0xade   :  { %3191 = vmatprep.subr.bf16.mxu0 %v6671_v26  ;;  %3234 = vmatprep.subr.bf16.mxu1 %v6686_v43 }
 0xae1   :  { %3192 = vmatpush1.bf16.msra.mxu0 %v6693_v25  ;;  %3235 = vmatpush1.bf16.msra.mxu1 %v6700_v59 }
 0xae2   :  { %3328 = vmatprep.subr.bf16.mxu0 %v6488_v50  ;;  %3371 = vmatprep.subr.bf16.mxu1 %v6528_v7 }
 0xb97   :  { %v3060_v33 = vpop.f32.mrb[40].mxu0  ;;  %v3103_v47 = vpop.f32.mrb[40].mxu1 }
 0xb98   :  { %v4405_v45 = vadd.f32 %v3060_v33, %v6759_v5  ;;  %v3062_v51 = vpop.f32.mrb[41].mxu0  ;;  %v3105_v54 = vpop.f32.mrb[41].mxu1  ;;  %v4437_v18 = vadd.f32 %v3103_v47, %v6775_v32 }
 0xb99   :  { %v4406_v52 = vadd.f32 %v3062_v51, %v6763_v40  ;;  %v3064_v44 = vpop.f32.mrb[42].mxu0  ;;  %v3107_v37 = vpop.f32.mrb[42].mxu1  ;;  %v4438_v41 = vadd.f32 %v3105_v54, %v6770_v23 }
 0xb9a   :  { %v4258_v17 = vmul.f32 -1.442695, %v4405_v45  ;;  %v4407_v30 = vadd.f32 %v3064_v44, %v6759_v5  ;;  %v3066_v10 = vpop.f32.mrb[43].mxu0  ;;  %v3109_v60 = vpop.f32.mrb[43].mxu1  ;;  %v4439_v48 = vadd.f32 %v3107_v37, %v6775_v32 }
 0xb9b   :  { %v4260_v56 = vmul.f32 -1.442695, %v4406_v52  ;;  %v4408_v50 = vadd.f32 %v3066_v10, %v6763_v40  ;;  %v4262_v28 = vmul.f32 -1.442695, %v4438_v41  ;;  %v4440_v61 = vadd.f32 %v3109_v60, %v6770_v23 }
 0xb9c   :  { %5113 = vpow2.f32 %v4258_v17  ;;  %v4259_v34 = vmul.f32 -1.442695, %v4407_v30 }
 0xb9d   :  { %5115 = vpow2.f32 %v4260_v56  ;;  %v4261_v39 = vmul.f32 -1.442695, %v4408_v50  ;;  %v4263_v49 = vmul.f32 -1.442695, %v4440_v61 }
 0xb9e   :  { %5117 = vpow2.f32 %v4259_v34 }
 0xb9f   :  { %5119 = vpow2.f32 %v4261_v39 }
 0xba0   :  { %5121 = vtanh.f32 %v4437_v18 }
 0xba1   :  { %5123 = vpow2.f32 %v4262_v28 }
 0xba2   :  { %5125 = vtanh.f32 %v4439_v48 }
 0xba6   :  { %v5114_v22 = vpop.eup %5113 }
 0xba7   :  { %v5116_v36 = vpop.eup %5115  ;;  %v3126_v46 = vadd.f32 1.0, %v5114_v22 }
 0xba8   :  { %v3138_v33 = vadd.f32 1.0, %v5116_v36  ;;  %v5118_v45 = vpop.eup %5117 }
 0xba9   :  { %5127 = vrcp.f32 %v3126_v46  ;;  %v3127_v51 = vadd.f32 1.0, %v5118_v45  ;;  %v5120_v54 = vpop.eup %5119 }
 0xbaa   :  { %5129 = vrcp.f32 %v3138_v33  ;;  %v3139_v47 = vadd.f32 1.0, %v5120_v54  ;;  %v5122_v52 = vpop.eup %5121 }
 0xbab   :  { %5131 = vpow2.f32 %v4263_v49  ;;  %v5124_v44 = vpop.eup %5123 }
 0xbac   :  { %5133 = vrcp.f32 %v3127_v51  ;;  %v5126_v37 = vpop.eup %5125  ;;  %v3152_v34 = vadd.f32 1.0, %v5124_v44 }
 0xbad   :  { %5135 = vrcp.f32 %v3139_v47 }
 0xbae   :  { %5137 = vrcp.f32 %v3152_v34 }
 0xbb3   :  { %v5128_v17 = vpop.eup %5127 }
 0xbb4   :  { %v5130_v30 = vpop.eup %5129  ;;  %v3160_v10 = vmul.f32 %v5128_v17, %v5122_v52 }
 0xbb5   :  { %v5132_v60 = vpop.eup %5131  ;;  %v3158_v56 = vmul.f32 %v5130_v30, %v6830_v57 }
 0xbb6   :  { %v5134_v50 = vpop.eup %5133  ;;  %v3153_v28 = vadd.f32 1.0, %v5132_v60 }
 0xbb7   :  { %v6880_v39 = vadd.f32 %v3160_v10, %v3158_v56  ;;  %v3161_v41 = vmul.f32 %v5134_v50, %v5126_v37  ;;  %v5136_v18 = vpop.eup %5135 }
 0xbb8   :  { %v3159_v61 = vmul.f32 %v5136_v18, %v6834_v42  ;;  %v5138_v22 = vpop.eup %5137 }
 0xbb9   :  { %5139 = vtanh.f32 %v6880_v39 }
 0xbba   :  { %v6884_v48 = vadd.f32 %v3161_v41, %v3159_v61  ;;  %5141 = vrcp.f32 %v3153_v28 }
 0xbbc   :  { %5143 = vtanh.f32 %v6884_v48 }
 0xbc3   :  { %v5140_v36 = vpop.eup %5139 }
 0xbc4   :  { %v5142_v57 = vpop.eup %5141  ;;  %v3166_v49 = vmul.f32 %v5140_v36, %v5138_v22 }
 0xbc6   :  { %v5144_v46 = vpop.eup %5143 }
 0xbc7   :  { %v3167_v33 = vmul.f32 %v5144_v46, %v5142_v57 }
 0xbc9   :  { %v3176_v45 = vpack.c.bf16 %v3167_v33, %v3166_v49  ;;  %v6951_v49 = vld [vmem:[%s7297_s5 + $0x8] ss:$16 sps:$4 sm:$0xff]   ;;  %v6957_v33 = vld [vmem:[%s7297_s5 + $0x24] ss:$16 sps:$4 sm:$0xff]  }
 0xbcb   :  { %3210 = vmatmul.mubr.bf16.vlgmr.msra.gmra.mrb[44].mxu0 %v3176_v45  ;;  %3253 = vmatmul.mubr.bf16.vlgmr.msra.gmra.mrb[44].mxu1 %v3176_v45  ;;  %v6963_v45 = vld [vmem:[%s7297_s5 + $0x2c] ss:$16 sps:$4 sm:$0xff]  }
 0xbcc   :  { %3329 = vmatpush1.bf16.msra.mxu0 %v6494_v0  ;;  %3372 = vmatpush1.bf16.msra.mxu1 %v6533_v55  ;;  %v6922_v0 = vld [vmem:[%s7297_s5 + $0x4] ss:$16 sps:$4 sm:$0xff]  }
 0xbcd   :  { %3330 = vmatprep.subr.bf16.mxu0 %v6540_v35  ;;  %3373 = vmatprep.subr.bf16.mxu1 %v6545_v53 }
 0xbce   :  { %3360 = vmatprep.mubr.bf16.mxu0 %v5394_v1  ;;  %3403 = vmatprep.mubr.bf16.mxu1 %v5394_v1 }
 0xbd0   :  { %3331 = vmatpush1.bf16.msra.mxu0 %v6550_v15  ;;  %3374 = vmatpush1.bf16.msra.mxu1 %v6562_v58 }
 0xbd1   :  { %3332 = vmatprep.subr.bf16.mxu0 %v6555_v62  ;;  %3375 = vmatprep.subr.bf16.mxu1 %v6573_v12 }
 0xbd4   :  { %3333 = vmatpush1.bf16.msra.mxu0 %v6568_v11  ;;  %3376 = vmatpush1.bf16.msra.mxu1 %v6585_v2 }
 0xbd5   :  { %3334 = vmatprep.subr.bf16.mxu0 %v6579_v16  ;;  %3377 = vmatprep.subr.bf16.mxu1 %v6591_v3 }
 0xbd8   :  { %3335 = vmatpush1.bf16.msra.mxu0 %v6597_v63  ;;  %3378 = vmatpush1.bf16.msra.mxu1 %v6609_v4 }
 0xbd9   :  { %3336 = vmatprep.subr.bf16.mxu0 %v6603_v38  ;;  %3379 = vmatprep.subr.bf16.mxu1 %v6615_v8 }
 0xbdc   :  { %3337 = vmatpush1.bf16.msra.mxu0 %v6621_v6  ;;  %3380 = vmatpush1.bf16.msra.mxu1 %v6633_v9 }
 0xbdd   :  { %3338 = vmatprep.subr.bf16.mxu0 %v6627_v27  ;;  %3381 = vmatprep.subr.bf16.mxu1 %v6639_v13 }
 0xbe0   :  { %3339 = vmatpush1.bf16.msra.mxu0 %v6645_v14  ;;  %3382 = vmatpush1.bf16.msra.mxu1 %v6657_v21 }
 0xbe1   :  { %3340 = vmatprep.subr.bf16.mxu0 %v6651_v20  ;;  %3383 = vmatprep.subr.bf16.mxu1 %v6676_v24 }
 0xbe4   :  { %3341 = vmatpush1.bf16.msra.mxu0 %v6664_v31  ;;  %3384 = vmatpush1.bf16.msra.mxu1 %v6681_v19 }
 0xbe5   :  { %3342 = vmatprep.subr.bf16.mxu0 %v6671_v26  ;;  %3385 = vmatprep.subr.bf16.mxu1 %v6686_v43 }
 0xbe8   :  { %3343 = vmatpush1.bf16.msra.mxu0 %v6693_v25  ;;  %3386 = vmatpush1.bf16.msra.mxu1 %v6700_v59 }
 0xbe9   :  { %3479 = vmatprep.subr.bf16.mxu0 %v6922_v0  ;;  %3522 = vmatprep.subr.bf16.mxu1 %v6528_v7 }
 0xc9e   :  { %v3211_v55 = vpop.f32.mrb[44].mxu0  ;;  %v3254_v35 = vpop.f32.mrb[44].mxu1 }
 0xc9f   :  { %v4409_v53 = vadd.f32 %v3211_v55, %v6759_v5  ;;  %v3213_v15 = vpop.f32.mrb[45].mxu0  ;;  %v3256_v62 = vpop.f32.mrb[45].mxu1  ;;  %v4441_v27 = vadd.f32 %v3254_v35, %v6775_v32  ;;  %v6971_v55 = vld [vmem:[%s7297_s5 + $0x20] ss:$16 sps:$4 sm:$0xff]   ;;  %v6977_v35 = vld [vmem:[%s7297_s5 + $0x28] ss:$16 sps:$4 sm:$0xff]  }
 0xca0   :  { %v4410_v58 = vadd.f32 %v3213_v15, %v6763_v40  ;;  %v3215_v11 = vpop.f32.mrb[46].mxu0  ;;  %v3258_v12 = vpop.f32.mrb[46].mxu1  ;;  %v4442_v6 = vadd.f32 %v3256_v62, %v6770_v23  ;;  %v6989_v15 = vld [vmem:[%s7297_s5 + $0x4c] ss:$16 sps:$4 sm:$0xff]   ;;  %v6995_v62 = vld [vmem:[%s7297_s5 + $0x40] ss:$16 sps:$4 sm:$0xff]  }
 0xca1   :  { %v4264_v16 = vmul.f32 -1.442695, %v4409_v53  ;;  %v4411_v2 = vadd.f32 %v3215_v11, %v6759_v5  ;;  %v3217_v3 = vpop.f32.mrb[47].mxu0  ;;  %v3260_v63 = vpop.f32.mrb[47].mxu1  ;;  %v4443_v14 = vadd.f32 %v3258_v12, %v6775_v32  ;;  %v6983_v53 = vld [vmem:[%s7297_s5 + $0x44] ss:$16 sps:$4 sm:$0xff]  }
 0xca2   :  { %v4266_v38 = vmul.f32 -1.442695, %v4410_v58  ;;  %v4412_v4 = vadd.f32 %v3217_v3, %v6763_v40  ;;  %v4268_v9 = vmul.f32 -1.442695, %v4442_v6  ;;  %v4444_v13 = vadd.f32 %v3260_v63, %v6770_v23  ;;  %v7001_v58 = vld [vmem:[%s7297_s5 + $0x48] ss:$16 sps:$4 sm:$0xff]  }
 0xca3   :  { %5145 = vpow2.f32 %v4264_v16  ;;  %v4265_v7 = vmul.f32 -1.442695, %v4411_v2  ;;  %v7007_v11 = vld [vmem:[%s7297_s5 + $0x64] ss:$16 sps:$4 sm:$0xff]   ;;  %v7013_v12 = vld [vmem:[%s7297_s5 + $0x6c] ss:$16 sps:$4 sm:$0xff]  }
 0xca4   :  { %5147 = vpow2.f32 %v4266_v38  ;;  %v4267_v8 = vmul.f32 -1.442695, %v4412_v4  ;;  %v4269_v26 = vmul.f32 -1.442695, %v4444_v13  ;;  %v7019_v16 = vld [vmem:[%s7297_s5 + $0x60] ss:$16 sps:$4 sm:$0xff]  }
 0xca5   :  { %5149 = vpow2.f32 %v4265_v7  ;;  %v7025_v2 = vld [vmem:[%s7297_s5 + $0x68] ss:$16 sps:$4 sm:$0xff]   ;;  %v7031_v3 = vld [vmem:[%s7297_s5 + $0x84] ss:$16 sps:$4 sm:$0xff]   ;;  %v7037_v63 = vld [vmem:[%s7297_s5 + $0x8c] ss:$16 sps:$4 sm:$0xff]  }
 0xca6   :  { %5151 = vpow2.f32 %v4267_v8  ;;  %v7043_v38 = vld [vmem:[%s7297_s5 + $0x80] ss:$16 sps:$4 sm:$0xff]   ;;  %v7049_v4 = vld [vmem:[%s7297_s5 + $0x88] ss:$16 sps:$4 sm:$0xff]   ;;  %v7055_v7 = vld [vmem:[%s7297_s5 + $0xa4] ss:$16 sps:$4 sm:$0xff]  }
 0xca7   :  { %5153 = vtanh.f32 %v4441_v27  ;;  %v7061_v8 = vld [vmem:[%s7297_s5 + $0xac] ss:$16 sps:$4 sm:$0xff]   ;;  %v7067_v6 = vld [vmem:[%s7297_s5 + $0xa0] ss:$16 sps:$4 sm:$0xff]   ;;  %v7073_v27 = vld [vmem:[%s7297_s5 + $0xa8] ss:$16 sps:$4 sm:$0xff]  }
 0xca8   :  { %5155 = vpow2.f32 %v4268_v9  ;;  %v7079_v9 = vld [vmem:[%s7297_s5 + $0xc4] ss:$16 sps:$4 sm:$0xff]   ;;  %v7085_v13 = vld [vmem:[%s7297_s5 + $0xcc] ss:$16 sps:$4 sm:$0xff]  }
 0xca9   :  { %5157 = vtanh.f32 %v4443_v14  ;;  %v7091_v14 = vld [vmem:[%s7297_s5 + $0xc0] ss:$16 sps:$4 sm:$0xff]  }
 0xcad   :  { %v5146_v20 = vpop.eup %5145 }
 0xcae   :  { %v5148_v21 = vpop.eup %5147  ;;  %v3277_v31 = vadd.f32 1.0, %v5146_v20  ;;  %v7097_v20 = vld [vmem:[%s7297_s5 + $0xc8] ss:$16 sps:$4 sm:$0xff]  }
 0xcaf   :  { %v3289_v24 = vadd.f32 1.0, %v5148_v21  ;;  %v5150_v19 = vpop.eup %5149  ;;  %v7103_v21 = vld [vmem:[%s7297_s5 + $0xe4] ss:$16 sps:$4 sm:$0xff]  }
 0xcb0   :  { %5159 = vrcp.f32 %v3277_v31  ;;  %v3278_v43 = vadd.f32 1.0, %v5150_v19  ;;  %v5152_v25 = vpop.eup %5151  ;;  %v7109_v31 = vld [vmem:[%s7297_s5 + $0xec] ss:$16 sps:$4 sm:$0xff]  }
 0xcb1   :  { %5161 = vrcp.f32 %v3289_v24  ;;  %v3290_v59 = vadd.f32 1.0, %v5152_v25  ;;  %v5154_v42 = vpop.eup %5153  ;;  %v7121_v24 = vld [vmem:[%s7297_s5 + $0xe8] ss:$16 sps:$4 sm:$0xff]   ;;  %v7128_v19 = vld [vmem:[%s7297_s5 + $0xc] ss:$16 sps:$4 sm:$0xff]  }
 0xcb2   :  { %5163 = vpow2.f32 %v4269_v26  ;;  %v5156_v51 = vpop.eup %5155  ;;  %v7115_v26 = vld [vmem:[%s7297_s5 + $0xe0] ss:$16 sps:$4 sm:$0xff]  }
 0xcb3   :  { %5165 = vrcp.f32 %v3278_v43  ;;  %v5158_v54 = vpop.eup %5157  ;;  %v3303_v10 = vadd.f32 1.0, %v5156_v51 }
 0xcb4   :  { %5167 = vrcp.f32 %v3290_v59 }
 0xcb5   :  { %5169 = vrcp.f32 %v3303_v10 }
 0xcba   :  { %v5160_v47 = vpop.eup %5159 }
 0xcbb   :  { %v5162_v52 = vpop.eup %5161  ;;  %v3311_v44 = vmul.f32 %v5160_v47, %v5154_v42 }
 0xcbc   :  { %v5164_v37 = vpop.eup %5163  ;;  %v3309_v17 = vmul.f32 %v5162_v52, %v6880_v39 }
 0xcbd   :  { %v5166_v30 = vpop.eup %5165  ;;  %v3304_v34 = vadd.f32 1.0, %v5164_v37 }
 0xcbe   :  { %v6935_v60 = vadd.f32 %v3311_v44, %v3309_v17  ;;  %v3312_v56 = vmul.f32 %v5166_v30, %v5158_v54  ;;  %v5168_v50 = vpop.eup %5167 }
 0xcbf   :  { %v3310_v41 = vmul.f32 %v5168_v50, %v6884_v48  ;;  %v5170_v28 = vpop.eup %5169  ;;  %v6945_v48 = vld [vmem:[%s7297_s5] ss:$16 sps:$4 sm:$0xff]  }
 0xcc0   :  { %5171 = vtanh.f32 %v6935_v60 }
 0xcc1   :  { %v6939_v18 = vadd.f32 %v3312_v56, %v3310_v41  ;;  %5173 = vrcp.f32 %v3304_v34 }
 0xcc3   :  { %5175 = vtanh.f32 %v6939_v18 }
 0xcca   :  { %v5172_v61 = vpop.eup %5171 }
 0xccb   :  { %v5174_v39 = vpop.eup %5173  ;;  %v3317_v36 = vmul.f32 %v5172_v61, %v5170_v28 }
 0xccd   :  { %v5176_v22 = vpop.eup %5175 }
 0xcce   :  { %v3318_v57 = vmul.f32 %v5176_v22, %v5174_v39 }
 0xcd0   :  { %v3327_v46 = vpack.c.bf16 %v3318_v57, %v3317_v36 }
 0xcd2   :  { %3361 = vmatmul.mubr.bf16.vlgmr.msra.gmra.mrb[48].mxu0 %v3327_v46  ;;  %3404 = vmatmul.mubr.bf16.vlgmr.msra.gmra.mrb[48].mxu1 %v3327_v46 }
 0xcd3   :  { %3480 = vmatpush1.bf16.msra.mxu0 %v6945_v48  ;;  %3523 = vmatpush1.bf16.msra.mxu1 %v6951_v49 }
 0xcd4   :  { %3481 = vmatprep.subr.bf16.mxu0 %v6957_v33  ;;  %3524 = vmatprep.subr.bf16.mxu1 %v6963_v45 }
 0xcd5   :  { %3511 = vmatprep.mubr.bf16.mxu0 %v5394_v1  ;;  %3554 = vmatprep.mubr.bf16.mxu1 %v5394_v1 }
 0xcd7   :  { %3482 = vmatpush1.bf16.msra.mxu0 %v6971_v55  ;;  %3525 = vmatpush1.bf16.msra.mxu1 %v6977_v35 }
 0xcd8   :  { %3483 = vmatprep.subr.bf16.mxu0 %v6983_v53  ;;  %3526 = vmatprep.subr.bf16.mxu1 %v6989_v15 }
 0xcdb   :  { %3484 = vmatpush1.bf16.msra.mxu0 %v6995_v62  ;;  %3527 = vmatpush1.bf16.msra.mxu1 %v7001_v58 }
 0xcdc   :  { %3485 = vmatprep.subr.bf16.mxu0 %v7007_v11  ;;  %3528 = vmatprep.subr.bf16.mxu1 %v7013_v12 }
 0xcdf   :  { %3486 = vmatpush1.bf16.msra.mxu0 %v7019_v16  ;;  %3529 = vmatpush1.bf16.msra.mxu1 %v7025_v2 }
 0xce0   :  { %3487 = vmatprep.subr.bf16.mxu0 %v7031_v3  ;;  %3530 = vmatprep.subr.bf16.mxu1 %v7037_v63 }
 0xce3   :  { %3488 = vmatpush1.bf16.msra.mxu0 %v7043_v38  ;;  %3531 = vmatpush1.bf16.msra.mxu1 %v7049_v4 }
 0xce4   :  { %3489 = vmatprep.subr.bf16.mxu0 %v7055_v7  ;;  %3532 = vmatprep.subr.bf16.mxu1 %v7061_v8 }
 0xce7   :  { %3490 = vmatpush1.bf16.msra.mxu0 %v7067_v6  ;;  %3533 = vmatpush1.bf16.msra.mxu1 %v7073_v27 }
 0xce8   :  { %3491 = vmatprep.subr.bf16.mxu0 %v7079_v9  ;;  %3534 = vmatprep.subr.bf16.mxu1 %v7085_v13 }
 0xceb   :  { %3492 = vmatpush1.bf16.msra.mxu0 %v7091_v14  ;;  %3535 = vmatpush1.bf16.msra.mxu1 %v7097_v20 }
 0xcec   :  { %3493 = vmatprep.subr.bf16.mxu0 %v7103_v21  ;;  %3536 = vmatprep.subr.bf16.mxu1 %v7109_v31 }
 0xcef   :  { %3494 = vmatpush1.bf16.msra.mxu0 %v7115_v26  ;;  %3537 = vmatpush1.bf16.msra.mxu1 %v7121_v24 }
 0xcf0   :  { %3630 = vmatprep.subr.bf16.mxu0 %v6922_v0  ;;  %3673 = vmatprep.subr.bf16.mxu1 %v7128_v19 }
 0xda5   :  { %v3362_v43 = vpop.f32.mrb[48].mxu0  ;;  %v3405_v25 = vpop.f32.mrb[48].mxu1 }
 0xda6   :  { %v4413_v59 = vadd.f32 %v3362_v43, %v6759_v5  ;;  %v3364_v42 = vpop.f32.mrb[49].mxu0  ;;  %v3407_v51 = vpop.f32.mrb[49].mxu1  ;;  %v4445_v28 = vadd.f32 %v3405_v25, %v6775_v32 }
 0xda7   :  { %v4414_v54 = vadd.f32 %v3364_v42, %v6763_v40  ;;  %v3366_v47 = vpop.f32.mrb[50].mxu0  ;;  %v3409_v52 = vpop.f32.mrb[50].mxu1  ;;  %v4446_v41 = vadd.f32 %v3407_v51, %v6770_v23 }
 0xda8   :  { %v4270_v44 = vmul.f32 -1.442695, %v4413_v59  ;;  %v4415_v37 = vadd.f32 %v3366_v47, %v6759_v5  ;;  %v3368_v17 = vpop.f32.mrb[51].mxu0  ;;  %v3411_v30 = vpop.f32.mrb[51].mxu1  ;;  %v4447_v22 = vadd.f32 %v3409_v52, %v6775_v32 }
 0xda9   :  { %v4272_v10 = vmul.f32 -1.442695, %v4414_v54  ;;  %v4416_v56 = vadd.f32 %v3368_v17, %v6763_v40  ;;  %v4274_v61 = vmul.f32 -1.442695, %v4446_v41  ;;  %v4448_v39 = vadd.f32 %v3411_v30, %v6770_v23 }
 0xdaa   :  { %5177 = vpow2.f32 %v4270_v44  ;;  %v4271_v50 = vmul.f32 -1.442695, %v4415_v37 }
 0xdab   :  { %5179 = vpow2.f32 %v4272_v10  ;;  %v4273_v34 = vmul.f32 -1.442695, %v4416_v56  ;;  %v4275_v43 = vmul.f32 -1.442695, %v4448_v39 }
 0xdac   :  { %5181 = vpow2.f32 %v4271_v50 }
 0xdad   :  { %5183 = vpow2.f32 %v4273_v34 }
 0xdae   :  { %5185 = vtanh.f32 %v4445_v28 }
 0xdaf   :  { %5187 = vpow2.f32 %v4274_v61 }
 0xdb0   :  { %5189 = vtanh.f32 %v4447_v22 }
 0xdb4   :  { %v5178_v36 = vpop.eup %5177 }
 0xdb5   :  { %v5180_v57 = vpop.eup %5179  ;;  %v3428_v46 = vadd.f32 1.0, %v5178_v36 }
 0xdb6   :  { %v3440_v59 = vadd.f32 1.0, %v5180_v57  ;;  %v5182_v42 = vpop.eup %5181 }
 0xdb7   :  { %5191 = vrcp.f32 %v3428_v46  ;;  %v3429_v51 = vadd.f32 1.0, %v5182_v42  ;;  %v5184_v54 = vpop.eup %5183 }
 0xdb8   :  { %5193 = vrcp.f32 %v3440_v59  ;;  %v3441_v25 = vadd.f32 1.0, %v5184_v54  ;;  %v5186_v47 = vpop.eup %5185 }
 0xdb9   :  { %5195 = vpow2.f32 %v4275_v43  ;;  %v5188_v44 = vpop.eup %5187 }
 0xdba   :  { %5197 = vrcp.f32 %v3429_v51  ;;  %v5190_v52 = vpop.eup %5189  ;;  %v3454_v34 = vadd.f32 1.0, %v5188_v44 }
 0xdbb   :  { %5199 = vrcp.f32 %v3441_v25 }
 0xdbc   :  { %5201 = vrcp.f32 %v3454_v34 }
 0xdc1   :  { %v5192_v37 = vpop.eup %5191 }
 0xdc2   :  { %v5194_v17 = vpop.eup %5193  ;;  %v3462_v30 = vmul.f32 %v5192_v37, %v5186_v47 }
 0xdc3   :  { %v5196_v10 = vpop.eup %5195  ;;  %v3460_v56 = vmul.f32 %v5194_v17, %v6935_v60 }
 0xdc4   :  { %v5198_v50 = vpop.eup %5197  ;;  %v3455_v39 = vadd.f32 1.0, %v5196_v10 }
 0xdc5   :  { %v7140_v41 = vadd.f32 %v3462_v30, %v3460_v56  ;;  %v3463_v28 = vmul.f32 %v5198_v50, %v5190_v52  ;;  %v5200_v61 = vpop.eup %5199 }
 0xdc6   :  { %v3461_v22 = vmul.f32 %v5200_v61, %v6939_v18  ;;  %v5202_v57 = vpop.eup %5201 }
 0xdc7   :  { %5203 = vtanh.f32 %v7140_v41 }
 0xdc8   :  { %v7144_v36 = vadd.f32 %v3463_v28, %v3461_v22  ;;  %5205 = vrcp.f32 %v3455_v39 }
 0xdca   :  { %5207 = vtanh.f32 %v7144_v36 }
 0xdd1   :  { %v5204_v46 = vpop.eup %5203 }
 0xdd2   :  { %v5206_v60 = vpop.eup %5205  ;;  %v3468_v59 = vmul.f32 %v5204_v46, %v5202_v57 }
 0xdd4   :  { %v5208_v43 = vpop.eup %5207 }
 0xdd5   :  { %v3469_v42 = vmul.f32 %v5208_v43, %v5206_v60 }
 0xdd7   :  { %v3478_v51 = vpack.c.bf16 %v3469_v42, %v3468_v59 }
 0xdd9   :  { %3512 = vmatmul.mubr.bf16.vlgmr.msra.gmra.mrb[52].mxu0 %v3478_v51  ;;  %3555 = vmatmul.mubr.bf16.vlgmr.msra.gmra.mrb[52].mxu1 %v3478_v51 }
 0xdda   :  { %3631 = vmatpush1.bf16.msra.mxu0 %v6945_v48  ;;  %3674 = vmatpush1.bf16.msra.mxu1 %v6951_v49 }
 0xddb   :  { %3632 = vmatprep.subr.bf16.mxu0 %v6957_v33  ;;  %3675 = vmatprep.subr.bf16.mxu1 %v6963_v45 }
 0xddc   :  { %3662 = vmatprep.mubr.bf16.mxu0 %v5394_v1  ;;  %3705 = vmatprep.mubr.bf16.mxu1 %v5394_v1 }
 0xdde   :  { %3633 = vmatpush1.bf16.msra.mxu0 %v6971_v55  ;;  %3676 = vmatpush1.bf16.msra.mxu1 %v6977_v35 }
 0xddf   :  { %3634 = vmatprep.subr.bf16.mxu0 %v6983_v53  ;;  %3677 = vmatprep.subr.bf16.mxu1 %v6989_v15 }
 0xde2   :  { %3635 = vmatpush1.bf16.msra.mxu0 %v6995_v62  ;;  %3678 = vmatpush1.bf16.msra.mxu1 %v7001_v58 }
 0xde3   :  { %3636 = vmatprep.subr.bf16.mxu0 %v7007_v11  ;;  %3679 = vmatprep.subr.bf16.mxu1 %v7013_v12 }
 0xde6   :  { %3637 = vmatpush1.bf16.msra.mxu0 %v7019_v16  ;;  %3680 = vmatpush1.bf16.msra.mxu1 %v7025_v2 }
 0xde7   :  { %3638 = vmatprep.subr.bf16.mxu0 %v7031_v3  ;;  %3681 = vmatprep.subr.bf16.mxu1 %v7037_v63 }
 0xdea   :  { %3639 = vmatpush1.bf16.msra.mxu0 %v7043_v38  ;;  %3682 = vmatpush1.bf16.msra.mxu1 %v7049_v4 }
 0xdeb   :  { %3640 = vmatprep.subr.bf16.mxu0 %v7055_v7  ;;  %3683 = vmatprep.subr.bf16.mxu1 %v7061_v8 }
 0xdee   :  { %3641 = vmatpush1.bf16.msra.mxu0 %v7067_v6  ;;  %3684 = vmatpush1.bf16.msra.mxu1 %v7073_v27 }
 0xdef   :  { %3642 = vmatprep.subr.bf16.mxu0 %v7079_v9  ;;  %3685 = vmatprep.subr.bf16.mxu1 %v7085_v13 }
 0xdf2   :  { %3643 = vmatpush1.bf16.msra.mxu0 %v7091_v14  ;;  %3686 = vmatpush1.bf16.msra.mxu1 %v7097_v20 }
 0xdf3   :  { %3644 = vmatprep.subr.bf16.mxu0 %v7103_v21  ;;  %3687 = vmatprep.subr.bf16.mxu1 %v7109_v31 }
 0xdf6   :  { %3645 = vmatpush1.bf16.msra.mxu0 %v7115_v26  ;;  %3688 = vmatpush1.bf16.msra.mxu1 %v7121_v24 }
 0xdf7   :  { %3781 = vmatprep.subr.bf16.mxu0 %v6922_v0  ;;  %3824 = vmatprep.subr.bf16.mxu1 %v7128_v19 }
 0xeac   :  { %v3513_v18 = vpop.f32.mrb[52].mxu0  ;;  %v3556_v54 = vpop.f32.mrb[52].mxu1 }
 0xead   :  { %v4417_v25 = vadd.f32 %v3513_v18, %v6759_v5  ;;  %v3515_v47 = vpop.f32.mrb[53].mxu0  ;;  %v3558_v44 = vpop.f32.mrb[53].mxu1  ;;  %v4449_v39 = vadd.f32 %v3556_v54, %v6775_v32 }
 0xeae   :  { %v4418_v52 = vadd.f32 %v3515_v47, %v6763_v40  ;;  %v3517_v37 = vpop.f32.mrb[54].mxu0  ;;  %v3560_v17 = vpop.f32.mrb[54].mxu1  ;;  %v4450_v61 = vadd.f32 %v3558_v44, %v6770_v23 }
 0xeaf   :  { %v4276_v30 = vmul.f32 -1.442695, %v4417_v25  ;;  %v4419_v10 = vadd.f32 %v3517_v37, %v6759_v5  ;;  %v3519_v56 = vpop.f32.mrb[55].mxu0  ;;  %v3562_v50 = vpop.f32.mrb[55].mxu1  ;;  %v4451_v46 = vadd.f32 %v3560_v17, %v6775_v32 }
 0xeb0   :  { %v4278_v34 = vmul.f32 -1.442695, %v4418_v52  ;;  %v4420_v0 = vadd.f32 %v3519_v56, %v6763_v40  ;;  %v4280_v22 = vmul.f32 -1.442695, %v4450_v61  ;;  %v4452_v57 = vadd.f32 %v3562_v50, %v6770_v23 }
 0xeb1   :  { %5209 = vpow2.f32 %v4276_v30  ;;  %v4277_v19 = vmul.f32 -1.442695, %v4419_v10 }
 0xeb2   :  { %5211 = vpow2.f32 %v4278_v34  ;;  %v4279_v28 = vmul.f32 -1.442695, %v4420_v0  ;;  %v4281_v42 = vmul.f32 -1.442695, %v4452_v57 }
 0xeb3   :  { %5213 = vpow2.f32 %v4277_v19 }
 0xeb4   :  { %5215 = vpow2.f32 %v4279_v28 }
 0xeb5   :  { %5217 = vtanh.f32 %v4449_v39 }
 0xeb6   :  { %5219 = vpow2.f32 %v4280_v22 }
 0xeb7   :  { %5221 = vtanh.f32 %v4451_v46 }
 0xebb   :  { %v5210_v60 = vpop.eup %5209 }
 0xebc   :  { %v5212_v43 = vpop.eup %5211  ;;  %v3579_v59 = vadd.f32 1.0, %v5210_v60 }
 0xebd   :  { %v3591_v51 = vadd.f32 1.0, %v5212_v43  ;;  %v5214_v18 = vpop.eup %5213 }
 0xebe   :  { %5223 = vrcp.f32 %v3579_v59  ;;  %v3580_v25 = vadd.f32 1.0, %v5214_v18  ;;  %v5216_v47 = vpop.eup %5215 }
 0xebf   :  { %5225 = vrcp.f32 %v3591_v51  ;;  %v3592_v54 = vadd.f32 1.0, %v5216_v47  ;;  %v5218_v44 = vpop.eup %5217 }
 0xec0   :  { %5227 = vpow2.f32 %v4281_v42  ;;  %v5220_v52 = vpop.eup %5219 }
 0xec1   :  { %5229 = vrcp.f32 %v3580_v25  ;;  %v5222_v37 = vpop.eup %5221  ;;  %v3605_v0 = vadd.f32 1.0, %v5220_v52 }
 0xec2   :  { %5231 = vrcp.f32 %v3592_v54 }
 0xec3   :  { %5233 = vrcp.f32 %v3605_v0 }
 0xec8   :  { %v5224_v17 = vpop.eup %5223 }
 0xec9   :  { %v5226_v30 = vpop.eup %5225  ;;  %v3613_v10 = vmul.f32 %v5224_v17, %v5218_v44 }
 0xeca   :  { %v5228_v56 = vpop.eup %5227  ;;  %v3611_v50 = vmul.f32 %v5226_v30, %v7140_v41 }
 0xecb   :  { %v5230_v34 = vpop.eup %5229  ;;  %v3606_v39 = vadd.f32 1.0, %v5228_v56 }
 0xecc   :  { %v7190_v19 = vadd.f32 %v3613_v10, %v3611_v50  ;;  %v3614_v28 = vmul.f32 %v5230_v34, %v5222_v37  ;;  %v5232_v61 = vpop.eup %5231 }
 0xecd   :  { %v3612_v22 = vmul.f32 %v5232_v61, %v7144_v36  ;;  %v5234_v46 = vpop.eup %5233 }
 0xece   :  { %5235 = vtanh.f32 %v7190_v19 }
 0xecf   :  { %v7194_v57 = vadd.f32 %v3614_v28, %v3612_v22  ;;  %5237 = vrcp.f32 %v3606_v39 }
 0xed1   :  { %5239 = vtanh.f32 %v7194_v57 }
 0xed8   :  { %v5236_v60 = vpop.eup %5235 }
 0xed9   :  { %v5238_v41 = vpop.eup %5237  ;;  %v3619_v59 = vmul.f32 %v5236_v60, %v5234_v46 }
 0xedb   :  { %v5240_v43 = vpop.eup %5239 }
 0xedc   :  { %v3620_v42 = vmul.f32 %v5240_v43, %v5238_v41  ;;  %v5395_v41 = vmov 0.0   ;;  %v4786_v43 = vld [vmem:[%s7299_s7 + $0x8] sm:$0xff]  }
 0xede   :  { %v3629_v51 = vpack.c.bf16 %v3620_v42, %v3619_v59  ;;  %v4787_v59 = vld [vmem:[%s7299_s7 + $0x10] sm:$0xff]   ;;  %v4788_v42 = vld [vmem:[%s7299_s7 + $0x18] sm:$0xff]  }
 0xee0   :  { %3663 = vmatmul.mubr.bf16.vlgmr.msra.gmra.mrb[56].mxu0 %v3629_v51  ;;  %3706 = vmatmul.mubr.bf16.vlgmr.msra.gmra.mrb[56].mxu1 %v3629_v51  ;;  %v4789_v51 = vld [vmem:[%s7299_s7 + $0x20] sm:$0xff]  }
 0xee1   :  { %3782 = vmatpush1.bf16.msra.mxu0 %v6945_v48  ;;  %3825 = vmatpush1.bf16.msra.mxu1 %v6951_v49 }
 0xee2   :  { %3783 = vmatprep.subr.bf16.mxu0 %v6957_v33  ;;  %3826 = vmatprep.subr.bf16.mxu1 %v6963_v45 }
 0xee3   :  { %3813 = vmatprep.mubr.bf16.mxu0 %v5394_v1  ;;  %3856 = vmatprep.mubr.bf16.mxu1 %v5394_v1 }
 0xee5   :  { %3784 = vmatpush1.bf16.msra.mxu0 %v6971_v55  ;;  %3827 = vmatpush1.bf16.msra.mxu1 %v6977_v35 }
 0xee6   :  { %3785 = vmatprep.subr.bf16.mxu0 %v6983_v53  ;;  %3828 = vmatprep.subr.bf16.mxu1 %v6989_v15 }
 0xee9   :  { %3786 = vmatpush1.bf16.msra.mxu0 %v6995_v62  ;;  %3829 = vmatpush1.bf16.msra.mxu1 %v7001_v58 }
 0xeea   :  { %3787 = vmatprep.subr.bf16.mxu0 %v7007_v11  ;;  %3830 = vmatprep.subr.bf16.mxu1 %v7013_v12 }
 0xeed   :  { %3788 = vmatpush1.bf16.msra.mxu0 %v7019_v16  ;;  %3831 = vmatpush1.bf16.msra.mxu1 %v7025_v2 }
 0xeee   :  { %3789 = vmatprep.subr.bf16.mxu0 %v7031_v3  ;;  %3832 = vmatprep.subr.bf16.mxu1 %v7037_v63 }
 0xef1   :  { %3790 = vmatpush1.bf16.msra.mxu0 %v7043_v38  ;;  %3833 = vmatpush1.bf16.msra.mxu1 %v7049_v4 }
 0xef2   :  { %3791 = vmatprep.subr.bf16.mxu0 %v7055_v7  ;;  %3834 = vmatprep.subr.bf16.mxu1 %v7061_v8 }
 0xef5   :  { %3792 = vmatpush1.bf16.msra.mxu0 %v7067_v6  ;;  %3835 = vmatpush1.bf16.msra.mxu1 %v7073_v27 }
 0xef6   :  { %3793 = vmatprep.subr.bf16.mxu0 %v7079_v9  ;;  %3836 = vmatprep.subr.bf16.mxu1 %v7085_v13 }
 0xef9   :  { %3794 = vmatpush1.bf16.msra.mxu0 %v7091_v14  ;;  %3837 = vmatpush1.bf16.msra.mxu1 %v7097_v20 }
 0xefa   :  { %3795 = vmatprep.subr.bf16.mxu0 %v7103_v21  ;;  %3838 = vmatprep.subr.bf16.mxu1 %v7109_v31 }
 0xefd   :  { %3796 = vmatpush1.bf16.msra.mxu0 %v7115_v26  ;;  %3839 = vmatpush1.bf16.msra.mxu1 %v7121_v24 }
 0xefe   :  { %4313 = vmatprep.subr.bf16.mxu0 %v5395_v41 }
 0xfb3   :  { %v3664_v1 = vpop.f32.mrb[56].mxu0  ;;  %v3707_v48 = vpop.f32.mrb[56].mxu1 }
 0xfb4   :  { %v4421_v49 = vadd.f32 %v3664_v1, %v6759_v5  ;;  %v3666_v33 = vpop.f32.mrb[57].mxu0  ;;  %v3709_v45 = vpop.f32.mrb[57].mxu1  ;;  %v4453_v38 = vadd.f32 %v3707_v48, %v6775_v32  ;;  %v4790_v1 = vld [vmem:[%s7299_s7 + $0x28] sm:$0xff]   ;;  %v4791_v48 = vld [vmem:[%s7299_s7 + $0x30] sm:$0xff]  }
 0xfb5   :  { %v4422_v55 = vadd.f32 %v3666_v33, %v6763_v40  ;;  %v3668_v35 = vpop.f32.mrb[58].mxu0  ;;  %v3711_v53 = vpop.f32.mrb[58].mxu1  ;;  %v4454_v63 = vadd.f32 %v3709_v45, %v6770_v23 }
 0xfb6   :  { %v4282_v15 = vmul.f32 -1.442695, %v4421_v49  ;;  %v4423_v62 = vadd.f32 %v3668_v35, %v6759_v5  ;;  %v3670_v58 = vpop.f32.mrb[59].mxu0  ;;  %v3713_v11 = vpop.f32.mrb[59].mxu1  ;;  %v4455_v8 = vadd.f32 %v3711_v53, %v6775_v32  ;;  %v4792_v49 = vld [vmem:[%s7299_s7 + $0x38] sm:$0xff]  }
 0xfb7   :  { %v4284_v12 = vmul.f32 -1.442695, %v4422_v55  ;;  %v4424_v16 = vadd.f32 %v3670_v58, %v6763_v40  ;;  %v4286_v4 = vmul.f32 -1.442695, %v4454_v63  ;;  %v4456_v7 = vadd.f32 %v3713_v11, %v6770_v23 }
 0xfb8   :  { %5241 = vpow2.f32 %v4282_v15  ;;  %v4283_v2 = vmul.f32 -1.442695, %v4423_v62 }
 0xfb9   :  { %5243 = vpow2.f32 %v4284_v12  ;;  %v4285_v3 = vmul.f32 -1.442695, %v4424_v16  ;;  %v4287_v13 = vmul.f32 -1.442695, %v4456_v7 }
 0xfba   :  { %5245 = vpow2.f32 %v4283_v2 }
 0xfbb   :  { %5247 = vpow2.f32 %v4285_v3 }
 0xfbc   :  { %5249 = vtanh.f32 %v4453_v38 }
 0xfbd   :  { %5251 = vpow2.f32 %v4286_v4 }
 0xfbe   :  { %5253 = vtanh.f32 %v4455_v8 }
 0xfc2   :  { %v5242_v6 = vpop.eup %5241 }
 0xfc3   :  { %v5244_v27 = vpop.eup %5243  ;;  %v3730_v9 = vadd.f32 1.0, %v5242_v6 }
 0xfc4   :  { %v3742_v14 = vadd.f32 1.0, %v5244_v27  ;;  %v5246_v20 = vpop.eup %5245 }
 0xfc5   :  { %5255 = vrcp.f32 %v3730_v9  ;;  %v3731_v21 = vadd.f32 1.0, %v5246_v20  ;;  %v5248_v31 = vpop.eup %5247 }
 0xfc6   :  { %5257 = vrcp.f32 %v3742_v14  ;;  %v3743_v26 = vadd.f32 1.0, %v5248_v31  ;;  %v5250_v24 = vpop.eup %5249 }
 0xfc7   :  { %5259 = vpow2.f32 %v4287_v13  ;;  %v5252_v36 = vpop.eup %5251 }
 0xfc8   :  { %5261 = vrcp.f32 %v3731_v21  ;;  %v5254_v18 = vpop.eup %5253  ;;  %v3756_v17 = vadd.f32 1.0, %v5252_v36 }
 0xfc9   :  { %5263 = vrcp.f32 %v3743_v26 }
 0xfca   :  { %5265 = vrcp.f32 %v3756_v17 }
 0xfcf   :  { %v5256_v25 = vpop.eup %5255 }
 0xfd0   :  { %v5258_v47 = vpop.eup %5257  ;;  %v3764_v54 = vmul.f32 %v5256_v25, %v5250_v24 }
 0xfd1   :  { %v5260_v44 = vpop.eup %5259  ;;  %v3762_v52 = vmul.f32 %v5258_v47, %v7190_v19 }
 0xfd2   :  { %v5262_v37 = vpop.eup %5261  ;;  %v3757_v50 = vadd.f32 1.0, %v5260_v44 }
 0xfd3   :  { %v7238_v30 = vadd.f32 %v3764_v54, %v3762_v52  ;;  %v3765_v10 = vmul.f32 %v5262_v37, %v5254_v18  ;;  %v5264_v56 = vpop.eup %5263 }
 0xfd4   :  { %v3763_v34 = vmul.f32 %v5264_v56, %v7194_v57  ;;  %v5266_v28 = vpop.eup %5265  ;;  %v4785_v57 = vld [vmem:[%s7299_s7] sm:$0xff]  }
 0xfd5   :  { %5267 = vtanh.f32 %v7238_v30 }
 0xfd6   :  { %v7242_v0 = vadd.f32 %v3765_v10, %v3763_v34  ;;  %5269 = vrcp.f32 %v3757_v50 }
 0xfd8   :  { %5271 = vtanh.f32 %v7242_v0 }
 0xfdf   :  { %v5268_v61 = vpop.eup %5267 }
 0xfe0   :  { %v5270_v19 = vpop.eup %5269  ;;  %v3770_v22 = vmul.f32 %v5268_v61, %v5266_v28 }
 0xfe2   :  { %v5272_v39 = vpop.eup %5271 }
 0xfe3   :  { %v3771_v46 = vmul.f32 %v5272_v39, %v5270_v19 }
 0xfe5   :  { %v3780_v60 = vpack.c.bf16 %v3771_v46, %v3770_v22 }
 0xfe7   :  { %3814 = vmatmul.mubr.bf16.vlgmr.msra.gmra.mrb[60].mxu0 %v3780_v60  ;;  %3857 = vmatmul.mubr.bf16.vlgmr.msra.gmra.mrb[60].mxu1 %v3780_v60 }
 0xfe8   :  { %4314 = vmatpush3.bf16.msra.mxu0 %v4785_v57  ;;  %4329 = vmatprep.mubr.msk.bf16.mxu0 %vm5396_vm0, %v5395_v41 }
 0xfe9   :  { %4315 = vmatprep.subr.bf16.mxu0 %v5395_v41 }
 0xfec   :  { %4316 = vmatpush3.bf16.msra.mxu0 %v4786_v43 }
 0xfed   :  { %4317 = vmatprep.subr.bf16.mxu0 %v5395_v41 }
 0xff0   :  { %4318 = vmatpush3.bf16.msra.mxu0 %v4787_v59 }
 0xff1   :  { %4319 = vmatprep.subr.bf16.mxu0 %v5395_v41 }
 0xff4   :  { %4320 = vmatpush3.bf16.msra.mxu0 %v4788_v42 }
 0xff5   :  { %4321 = vmatprep.subr.bf16.mxu0 %v5395_v41 }
 0xff8   :  { %4322 = vmatpush3.bf16.msra.mxu0 %v4789_v51 }
 0xff9   :  { %4323 = vmatprep.subr.bf16.mxu0 %v5395_v41 }
 0xffc   :  { %4324 = vmatpush3.bf16.msra.mxu0 %v4790_v1 }
 0xffd   :  { %4325 = vmatprep.subr.bf16.mxu0 %v5395_v41 }
0x1000   :  { %4326 = vmatpush3.bf16.msra.mxu0 %v4791_v48 }
0x1001   :  { %4327 = vmatprep.subr.bf16.mxu0 %v5395_v41 }
0x1004   :  { %4328 = vmatpush3.bf16.msra.mxu0 %v4792_v49 }
0x10ba   :  { %v3815_v33 = vpop.f32.mrb[60].mxu0  ;;  %v3858_v45 = vpop.f32.mrb[60].mxu1 }
0x10bb   :  { %v4425_v55 = vadd.f32 %v3815_v33, %v6759_v5  ;;  %v3817_v35 = vpop.f32.mrb[61].mxu0  ;;  %v3860_v53 = vpop.f32.mrb[61].mxu1  ;;  %v4457_v8 = vadd.f32 %v3858_v45, %v6775_v32 }
0x10bc   :  { %v4426_v15 = vadd.f32 %v3817_v35, %v6763_v40  ;;  %v3819_v62 = vpop.f32.mrb[62].mxu0  ;;  %v3862_v58 = vpop.f32.mrb[62].mxu1  ;;  %v4458_v7 = vadd.f32 %v3860_v53, %v6770_v23 }
0x10bd   :  { %v4288_v11 = vmul.f32 -1.442695, %v4425_v55  ;;  %v4427_v12 = vadd.f32 %v3819_v62, %v6759_v5  ;;  %v3821_v16 = vpop.f32.mrb[63].mxu0  ;;  %v3864_v2 = vpop.f32.mrb[63].mxu1  ;;  %v4459_v5 = vadd.f32 %v3862_v58, %v6775_v32  ;;  %v4303_v62 = vld [vmem:[#allocation4] ss:$0 sm:$0xff] }
0x10be   :  { %v4290_v3 = vmul.f32 -1.442695, %v4426_v15  ;;  %v4428_v63 = vadd.f32 %v3821_v16, %v6763_v40  ;;  %v4292_v6 = vmul.f32 -1.442695, %v4458_v7  ;;  %v4460_v27 = vadd.f32 %v3864_v2, %v6770_v23 }
0x10bf   :  { %5273 = vpow2.f32 %v4288_v11  ;;  %v4289_v38 = vmul.f32 -1.442695, %v4427_v12 }
0x10c0   :  { %5275 = vpow2.f32 %v4290_v3  ;;  %v4291_v4 = vmul.f32 -1.442695, %v4428_v63  ;;  %v4293_v40 = vmul.f32 -1.442695, %v4460_v27 }
0x10c1   :  { %5277 = vpow2.f32 %v4289_v38 }
0x10c2   :  { %5279 = vpow2.f32 %v4291_v4 }
0x10c3   :  { %5281 = vtanh.f32 %v4457_v8 }
0x10c4   :  { %5283 = vpow2.f32 %v4292_v6 }
0x10c5   :  { %5285 = vtanh.f32 %v4459_v5 }
0x10c9   :  { %v5274_v9 = vpop.eup %5273 }
0x10ca   :  { %v5276_v13 = vpop.eup %5275  ;;  %v3881_v14 = vadd.f32 1.0, %v5274_v9 }
0x10cb   :  { %v3893_v20 = vadd.f32 1.0, %v5276_v13  ;;  %v5278_v21 = vpop.eup %5277 }
0x10cc   :  { %5287 = vrcp.f32 %v3881_v14  ;;  %v3882_v31 = vadd.f32 1.0, %v5278_v21  ;;  %v5280_v26 = vpop.eup %5279 }
0x10cd   :  { %5289 = vrcp.f32 %v3893_v20  ;;  %v3894_v24 = vadd.f32 1.0, %v5280_v26  ;;  %v5282_v23 = vpop.eup %5281 }
0x10ce   :  { %5291 = vpow2.f32 %v4293_v40  ;;  %v5284_v36 = vpop.eup %5283 }
0x10cf   :  { %5293 = vrcp.f32 %v3882_v31  ;;  %v5286_v32 = vpop.eup %5285  ;;  %v3907_v54 = vadd.f32 1.0, %v5284_v36 }
0x10d0   :  { %5295 = vrcp.f32 %v3894_v24 }
0x10d1   :  { %5297 = vrcp.f32 %v3907_v54 }
0x10d6   :  { %v5288_v18 = vpop.eup %5287 }
0x10d7   :  { %v5290_v25 = vpop.eup %5289  ;;  %v3915_v47 = vmul.f32 %v5288_v18, %v5282_v23 }
0x10d8   :  { %v5292_v44 = vpop.eup %5291  ;;  %v3913_v52 = vmul.f32 %v5290_v25, %v7238_v30  ;;  %v4038_v30 = vld [vmem:[%s7301_s9] sm:$0x1] }
0x10d9   :  { %v5294_v37 = vpop.eup %5293  ;;  %v3908_v50 = vadd.f32 1.0, %v5292_v44  ;;  %v4039_v41 = vunpack.c.l.bf16 %v4038_v30 }
0x10da   :  { %v3917_v17 = vadd.f32 %v3915_v47, %v3913_v52  ;;  %v3916_v10 = vmul.f32 %v5294_v37, %v5286_v32  ;;  %v5296_v56 = vpop.eup %5295 }
0x10db   :  { %v3914_v34 = vmul.f32 %v5296_v56, %v7242_v0  ;;  %v5298_v61 = vpop.eup %5297  ;;  %v4294_v0 = vld [vmem:[%s7300_s8] ss:$0 sm:$0xff]  ;;  %v4043_v51 = vrot.slane %v4039_v41, %v5867_v29 }
0x10dc   :  { %5299 = vtanh.f32 %v3917_v17 }
0x10dd   :  { %v3918_v28 = vadd.f32 %v3916_v10, %v3914_v34  ;;  %5301 = vrcp.f32 %v3908_v50 }
0x10df   :  { %5303 = vtanh.f32 %v3918_v28 }
0x10e6   :  { %v5300_v19 = vpop.eup %5299 }
0x10e7   :  { %v3921_v39 = vmul.f32 %v5300_v19, %v5298_v61  ;;  %v5302_v22 = vpop.eup %5301 }
0x10e9   :  { %v5304_v46 = vpop.eup %5303 }
0x10ea   :  { %v3922_v60 = vmul.f32 %v5304_v46, %v5302_v22 }
0x10ec   :  { %v3939_v57 = vpack.c.bf16 %v3922_v60, %v3921_v39 }
0x10ee   :  { %4330 = vmatmul.mubr.bf16.vlgmr.msra.gmra.mrb[64].mxu0 %v3939_v57 }
0x11c1   :  { %v4029_v43 = vpop.f32.mrb[64].mxu0 }
0x11c2   :  { %v4030_v59 = vadd.f32 %v4294_v0, %v4029_v43  ;;  %v4331_v42 = vpop.f32.mrb[65].mxu0 }
0x11c3   :  { %v4032_v1 = vpop.f32.mrb[66].mxu0 }
0x11c4   :  { %v4036_v48 = vmax.f32 %v4030_v59, 0.0  ;;  %v4033_v49 = vadd.f32 %v4294_v0, %v4032_v1  ;;  %v4332_v33 = vpop.f32.mrb[67].mxu0 }
0x11c6   :  { %v4037_v45 = vmax.f32 %v4033_v49, 0.0  ;;  %v4044_v55 = vmul.f32 %v4043_v51, %v4036_v48 }
0x11c8   :  { %v4047_v35 = vsel %vm4046_vm1, %v4044_v55, 0.0  ;;  %v4045_v53 = vmul.f32 %v4043_v51, %v4037_v45 }
0x11c9   :  { %4048 = vadd.xlane.f32.xlu0 %v4047_v35 }
0x11ca   :  { %v4050_v15 = vsel %vm4046_vm1, %v4045_v53, 0.0 }
0x11cd   :  { %4051 = vadd.xlane.f32.xlu0 %v4050_v15 }
0x1256   :  { %v4049_v58 = vpop.xlane.xlu0 %4048 }
0x1257   :  { %v4060_v11 = vadd.f32 %v4303_v62, %v4049_v58 }
0x1259   :  { %4063 = vst.msk [vmem:[%s7303_s11] sm:$0xff] %vm4062_vm2, %v4060_v11 }
0x125a   :  { %v4052_v29 = vpop.xlane.xlu0 %4051 }
0x125b   :  { %v4061_v12 = vadd.f32 %v4303_v62, %v4052_v29 }
0x125d   :  { %4064 = vst.msk [vmem:[%s7303_s11 + $0x8] sm:$0xff] %vm4062_vm2, %v4061_v12 }
0x125e   :  { %4069 = vsyncpa [#allocation6], 1 }

</bundles_post_ra>
